<compile_context>
chip_gen: v7x
topology: tpu7x:2x2x1
jax: 0.10.0
libtpu: 0.0.40
codegen_flags: <defaults>
</compile_context>

<pallas_src>
import functools

import jax
import jax.numpy as jnp
from jax.experimental import pallas as pl
from jax.experimental.pallas import tpu as pltpu

FEA_DIM = 512
PATCH = 4              # stem patch size (stride == kernel, non-overlapping)
STEM_CH = 32           # stem output channels
C2 = 2 * STEM_CH       # [unflipped | flipped] stem channels produced per patch
NEG_SLOPE = 0.01       # nn.LeakyReLU default
OUT_PAD = 128          # lane-dense padding of the 3-class head
TILE_BUDGET = 4 << 20  # bf16 bytes per patch tile (double-buffered this stays well
                       # under v7x's 64 MiB/TC; v5e/v6e have 2x the VMEM)
VMEM_LIMIT = 48 * 1024 * 1024


def _leaky(v):
    return jnp.where(v >= 0, v, NEG_SLOPE * v)


def _round_up(v, m):
    return (v + m - 1) // m * m


def _choose_group(pw):
    """Patches packed per im2col row (needs to divide the per-row patch count)."""
    for g in (8, 4, 2):
        if pw % g == 0:
            return g
    return 1


def _choose_pg_tile(p_g, n_pad, row_bytes, budget=TILE_BUDGET):
    divisors = [dv for dv in range(1, p_g + 1) if p_g % dv == 0]
    fits = [dv for dv in divisors if dv * n_pad * row_bytes <= budget]
    pg_tile = max(fits) if fits else 1
    # keep >= 2 steps on the reduction axis when possible so DMA overlaps compute
    if pg_tile == p_g and p_g > 1:
        pg_tile = max(dv for dv in divisors if dv < p_g)
    return pg_tile


# --------------------------------------------------------------------------- kernel
def _make_kernel(n_pad, pg_tile, G, p_total):
    inv_p = 1.0 / float(p_total)

    def kernel(patches_ref, cond_ref,
               w_stem, b_stem, w_head, b_head,
               w_c1, b_c1, w_c2, b_c2, w_c3, b_c3,
               w_o1, b_o1, w_o2, b_o2,
               out_ref, gap_acc):
        t = pl.program_id(1)

        @pl.when(t == 0)
        def _init():
            gap_acc[...] = jnp.zeros_like(gap_acc)

        # ---- stem on this patch tile (block-diagonal packing: K = G*48, N = G*64) ----
        pt = patches_ref[...]                                   # (pg_tile, n_pad, G*F) bf16
        gf = pt.shape[-1]
        acts = jnp.dot(pt.reshape(pg_tile * n_pad, gf), w_stem[...],
                       preferred_element_type=jnp.float32) + b_stem[...]
        acts = _leaky(acts)                                     # (pg_tile*n_pad, G*C2) f32
        # sum the tile's patch rows, then collapse the G lane groups into the GAP accumulator
        tile_sum = jnp.sum(acts.reshape(pg_tile, n_pad, G * C2), axis=0)   # (n_pad, G*C2)
        grp = tile_sum[:, 0:C2]
        for g in range(1, G):
            grp = grp + tile_sum[:, g * C2:(g + 1) * C2]
        gap_acc[...] += grp

        # ---- epilogue once per group, on the last patch tile ----
        @pl.when(t == pl.num_programs(1) - 1)
        def _finish():
            pooled = (gap_acc[...] * inv_p).astype(jnp.bfloat16)           # (n_pad, C2)
            # block-diagonal backbone head: cols [:512] = unflipped feat, [512:] = flipped
            fb = jnp.dot(pooled, w_head[...],
                         preferred_element_type=jnp.float32) + b_head[...]  # (n_pad, 1024)
            feat0 = fb[:, :FEA_DIM]
            feat1 = fb[:, FEA_DIM:]

            # cond branch (flip-invariant, computed once)
            c = cond_ref[...]                                              # (n_pad, 64) bf16
            c = _leaky(jnp.dot(c, w_c1[...],
                               preferred_element_type=jnp.float32) + b_c1[...])
            c = _leaky(jnp.dot(c.astype(jnp.bfloat16), w_c2[...],
                               preferred_element_type=jnp.float32) + b_c2[...])
            c = jax.nn.sigmoid(jnp.dot(c.astype(jnp.bfloat16), w_c3[...],
                                       preferred_element_type=jnp.float32) + b_c3[...])

            # gating + first out_linear layer per flip half; dropout(0.1) == identity in eval
            x0 = _leaky(jnp.dot((feat0 * c).astype(jnp.bfloat16), w_o1[...],
                                preferred_element_type=jnp.float32) + b_o1[...])
            x1 = _leaky(jnp.dot((feat1 * c).astype(jnp.bfloat16), w_o1[...],
                                preferred_element_type=jnp.float32) + b_o1[...])
            x = 0.5 * (x0 + x1)        # TTA average, exact when pushed before the final affine
            out_ref[...] = jnp.dot(x.astype(jnp.bfloat16), w_o2[...],
                                   preferred_element_type=jnp.float32) + b_o2[...]

    return kernel


# --------------------------------------------------------------------------- wrapper helpers
def _pack_patches(x, n_pad, G):
    """x (b, 15, d, H, W) f32 -> (3, p_g, n_pad, G*F) bf16, patch-group-major im2col."""
    b, k, d, H, W = x.shape
    PH, PW = H // PATCH, W // PATCH
    PWg = PW // G
    n_all = b * k
    # im2col + horizontal patch grouping in one rank-7 transpose (no flipped copy)
    t = x.reshape(n_all, d, PH, PATCH, PWg, G, PATCH)
    t = t.transpose(2, 4, 0, 5, 1, 3, 6)                      # (PH, PWg, n_all, G, d, r, c)
    t = t.reshape(PH * PWg, n_all, G * d * PATCH * PATCH).astype(jnp.bfloat16)
    # regroup image axis (b, 3, 5) -> (3, b, 5): cheap bf16 copy (often fused by XLA)
    t = t.reshape(PH * PWg, b, 3, 5, -1).transpose(2, 0, 1, 3, 4)
    t = t.reshape(3, PH * PWg, b * 5, -1)
    if n_pad != b * 5:
        t = jnp.pad(t, ((0, 0), (0, 0), (0, n_pad - b * 5), (0, 0)))
    return t


def _cond_embed(cond_g, emb, n_pad):
    e = jnp.take(emb, cond_g.reshape(-1), axis=0)             # (b*5, 64)
    if n_pad != e.shape[0]:
        e = jnp.pad(e, ((0, n_pad - e.shape[0]), (0, 0)))
    return e


def _prep_weights(prm, in_chans, G):
    bf16 = jnp.bfloat16
    F = in_chans * PATCH * PATCH
    # horizontal image flip == permutation of the stem's input rows (within-patch column
    # reversal); patch position is irrelevant after global average pooling.
    w_flip = prm["w_stem"].reshape(in_chans, PATCH, PATCH, STEM_CH)[:, :, ::-1, :]
    w_flip = w_flip.reshape(F, STEM_CH)
    w_both = jnp.concatenate([prm["w_stem"], w_flip], axis=-1)                     # (F, C2)
    w_stem_bd = jnp.einsum("ge,fc->gfec", jnp.eye(G, dtype=w_both.dtype),
                           w_both).reshape(G * F, G * C2)                          # block-diag
    b_both = jnp.concatenate([prm["b_stem"], prm["b_stem"]], axis=-1)              # (1, C2)
    b_stem_g = jnp.tile(b_both, (1, G))                                            # (1, G*C2)

    # block-diagonal backbone head: both flip halves in one (C2, 2*FEA_DIM) matmul
    w_head2 = jnp.einsum("ge,fc->gfec", jnp.eye(2, dtype=prm["w_head"].dtype),
                         prm["w_head"]).reshape(C2, 2 * FEA_DIM)
    b_head2 = jnp.tile(prm["b_head"], (1, 2))

    w_o2 = jnp.pad(prm["w_o2"], ((0, 0), (0, OUT_PAD - prm["w_o2"].shape[-1])))
    b_o2 = jnp.pad(prm["b_o2"], ((0, 0), (0, OUT_PAD - prm["b_o2"].shape[-1])))

    return [w_stem_bd.astype(bf16), b_stem_g,
            w_head2.astype(bf16), b_head2,
            prm["w_c1"].astype(bf16), prm["b_c1"],
            prm["w_c2"].astype(bf16), prm["b_c2"],
            prm["w_c3"].astype(bf16), prm["b_c3"],
            prm["w_o1"].astype(bf16), prm["b_o1"],
            w_o2.astype(bf16), b_o2]


# --------------------------------------------------------------------------- forward
def sag_model_t1_t2_forward(x, cond, params_t1, params_t2):
    """Eval-mode forward (flip-TTA).  x: (b, 15, d, h, w), cond: (b, 15) int32 -> (b, 45)."""
    b, k, d, hh, ww = x.shape
    assert k == 15, k
    assert hh % PATCH == 0 and ww % PATCH == 0
    assert params_t1["w_stem"].shape[0] == d * PATCH * PATCH
    x = x.astype(jnp.float32)

    PH, PW = hh // PATCH, ww // PATCH
    p_total = PH * PW
    G = _choose_group(PW)
    F = d * PATCH * PATCH
    GF = G * F
    p_g = PH * (PW // G)

    n_img = b * 5                             # images per group (each k-slab of 5)
    n_pad = _round_up(n_img, 16)              # full bf16 sublane tiles

    patches = _pack_patches(x, n_pad, G)                                  # (3, p_g, n_pad, GF)
    cond_emb = jnp.stack(
        [_cond_embed(cond[:, 0:5], params_t2["emb"], n_pad),
         _cond_embed(cond[:, 5:10], params_t1["emb"], n_pad),
         _cond_embed(cond[:, 10:15], params_t1["emb"], n_pad)],
        axis=0).astype(jnp.bfloat16)                                      # (3, n_pad, 64)

    prepped = [_prep_weights(p, d, G) for p in (params_t2, params_t1, params_t1)]
    weights = [jnp.stack(ws, axis=0) for ws in zip(*prepped)]

    pg_tile = _choose_pg_tile(p_g, n_pad, GF * 2)
    n_tiles = p_g // pg_tile

    inputs = [patches, cond_emb] + weights

    def resident_spec(a):
        nd = a.ndim
        return pl.BlockSpec((None,) + tuple(a.shape[1:]),
                            lambda m, t, _nd=nd: (m,) + (0,) * (_nd - 1))

    in_specs = ([pl.BlockSpec((None, pg_tile, n_pad, GF), lambda m, t: (m, t, 0, 0))]
                + [resident_spec(a) for a in inputs[1:]])
    out_spec = pl.BlockSpec((None, n_pad, OUT_PAD), lambda m, t: (m, 0, 0))

    # advisory cost estimate for the XLA scheduler
    flops = 2 * 3 * (p_g * n_pad) * GF * (G * C2)
    flops += 2 * 3 * n_pad * (C2 * 2 * FEA_DIM + 64 * 128 + 128 * 256 + 256 * FEA_DIM
                              + 2 * FEA_DIM * FEA_DIM + FEA_DIM * OUT_PAD)
    bytes_accessed = int(sum(a.size * a.dtype.itemsize for a in inputs)
                         + 3 * n_pad * OUT_PAD * 4)
    cost = pl.CostEstimate(flops=int(flops), transcendentals=3 * n_pad * FEA_DIM,
                           bytes_accessed=bytes_accessed)

    out = pl.pallas_call(
        _make_kernel(n_pad, pg_tile, G, p_total),
        grid=(3, n_tiles),
        out_shape=jax.ShapeDtypeStruct((3, n_pad, OUT_PAD), jnp.float32),
        in_specs=in_specs,
        out_specs=out_spec,
        scratch_shapes=[pltpu.VMEM((n_pad, C2), jnp.float32)],
        compiler_params=pltpu.CompilerParams(
            dimension_semantics=("parallel", "arbitrary"),
            vmem_limit_bytes=VMEM_LIMIT),
        cost_estimate=cost,
    )(*inputs)

    # strip row/lane padding; match reshape(b, k, 3).reshape(b, -1) then cat(t2, t1)
    o = out[:, :n_img, :3]
    pred_t2 = o[0].reshape(b, 5 * 3)
    pred_t1 = jnp.concatenate([o[1].reshape(b, 5, 3), o[2].reshape(b, 5, 3)],
                              axis=1).reshape(b, 10 * 3)
    return jnp.concatenate([pred_t2, pred_t1], axis=-1)


# --------------------------------------------------------------------------- reference & init
def _reference_forward(x, cond, params_t1, params_t2):
    """Pure-JAX mirror of the PyTorch eval forward (same bf16/f32 mix as the kernel)."""
    bf16 = jnp.bfloat16
    b, k, d, H, W = x.shape
    PH, PW = H // PATCH, W // PATCH
    F = d * PATCH * PATCH

    def backbone(imgs, prm):
        n = imgs.shape[0]
        pt = imgs.reshape(n, d, PH, PATCH, PW, PATCH).transpose(0, 2, 4, 1, 3, 5)
        pt = pt.reshape(n, PH * PW, F).astype(bf16)
        z = _leaky(jnp.dot(pt, prm["w_stem"].astype(bf16),
                           preferred_element_type=jnp.float32) + prm["b_stem"])
        pooled = jnp.mean(z, axis=1)
        return jnp.dot(pooled.astype(bf16), prm["w_head"].astype(bf16),
                       preferred_element_type=jnp.float32) + prm["b_head"]

    def sag25d(imgs, idx, prm):
        feat = backbone(imgs, prm)
        c = jnp.take(prm["emb"], idx.reshape(-1), axis=0)
        c = _leaky(jnp.dot(c.astype(bf16), prm["w_c1"].astype(bf16),
                           preferred_element_type=jnp.float32) + prm["b_c1"])
        c = _leaky(jnp.dot(c.astype(bf16), prm["w_c2"].astype(bf16),
                           preferred_element_type=jnp.float32) + prm["b_c2"])
        c = jax.nn.sigmoid(jnp.dot(c.astype(bf16), prm["w_c3"].astype(bf16),
                                   preferred_element_type=jnp.float32) + prm["b_c3"])
        z = feat * c
        z = _leaky(jnp.dot(z.astype(bf16), prm["w_o1"].astype(bf16),
                           preferred_element_type=jnp.float32) + prm["b_o1"])
        return jnp.dot(z.astype(bf16), prm["w_o2"].astype(bf16),
                       preferred_element_type=jnp.float32) + prm["b_o2"]

    def forward1(xx):
        bb = xx.shape[0]
        t2 = sag25d(xx[:, :5].reshape(bb * 5, d, H, W), cond[:, :5], params_t2)
        t1 = sag25d(xx[:, 5:15].reshape(bb * 10, d, H, W), cond[:, 5:15], params_t1)
        return jnp.concatenate([t2.reshape(bb, 15), t1.reshape(bb, 30)], axis=-1)

    return 0.5 * (forward1(x) + forward1(jnp.flip(x, axis=-1)))


def init_sag25d_params(key, in_chans=3):
    ks = jax.random.split(key, 16)
    f_in = in_chans * PATCH * PATCH

    def lin(kw, fan_in, fan_out):
        scale = 1.0 / jnp.sqrt(jnp.float32(fan_in))
        return jax.random.normal(kw, (fan_in, fan_out), jnp.float32) * scale

    return {
        "emb":    jax.random.normal(ks[0], (5, 64), jnp.float32),
        "w_stem": lin(ks[1], f_in, STEM_CH),
        "b_stem": jnp.zeros((1, STEM_CH), jnp.float32),
        "w_head": lin(ks[2], STEM_CH, FEA_DIM),
        "b_head": jax.random.normal(ks[3], (1, FEA_DIM), jnp.float32) * 0.01,
        "w_c1":   lin(ks[4], 64, 128),
        "b_c1":   jax.random.normal(ks[5], (1, 128), jnp.float32) * 0.01,
        "w_c2":   lin(ks[6], 128, 256),
        "b_c2":   jax.random.normal(ks[7], (1, 256), jnp.float32) * 0.01,
        "w_c3":   lin(ks[8], 256, FEA_DIM),
        "b_c3":   jax.random.normal(ks[9], (1, FEA_DIM), jnp.float32) * 0.01,
        "w_o1":   lin(ks[10], FEA_DIM, FEA_DIM),
        "b_o1":   jax.random.normal(ks[11], (1, FEA_DIM), jnp.float32) * 0.01,
        "w_o2":   lin(ks[12], FEA_DIM, 3),
        "b_o2":   jax.random.normal(ks[13], (1, 3), jnp.float32) * 0.01,
    }


if __name__ == "__main__":
    key = jax.random.PRNGKey(0)
    k_t1, k_t2, k_x, k_c = jax.random.split(key, 4)

    params_t1 = init_sag25d_params(k_t1, in_chans=3)
    params_t2 = init_sag25d_params(k_t2, in_chans=3)

    # x: (b, k=15, d=in_chans, h, w); cond: (b, 15) int levels in [0, 5)
    b, k, d, hh, ww = 2, 15, 3, 16, 16
    x = jax.random.normal(k_x, (b, k, d, hh, ww), jnp.float32)
    cond = jax.random.randint(k_c, (b, k), 0, 5, dtype=jnp.int32)

    fwd = jax.jit(functools.partial(sag_model_t1_t2_forward,
                                    params_t1=params_t1, params_t2=params_t2))
    out = fwd(x, cond)
    jax.block_until_ready(out)
    assert out.shape == (b, 45), out.shape

    ref = jax.jit(functools.partial(_reference_forward,
                                    params_t1=params_t1, params_t2=params_t2))(x, cond)
    err = float(jnp.max(jnp.abs(out - ref)))
    assert err < 3e-2, f"max abs diff vs reference = {err}"
    print("KERNEL_OK")
</pallas_src>

<mosaic_0001>
module attributes {stable_mosaic.version = 11 : i64} {
  func.func @kernel(%arg0: i32, %arg1: i32, %arg2: memref<1x2x16x192xbf16, #tpu.memory_space<vmem>>, %arg3: memref<1x16x64xbf16, #tpu.memory_space<vmem>>, %arg4: memref<1x192x256xbf16, #tpu.memory_space<vmem>>, %arg5: memref<1x1x256xf32, #tpu.memory_space<vmem>>, %arg6: memref<1x64x1024xbf16, #tpu.memory_space<vmem>>, %arg7: memref<1x1x1024xf32, #tpu.memory_space<vmem>>, %arg8: memref<1x64x128xbf16, #tpu.memory_space<vmem>>, %arg9: memref<1x1x128xf32, #tpu.memory_space<vmem>>, %arg10: memref<1x128x256xbf16, #tpu.memory_space<vmem>>, %arg11: memref<1x1x256xf32, #tpu.memory_space<vmem>>, %arg12: memref<1x256x512xbf16, #tpu.memory_space<vmem>>, %arg13: memref<1x1x512xf32, #tpu.memory_space<vmem>>, %arg14: memref<1x512x512xbf16, #tpu.memory_space<vmem>>, %arg15: memref<1x1x512xf32, #tpu.memory_space<vmem>>, %arg16: memref<1x512x128xbf16, #tpu.memory_space<vmem>>, %arg17: memref<1x1x128xf32, #tpu.memory_space<vmem>>, %arg18: memref<1x16x128xf32, #tpu.memory_space<vmem>>, %arg19: memref<16x64xf32, #tpu.memory_space<vmem>>) attributes {dimension_semantics = [#tpu.dimension_semantics<parallel>, #tpu.dimension_semantics<arbitrary>], iteration_bounds = array<i64: 3, 2>, scalar_prefetch = 0 : i64, scratch_operands = 1 : i64, tpu.core_type = #tpu.core_type<tc>, window_params = [{transform_indices = @transform_0, window_bounds = array<i64: 1, 2, 16, 192>}, {transform_indices = @transform_1, window_bounds = array<i64: 1, 16, 64>}, {transform_indices = @transform_2, window_bounds = array<i64: 1, 192, 256>}, {transform_indices = @transform_3, window_bounds = array<i64: 1, 1, 256>}, {transform_indices = @transform_4, window_bounds = array<i64: 1, 64, 1024>}, {transform_indices = @transform_5, window_bounds = array<i64: 1, 1, 1024>}, {transform_indices = @transform_6, window_bounds = array<i64: 1, 64, 128>}, {transform_indices = @transform_7, window_bounds = array<i64: 1, 1, 128>}, {transform_indices = @transform_8, window_bounds = array<i64: 1, 128, 256>}, {transform_indices = @transform_9, window_bounds = array<i64: 1, 1, 256>}, {transform_indices = @transform_10, window_bounds = array<i64: 1, 256, 512>}, {transform_indices = @transform_11, window_bounds = array<i64: 1, 1, 512>}, {transform_indices = @transform_12, window_bounds = array<i64: 1, 512, 512>}, {transform_indices = @transform_13, window_bounds = array<i64: 1, 1, 512>}, {transform_indices = @transform_14, window_bounds = array<i64: 1, 512, 128>}, {transform_indices = @transform_15, window_bounds = array<i64: 1, 1, 128>}, {transform_indices = @transform_16, window_bounds = array<i64: 1, 16, 128>}]} {
    %c0_i32 = arith.constant 0 : i32
    %0 = arith.cmpi eq, %arg1, %c0_i32 : i32
    %1 = arith.extui %0 : i1 to i32
    %c0_i32_0 = arith.constant 0 : i32
    %2 = arith.cmpi ne, %1, %c0_i32_0 : i32
    scf.if %2 {
      %cst_18 = arith.constant 0.000000e+00 : f32
      %33 = vector.broadcast %cst_18 : f32 to vector<16x64xf32>
      %c0_19 = arith.constant 0 : index
      %c0_20 = arith.constant 0 : index
      %34 = vector.load %arg19[%c0_19, %c0_20] : memref<16x64xf32, #tpu.memory_space<vmem>>, vector<16x64xf32>
      tpu.vector_store %arg19[%c0_19, %c0_20], %33 {strides = array<i32>} : memref<16x64xf32, #tpu.memory_space<vmem>>, vector<16x64xf32>,
    } else {
    }
    %c0 = arith.constant 0 : index
    %c0_1 = arith.constant 0 : index
    %c0_2 = arith.constant 0 : index
    %c0_3 = arith.constant 0 : index
    %3 = vector.load %arg2[%c0, %c0_1, %c0_2, %c0_3] : memref<1x2x16x192xbf16, #tpu.memory_space<vmem>>, vector<1x2x16x192xbf16>
    %4 = vector.shape_cast %3 : vector<1x2x16x192xbf16> to vector<2x16x192xbf16>
    %5 = vector.shape_cast %4 : vector<2x16x192xbf16> to vector<32x192xbf16>
    %c0_4 = arith.constant 0 : index
    %c0_5 = arith.constant 0 : index
    %c0_6 = arith.constant 0 : index
    %6 = vector.load %arg4[%c0_4, %c0_5, %c0_6] : memref<1x192x256xbf16, #tpu.memory_space<vmem>>, vector<1x192x256xbf16>
    %7 = vector.shape_cast %6 : vector<1x192x256xbf16> to vector<192x256xbf16>
    %cst = arith.constant dense<0.000000e+00> : vector<32x256xf32>
    %8 = tpu.matmul %5, %7, %cst {dimension_numbers = #tpu.dot_dimension_numbers<[1], [0], [0], [1], [0, 0, 1, 1], [], []>} : vector<32x192xbf16>, vector<192x256xbf16>, vector<32x256xf32> -> vector<32x256xf32>
    %c0_7 = arith.constant 0 : index
    %c0_8 = arith.constant 0 : index
    %c0_9 = arith.constant 0 : index
    %9 = vector.load %arg5[%c0_7, %c0_8, %c0_9] : memref<1x1x256xf32, #tpu.memory_space<vmem>>, vector<1x1x256xf32>
    %10 = vector.shape_cast %9 : vector<1x1x256xf32> to vector<1x256xf32>
    %11 = vector.broadcast %10 : vector<1x256xf32> to vector<32x256xf32>
    %12 = arith.addf %8, %11 : vector<32x256xf32>
    %cst_10 = arith.constant 0.000000e+00 : f32
    %13 = vector.broadcast %cst_10 : f32 to vector<32x256xf32>
    %14 = arith.cmpf oge, %12, %13 : vector<32x256xf32>
    %cst_11 = arith.constant 0.00999999977 : f32
    %15 = vector.broadcast %cst_11 : f32 to vector<32x256xf32>
    %16 = arith.mulf %15, %12 : vector<32x256xf32>
    %17 = arith.select %14, %12, %16 : vector<32x256xi1>, vector<32x256xf32>
    %18 = vector.shape_cast %17 : vector<32x256xf32> to vector<2x16x256xf32>
    %cst_12 = arith.constant dense<0.000000e+00> : vector<16x256xf32>
    %19 = vector.multi_reduction <add>, %18, %cst_12 [0] : vector<2x16x256xf32> to vector<16x256xf32>
    %20 = vector.extract_strided_slice %19 {offsets = [0, 0], sizes = [16, 64], strides = [1, 1]} : vector<16x256xf32> to vector<16x64xf32>
    %21 = vector.extract_strided_slice %19 {offsets = [0, 64], sizes = [16, 64], strides = [1, 1]} : vector<16x256xf32> to vector<16x64xf32>
    %22 = arith.addf %20, %21 : vector<16x64xf32>
    %23 = vector.extract_strided_slice %19 {offsets = [0, 128], sizes = [16, 64], strides = [1, 1]} : vector<16x256xf32> to vector<16x64xf32>
    %24 = arith.addf %22, %23 : vector<16x64xf32>
    %25 = vector.extract_strided_slice %19 {offsets = [0, 192], sizes = [16, 64], strides = [1, 1]} : vector<16x256xf32> to vector<16x64xf32>
    %26 = arith.addf %24, %25 : vector<16x64xf32>
    %c0_13 = arith.constant 0 : index
    %c0_14 = arith.constant 0 : index
    %27 = vector.load %arg19[%c0_13, %c0_14] : memref<16x64xf32, #tpu.memory_space<vmem>>, vector<16x64xf32>
    %28 = arith.addf %27, %26 : vector<16x64xf32>
    %c0_15 = arith.constant 0 : index
    %c0_16 = arith.constant 0 : index
    %29 = vector.load %arg19[%c0_15, %c0_16] : memref<16x64xf32, #tpu.memory_space<vmem>>, vector<16x64xf32>
    tpu.vector_store %arg19[%c0_15, %c0_16], %28 {strides = array<i32>} : memref<16x64xf32, #tpu.memory_space<vmem>>, vector<16x64xf32>,
    %c1_i32 = arith.constant 1 : i32
    %30 = arith.cmpi eq, %arg1, %c1_i32 : i32
    %31 = arith.extui %30 : i1 to i32
    %c0_i32_17 = arith.constant 0 : i32
    %32 = arith.cmpi ne, %31, %c0_i32_17 : i32
    scf.if %32 {
      %c0_18 = arith.constant 0 : index
      %c0_19 = arith.constant 0 : index
      %33 = vector.load %arg19[%c0_18, %c0_19] : memref<16x64xf32, #tpu.memory_space<vmem>>, vector<16x64xf32>
      %cst_20 = arith.constant 6.250000e-02 : f32
      %34 = vector.broadcast %cst_20 : f32 to vector<16x64xf32>
      %35 = arith.mulf %33, %34 : vector<16x64xf32>
      %36 = arith.truncf %35 : vector<16x64xf32> to vector<16x64xbf16>
      %c0_21 = arith.constant 0 : index
      %c0_22 = arith.constant 0 : index
      %c0_23 = arith.constant 0 : index
      %37 = vector.load %arg6[%c0_21, %c0_22, %c0_23] : memref<1x64x1024xbf16, #tpu.memory_space<vmem>>, vector<1x64x1024xbf16>
      %38 = vector.shape_cast %37 : vector<1x64x1024xbf16> to vector<64x1024xbf16>
      %cst_24 = arith.constant dense<0.000000e+00> : vector<16x1024xf32>
      %39 = tpu.matmul %36, %38, %cst_24 {dimension_numbers = #tpu.dot_dimension_numbers<[1], [0], [0], [1], [0, 0, 1, 1], [], []>} : vector<16x64xbf16>, vector<64x1024xbf16>, vector<16x1024xf32> -> vector<16x1024xf32>
      %c0_25 = arith.constant 0 : index
      %c0_26 = arith.constant 0 : index
      %c0_27 = arith.constant 0 : index
      %40 = vector.load %arg7[%c0_25, %c0_26, %c0_27] : memref<1x1x1024xf32, #tpu.memory_space<vmem>>, vector<1x1x1024xf32>
      %41 = vector.shape_cast %40 : vector<1x1x1024xf32> to vector<1x1024xf32>
      %42 = vector.broadcast %41 : vector<1x1024xf32> to vector<16x1024xf32>
      %43 = arith.addf %39, %42 : vector<16x1024xf32>
      %44 = vector.extract_strided_slice %43 {offsets = [0, 0], sizes = [16, 512], strides = [1, 1]} : vector<16x1024xf32> to vector<16x512xf32>
      %45 = vector.extract_strided_slice %43 {offsets = [0, 512], sizes = [16, 512], strides = [1, 1]} : vector<16x1024xf32> to vector<16x512xf32>
      %c0_28 = arith.constant 0 : index
      %c0_29 = arith.constant 0 : index
      %c0_30 = arith.constant 0 : index
      %46 = vector.load %arg3[%c0_28, %c0_29, %c0_30] : memref<1x16x64xbf16, #tpu.memory_space<vmem>>, vector<1x16x64xbf16>
      %47 = vector.shape_cast %46 : vector<1x16x64xbf16> to vector<16x64xbf16>
      %c0_31 = arith.constant 0 : index
      %c0_32 = arith.constant 0 : index
      %c0_33 = arith.constant 0 : index
      %48 = vector.load %arg8[%c0_31, %c0_32, %c0_33] : memref<1x64x128xbf16, #tpu.memory_space<vmem>>, vector<1x64x128xbf16>
      %49 = vector.shape_cast %48 : vector<1x64x128xbf16> to vector<64x128xbf16>
      %cst_34 = arith.constant dense<0.000000e+00> : vector<16x128xf32>
      %50 = tpu.matmul %47, %49, %cst_34 {dimension_numbers = #tpu.dot_dimension_numbers<[1], [0], [0], [1], [0, 0, 1, 1], [], []>} : vector<16x64xbf16>, vector<64x128xbf16>, vector<16x128xf32> -> vector<16x128xf32>
      %c0_35 = arith.constant 0 : index
      %c0_36 = arith.constant 0 : index
      %c0_37 = arith.constant 0 : index
      %51 = vector.load %arg9[%c0_35, %c0_36, %c0_37] : memref<1x1x128xf32, #tpu.memory_space<vmem>>, vector<1x1x128xf32>
      %52 = vector.shape_cast %51 : vector<1x1x128xf32> to vector<1x128xf32>
      %53 = vector.broadcast %52 : vector<1x128xf32> to vector<16x128xf32>
      %54 = arith.addf %50, %53 : vector<16x128xf32>
      %cst_38 = arith.constant 0.000000e+00 : f32
      %55 = vector.broadcast %cst_38 : f32 to vector<16x128xf32>
      %56 = arith.cmpf oge, %54, %55 : vector<16x128xf32>
      %cst_39 = arith.constant 0.00999999977 : f32
      %57 = vector.broadcast %cst_39 : f32 to vector<16x128xf32>
      %58 = arith.mulf %57, %54 : vector<16x128xf32>
      %59 = arith.select %56, %54, %58 : vector<16x128xi1>, vector<16x128xf32>
      %60 = arith.truncf %59 : vector<16x128xf32> to vector<16x128xbf16>
      %c0_40 = arith.constant 0 : index
      %c0_41 = arith.constant 0 : index
      %c0_42 = arith.constant 0 : index
      %61 = vector.load %arg10[%c0_40, %c0_41, %c0_42] : memref<1x128x256xbf16, #tpu.memory_space<vmem>>, vector<1x128x256xbf16>
      %62 = vector.shape_cast %61 : vector<1x128x256xbf16> to vector<128x256xbf16>
      %cst_43 = arith.constant dense<0.000000e+00> : vector<16x256xf32>
      %63 = tpu.matmul %60, %62, %cst_43 {dimension_numbers = #tpu.dot_dimension_numbers<[1], [0], [0], [1], [0, 0, 1, 1], [], []>} : vector<16x128xbf16>, vector<128x256xbf16>, vector<16x256xf32> -> vector<16x256xf32>
      %c0_44 = arith.constant 0 : index
      %c0_45 = arith.constant 0 : index
      %c0_46 = arith.constant 0 : index
      %64 = vector.load %arg11[%c0_44, %c0_45, %c0_46] : memref<1x1x256xf32, #tpu.memory_space<vmem>>, vector<1x1x256xf32>
      %65 = vector.shape_cast %64 : vector<1x1x256xf32> to vector<1x256xf32>
      %66 = vector.broadcast %65 : vector<1x256xf32> to vector<16x256xf32>
      %67 = arith.addf %63, %66 : vector<16x256xf32>
      %cst_47 = arith.constant 0.000000e+00 : f32
      %68 = vector.broadcast %cst_47 : f32 to vector<16x256xf32>
      %69 = arith.cmpf oge, %67, %68 : vector<16x256xf32>
      %cst_48 = arith.constant 0.00999999977 : f32
      %70 = vector.broadcast %cst_48 : f32 to vector<16x256xf32>
      %71 = arith.mulf %70, %67 : vector<16x256xf32>
      %72 = arith.select %69, %67, %71 : vector<16x256xi1>, vector<16x256xf32>
      %73 = arith.truncf %72 : vector<16x256xf32> to vector<16x256xbf16>
      %c0_49 = arith.constant 0 : index
      %c0_50 = arith.constant 0 : index
      %c0_51 = arith.constant 0 : index
      %74 = vector.load %arg12[%c0_49, %c0_50, %c0_51] : memref<1x256x512xbf16, #tpu.memory_space<vmem>>, vector<1x256x512xbf16>
      %75 = vector.shape_cast %74 : vector<1x256x512xbf16> to vector<256x512xbf16>
      %cst_52 = arith.constant dense<0.000000e+00> : vector<16x512xf32>
      %76 = tpu.matmul %73, %75, %cst_52 {dimension_numbers = #tpu.dot_dimension_numbers<[1], [0], [0], [1], [0, 0, 1, 1], [], []>} : vector<16x256xbf16>, vector<256x512xbf16>, vector<16x512xf32> -> vector<16x512xf32>
      %c0_53 = arith.constant 0 : index
      %c0_54 = arith.constant 0 : index
      %c0_55 = arith.constant 0 : index
      %77 = vector.load %arg13[%c0_53, %c0_54, %c0_55] : memref<1x1x512xf32, #tpu.memory_space<vmem>>, vector<1x1x512xf32>
      %78 = vector.shape_cast %77 : vector<1x1x512xf32> to vector<1x512xf32>
      %79 = vector.broadcast %78 : vector<1x512xf32> to vector<16x512xf32>
      %80 = arith.addf %76, %79 : vector<16x512xf32>
      %81 = arith.negf %80 : vector<16x512xf32>
      %82 = math.exp %81 : vector<16x512xf32>
      %cst_56 = arith.constant 1.000000e+00 : f32
      %83 = vector.broadcast %cst_56 : f32 to vector<16x512xf32>
      %84 = arith.addf %83, %82 : vector<16x512xf32>
      %85 = arith.divf %83, %84 : vector<16x512xf32>
      %86 = arith.mulf %44, %85 : vector<16x512xf32>
      %87 = arith.truncf %86 : vector<16x512xf32> to vector<16x512xbf16>
      %c0_57 = arith.constant 0 : index
      %c0_58 = arith.constant 0 : index
      %c0_59 = arith.constant 0 : index
      %88 = vector.load %arg14[%c0_57, %c0_58, %c0_59] : memref<1x512x512xbf16, #tpu.memory_space<vmem>>, vector<1x512x512xbf16>
      %89 = vector.shape_cast %88 : vector<1x512x512xbf16> to vector<512x512xbf16>
      %cst_60 = arith.constant dense<0.000000e+00> : vector<16x512xf32>
      %90 = tpu.matmul %87, %89, %cst_60 {dimension_numbers = #tpu.dot_dimension_numbers<[1], [0], [0], [1], [0, 0, 1, 1], [], []>} : vector<16x512xbf16>, vector<512x512xbf16>, vector<16x512xf32> -> vector<16x512xf32>
      %c0_61 = arith.constant 0 : index
      %c0_62 = arith.constant 0 : index
      %c0_63 = arith.constant 0 : index
      %91 = vector.load %arg15[%c0_61, %c0_62, %c0_63] : memref<1x1x512xf32, #tpu.memory_space<vmem>>, vector<1x1x512xf32>
      %92 = vector.shape_cast %91 : vector<1x1x512xf32> to vector<1x512xf32>
      %93 = vector.broadcast %92 : vector<1x512xf32> to vector<16x512xf32>
      %94 = arith.addf %90, %93 : vector<16x512xf32>
      %cst_64 = arith.constant 0.000000e+00 : f32
      %95 = vector.broadcast %cst_64 : f32 to vector<16x512xf32>
      %96 = arith.cmpf oge, %94, %95 : vector<16x512xf32>
      %cst_65 = arith.constant 0.00999999977 : f32
      %97 = vector.broadcast %cst_65 : f32 to vector<16x512xf32>
      %98 = arith.mulf %97, %94 : vector<16x512xf32>
      %99 = arith.select %96, %94, %98 : vector<16x512xi1>, vector<16x512xf32>
      %100 = arith.mulf %45, %85 : vector<16x512xf32>
      %101 = arith.truncf %100 : vector<16x512xf32> to vector<16x512xbf16>
      %c0_66 = arith.constant 0 : index
      %c0_67 = arith.constant 0 : index
      %c0_68 = arith.constant 0 : index
      %102 = vector.load %arg14[%c0_66, %c0_67, %c0_68] : memref<1x512x512xbf16, #tpu.memory_space<vmem>>, vector<1x512x512xbf16>
      %103 = vector.shape_cast %102 : vector<1x512x512xbf16> to vector<512x512xbf16>
      %cst_69 = arith.constant dense<0.000000e+00> : vector<16x512xf32>
      %104 = tpu.matmul %101, %103, %cst_69 {dimension_numbers = #tpu.dot_dimension_numbers<[1], [0], [0], [1], [0, 0, 1, 1], [], []>} : vector<16x512xbf16>, vector<512x512xbf16>, vector<16x512xf32> -> vector<16x512xf32>
      %c0_70 = arith.constant 0 : index
      %c0_71 = arith.constant 0 : index
      %c0_72 = arith.constant 0 : index
      %105 = vector.load %arg15[%c0_70, %c0_71, %c0_72] : memref<1x1x512xf32, #tpu.memory_space<vmem>>, vector<1x1x512xf32>
      %106 = vector.shape_cast %105 : vector<1x1x512xf32> to vector<1x512xf32>
      %107 = vector.broadcast %106 : vector<1x512xf32> to vector<16x512xf32>
      %108 = arith.addf %104, %107 : vector<16x512xf32>
      %cst_73 = arith.constant 0.000000e+00 : f32
      %109 = vector.broadcast %cst_73 : f32 to vector<16x512xf32>
      %110 = arith.cmpf oge, %108, %109 : vector<16x512xf32>
      %cst_74 = arith.constant 0.00999999977 : f32
      %111 = vector.broadcast %cst_74 : f32 to vector<16x512xf32>
      %112 = arith.mulf %111, %108 : vector<16x512xf32>
      %113 = arith.select %110, %108, %112 : vector<16x512xi1>, vector<16x512xf32>
      %114 = arith.addf %99, %113 : vector<16x512xf32>
      %cst_75 = arith.constant 5.000000e-01 : f32
      %115 = vector.broadcast %cst_75 : f32 to vector<16x512xf32>
      %116 = arith.mulf %115, %114 : vector<16x512xf32>
      %117 = arith.truncf %116 : vector<16x512xf32> to vector<16x512xbf16>
      %c0_76 = arith.constant 0 : index
      %c0_77 = arith.constant 0 : index
      %c0_78 = arith.constant 0 : index
      %118 = vector.load %arg16[%c0_76, %c0_77, %c0_78] : memref<1x512x128xbf16, #tpu.memory_space<vmem>>, vector<1x512x128xbf16>
      %119 = vector.shape_cast %118 : vector<1x512x128xbf16> to vector<512x128xbf16>
      %cst_79 = arith.constant dense<0.000000e+00> : vector<16x128xf32>
      %120 = tpu.matmul %117, %119, %cst_79 {dimension_numbers = #tpu.dot_dimension_numbers<[1], [0], [0], [1], [0, 0, 1, 1], [], []>} : vector<16x512xbf16>, vector<512x128xbf16>, vector<16x128xf32> -> vector<16x128xf32>
      %c0_80 = arith.constant 0 : index
      %c0_81 = arith.constant 0 : index
      %c0_82 = arith.constant 0 : index
      %121 = vector.load %arg17[%c0_80, %c0_81, %c0_82] : memref<1x1x128xf32, #tpu.memory_space<vmem>>, vector<1x1x128xf32>
      %122 = vector.shape_cast %121 : vector<1x1x128xf32> to vector<1x128xf32>
      %123 = vector.broadcast %122 : vector<1x128xf32> to vector<16x128xf32>
      %124 = arith.addf %120, %123 : vector<16x128xf32>
      %c0_83 = arith.constant 0 : index
      %c0_84 = arith.constant 0 : index
      %c0_85 = arith.constant 0 : index
      %125 = vector.load %arg18[%c0_83, %c0_84, %c0_85] : memref<1x16x128xf32, #tpu.memory_space<vmem>>, vector<1x16x128xf32>
      %126 = vector.shape_cast %125 : vector<1x16x128xf32> to vector<16x128xf32>
      %127 = vector.shape_cast %124 : vector<16x128xf32> to vector<1x16x128xf32>
      tpu.vector_store %arg18[%c0_83, %c0_84, %c0_85], %127 {strides = array<i32>} : memref<1x16x128xf32, #tpu.memory_space<vmem>>, vector<1x16x128xf32>,
    } else {
    }
    return
  }
  func.func @transform_0(%arg0: i32, %arg1: i32) -> (i32, i32, i32, i32) {
    %c0_i32 = arith.constant 0 : i32
    %c0_i32_0 = arith.constant 0 : i32
    %c0_i32_1 = arith.constant 0 : i32
    return %arg0, %arg1, %c0_i32, %c0_i32_0 : i32, i32, i32, i32
  }
  func.func @transform_1(%arg0: i32, %arg1: i32) -> (i32, i32, i32) {
    %c0_i32 = arith.constant 0 : i32
    %c0_i32_0 = arith.constant 0 : i32
    %c0_i32_1 = arith.constant 0 : i32
    return %arg0, %c0_i32, %c0_i32_0 : i32, i32, i32
  }
  func.func @transform_2(%arg0: i32, %arg1: i32) -> (i32, i32, i32) {
    %c0_i32 = arith.constant 0 : i32
    %c0_i32_0 = arith.constant 0 : i32
    %c0_i32_1 = arith.constant 0 : i32
    return %arg0, %c0_i32, %c0_i32_0 : i32, i32, i32
  }
  func.func @transform_3(%arg0: i32, %arg1: i32) -> (i32, i32, i32) {
    %c0_i32 = arith.constant 0 : i32
    %c0_i32_0 = arith.constant 0 : i32
    %c0_i32_1 = arith.constant 0 : i32
    return %arg0, %c0_i32, %c0_i32_0 : i32, i32, i32
  }
  func.func @transform_4(%arg0: i32, %arg1: i32) -> (i32, i32, i32) {
    %c0_i32 = arith.constant 0 : i32
    %c0_i32_0 = arith.constant 0 : i32
    %c0_i32_1 = arith.constant 0 : i32
    return %arg0, %c0_i32, %c0_i32_0 : i32, i32, i32
  }
  func.func @transform_5(%arg0: i32, %arg1: i32) -> (i32, i32, i32) {
    %c0_i32 = arith.constant 0 : i32
    %c0_i32_0 = arith.constant 0 : i32
    %c0_i32_1 = arith.constant 0 : i32
    return %arg0, %c0_i32, %c0_i32_0 : i32, i32, i32
  }
  func.func @transform_6(%arg0: i32, %arg1: i32) -> (i32, i32, i32) {
    %c0_i32 = arith.constant 0 : i32
    %c0_i32_0 = arith.constant 0 : i32
    %c0_i32_1 = arith.constant 0 : i32
    return %arg0, %c0_i32, %c0_i32_0 : i32, i32, i32
  }
  func.func @transform_7(%arg0: i32, %arg1: i32) -> (i32, i32, i32) {
    %c0_i32 = arith.constant 0 : i32
    %c0_i32_0 = arith.constant 0 : i32
    %c0_i32_1 = arith.constant 0 : i32
    return %arg0, %c0_i32, %c0_i32_0 : i32, i32, i32
  }
  func.func @transform_8(%arg0: i32, %arg1: i32) -> (i32, i32, i32) {
    %c0_i32 = arith.constant 0 : i32
    %c0_i32_0 = arith.constant 0 : i32
    %c0_i32_1 = arith.constant 0 : i32
    return %arg0, %c0_i32, %c0_i32_0 : i32, i32, i32
  }
  func.func @transform_9(%arg0: i32, %arg1: i32) -> (i32, i32, i32) {
    %c0_i32 = arith.constant 0 : i32
    %c0_i32_0 = arith.constant 0 : i32
    %c0_i32_1 = arith.constant 0 : i32
    return %arg0, %c0_i32, %c0_i32_0 : i32, i32, i32
  }
  func.func @transform_10(%arg0: i32, %arg1: i32) -> (i32, i32, i32) {
    %c0_i32 = arith.constant 0 : i32
    %c0_i32_0 = arith.constant 0 : i32
    %c0_i32_1 = arith.constant 0 : i32
    return %arg0, %c0_i32, %c0_i32_0 : i32, i32, i32
  }
  func.func @transform_11(%arg0: i32, %arg1: i32) -> (i32, i32, i32) {
    %c0_i32 = arith.constant 0 : i32
    %c0_i32_0 = arith.constant 0 : i32
    %c0_i32_1 = arith.constant 0 : i32
    return %arg0, %c0_i32, %c0_i32_0 : i32, i32, i32
  }
  func.func @transform_12(%arg0: i32, %arg1: i32) -> (i32, i32, i32) {
    %c0_i32 = arith.constant 0 : i32
    %c0_i32_0 = arith.constant 0 : i32
    %c0_i32_1 = arith.constant 0 : i32
    return %arg0, %c0_i32, %c0_i32_0 : i32, i32, i32
  }
  func.func @transform_13(%arg0: i32, %arg1: i32) -> (i32, i32, i32) {
    %c0_i32 = arith.constant 0 : i32
    %c0_i32_0 = arith.constant 0 : i32
    %c0_i32_1 = arith.constant 0 : i32
    return %arg0, %c0_i32, %c0_i32_0 : i32, i32, i32
  }
  func.func @transform_14(%arg0: i32, %arg1: i32) -> (i32, i32, i32) {
    %c0_i32 = arith.constant 0 : i32
    %c0_i32_0 = arith.constant 0 : i32
    %c0_i32_1 = arith.constant 0 : i32
    return %arg0, %c0_i32, %c0_i32_0 : i32, i32, i32
  }
  func.func @transform_15(%arg0: i32, %arg1: i32) -> (i32, i32, i32) {
    %c0_i32 = arith.constant 0 : i32
    %c0_i32_0 = arith.constant 0 : i32
    %c0_i32_1 = arith.constant 0 : i32
    return %arg0, %c0_i32, %c0_i32_0 : i32, i32, i32
  }
  func.func @transform_16(%arg0: i32, %arg1: i32) -> (i32, i32, i32) {
    %c0_i32 = arith.constant 0 : i32
    %c0_i32_0 = arith.constant 0 : i32
    %c0_i32_1 = arith.constant 0 : i32
    return %arg0, %c0_i32, %c0_i32_0 : i32, i32, i32
  }
}

</mosaic_0001>

<bundles_post_ra>
// kernel: squeeze.3
= control target key start
LH: loop header
LB: loop body
LE: loop exit
PB: predicated region body
PF: predicated region fallthrough
CT: control target
= control target key end

     0   :  { %s7_s6 = smov 3  ;;  %s21_s9 = smov 3  ;;  %vm4_vm0 = vcmask 23552   ;;  %vm11_vm1 = vcmask 121952   ;;  %vm18_vm2 = vcmask 97352   ;;  %vm25_vm3 = vcmask 72752   ;;  %s80_s0 = inlined_call_operand.vmem [shape: f32[1,10,3], index: 0, kind: input, shape index: {}]   ;;  %s81_s1 = inlined_call_operand.vmem [shape: f32[2,15], index: 1, kind: output, shape index: {}]  }
   0x1   :  { %v40_v0 = vld [vmem:[%s80_s0 + $0x4] ss:$5 sm:%s7_s6]   ;;  %s48_s10 = smov 12   ;;  %s14_s13 = smov 3  ;;  %vm32_vm4 = vcmask 48152  }
   0x2   :  { %9 = vrot.lane.b32.xlu0 %v40_v0, %s48_s10  ;;  %v42_v1 = vld [vmem:[%s80_s0 + $0x2] ss:$5 sm:%s21_s9]   ;;  %s49_s14 = smov 6   ;;  %s28_s17 = smov 3 }
   0x3   :  { %23 = vrot.lane.b32.xlu1 %v42_v1, %s49_s14  ;;  %v41_v2 = vld [vmem:[%s80_s0 + $0x3] ss:$5 sm:%s14_s13]   ;;  %s2_s20 = smov 3  ;;  %s51_s23 = smov 3  }
   0x4   :  { %v43_v3 = vld [vmem:[%s80_s0 + $0x1] ss:$5 sm:%s28_s17]   ;;  %v3_v4 = vld [vmem:[%s80_s0] ss:$5 sm:%s2_s20]   ;;  %s50_s0 = smov 9  }
   0x5   :  { %5 = vst.msk [vmem:[#allocation0] sm:$0x3] %vm4_vm0, %v3_v4  }
   0x6   :  { %16 = vrot.lane.b32.xlu0 %v41_v2, %s50_s0 }
   0x7   :  { %30 = vrot.lane.b32.xlu1 %v43_v3, %s51_s23 }
  0x74   :  { %v10_v5 = vpop.permute.xlu0 %9  }
  0x75   :  { %12 = vst.msk [vmem:[#allocation0] sm:$0x3] %vm11_vm1, %v10_v5   ;;  %v24_v6 = vpop.permute.xlu1 %23  }
  0x78   :  { %v17_v7 = vpop.permute.xlu0 %16  }
  0x79   :  { %19 = vst.msk [vmem:[#allocation0] sm:$0x3] %vm18_vm2, %v17_v7   ;;  %v31_v8 = vpop.permute.xlu1 %30  }
  0x7a   :  { %26 = vst.msk [vmem:[#allocation0] sm:$0x3] %vm25_vm3, %v24_v6  }
  0x7b   :  { %33 = vst.msk [vmem:[#allocation0] sm:$0x3] %vm32_vm4, %v31_v8  }
  0x82   :  { %v37_v9 = vld [vmem:[#allocation0] sm:$0x3] }
  0x83   :  { %39 = vst [vmem:[%s81_s1] sm:$0x3] %v37_v9 }

// kernel: squeeze.4
= control target key start
LH: loop header
LB: loop body
LE: loop exit
PB: predicated region body
PF: predicated region fallthrough
CT: control target
= control target key end

     0   :  { %vm7_vm0 = vcmask 39936   ;;  %s59_s0 = inlined_call_operand.vmem [shape: f32[1,10,3], index: 0, kind: input, shape index: {}]   ;;  %s60_s1 = inlined_call_operand.vmem [shape: f32[2,5,3], index: 1, kind: output, shape index: {}]  }
   0x1   :  { %v4_v0 = vld [vmem:[%s59_s0] sm:$0xf]  ;;  %s36_s0 = smov 123  }
   0x2   :  { %5 = vst [vmem:[#allocation1] sm:$0xf] %v4_v0 }
   0x9   :  { %v9_v1 = vld [vmem:[#allocation1] sm:$0x7]  }
   0xa   :  { %v6_v2 = vld [vmem:[#allocation1] sm:$0x7]   ;;  %10 = vrot.lane.b32.xlu0 %v9_v1, %s36_s0 }
   0xb   :  { %8 = vst.msk [vmem:[#allocation0] ss:$8 sm:$0x7] %vm7_vm0, %v6_v2  }
  0x7c   :  { %v11_v3 = vpop.permute.xlu0 %10  }
  0x7d   :  { %14 = vst.msk [vmem:[#allocation0 + $0x1] ss:$8 sm:$0x7] %vm7_vm0, %v11_v3  }
  0x84   :  { %v18_v4 = vld [vmem:[#allocation0] sm:$0x3]  ;;  %v22_v5 = vld [vmem:[#allocation0 + $0x8] sm:$0x3]  ;;  %v27_v6 = vld [vmem:[#allocation0 + $0x10] sm:$0x3] }
  0x85   :  { %20 = vst [vmem:[%s60_s1] sm:$0x3] %v18_v4  ;;  %33 = vst [vmem:[%s60_s1 + $0x2] sm:$0x3] %v22_v5 }
  0x86   :  { %34 = vst [vmem:[%s60_s1 + $0x4] sm:$0x3] %v27_v6 }

// kernel: sag_model_t1_t2_forward.1
= control target key start
LH: loop header
LB: loop body
LE: loop exit
PB: predicated region body
PF: predicated region fallthrough
CT: control target
= control target key end

     0   :  { %s5251_s21 = smov 0   ;;  %s5253_s22 = smov 0   ;;  %s6382_s0 = inlined_call_operand.vmem [shape: bf16[3,4,16,192], index: 0, kind: input, shape index: {}]   ;;  %s6383_s1 = inlined_call_operand.vmem [shape: bf16[3,16,64], index: 1, kind: input, shape index: {}]   ;;  %s6384_s2 = inlined_call_operand.vmem [shape: bf16[3,192,256], index: 2, kind: input, shape index: {}]   ;;  %s6385_s3 = inlined_call_operand.vmem [shape: f32[3,1,256], index: 3, kind: input, shape index: {}]   ;;  %s6386_s4 = inlined_call_operand.vmem [shape: bf16[3,64,1024], index: 4, kind: input, shape index: {}]   ;;  %s6387_s5 = inlined_call_operand.vmem [shape: f32[3,1,1024], index: 5, kind: input, shape index: {}]   ;;  %s6388_s6 = inlined_call_operand.vmem [shape: bf16[3,64,128], index: 6, kind: input, shape index: {}]   ;;  %s6389_s7 = inlined_call_operand.vmem [shape: f32[3,1,128], index: 7, kind: input, shape index: {}]   ;;  %s6390_s8 = inlined_call_operand.vmem [shape: bf16[3,128,256], index: 8, kind: input, shape index: {}]   ;;  %s6391_s9 = inlined_call_operand.vmem [shape: f32[3,1,256], index: 9, kind: input, shape index: {}]   ;;  %s6392_s10 = inlined_call_operand.vmem [shape: bf16[3,256,512], index: 10, kind: input, shape index: {}]   ;;  %s6393_s11 = inlined_call_operand.vmem [shape: f32[3,1,512], index: 11, kind: input, shape index: {}]   ;;  %s6394_s12 = inlined_call_operand.vmem [shape: bf16[3,512,512], index: 12, kind: input, shape index: {}]   ;;  %s6395_s13 = inlined_call_operand.vmem [shape: f32[3,1,512], index: 13, kind: input, shape index: {}]   ;;  %s6396_s14 = inlined_call_operand.vmem [shape: bf16[3,512,128], index: 14, kind: input, shape index: {}]   ;;  %s6397_s15 = inlined_call_operand.vmem [shape: f32[3,1,128], index: 15, kind: input, shape index: {}]   ;;  %s6398_s16 = inlined_call_operand.vmem [shape: f32[3,16,128], index: 16, kind: output, shape index: {}]  }
   0x1   :  { %6477 = sst [smem:[#allocation86_spill]] %s6382_s0  ;;  %s5255_s23 = smov 0  }
   0x2   :  { %6478 = sst [smem:[#allocation87_spill]] %s6383_s1  ;;  %s5257_s24 = smov 0  }
   0x3   :  { %6479 = sst [smem:[#allocation88_spill]] %s6384_s2  ;;  %s5259_s25 = smov 0  }
   0x4   :  { %6480 = sst [smem:[#allocation89_spill]] %s6385_s3 }
   0x5   :  { %6481 = sst [smem:[#allocation90_spill]] %s6386_s4 }
   0x6   :  { %6482 = sst [smem:[#allocation91_spill]] %s6387_s5 }
   0x7   :  { %6483 = sst [smem:[#allocation92_spill]] %s6388_s6 }
   0x8   :  { %6484 = sst [smem:[#allocation93_spill]] %s6390_s8 }
   0x9   :  { %6485 = sst [smem:[#allocation94_spill]] %s6391_s9 }
   0xa   :  { %6486 = sst [smem:[#allocation95_spill]] %s6392_s10 }
   0xb   :  { %6487 = sst [smem:[#allocation96_spill]] %s6393_s11 }
   0xc   :  { %6488 = sst [smem:[#allocation97_spill]] %s6396_s14 }
   0xd   :  { %6489 = sst [smem:[#allocation98_spill]] %s6397_s15 }
   0xe   :  { %6490 = sst [smem:[#allocation99_spill]] %s6398_s16 }
   0xf LB: > { %6491 = sst [smem:[#allocation3_spill]] %s5143_s21  ;;  %s35_s26 = sadd.s32 1, %s5151_s23  ;;  %s5159_s25 = sphi %s5259_s25, %s26_s25   ;;  %s5155_s24 = sphi %s5257_s24, %s6674_s24   ;;  %s5151_s23 = sphi %s5255_s23, %s6673_s23   ;;  %s5147_s22 = sphi %s5253_s22, %s6672_s22   ;;  %s5143_s21 = sphi %s5251_s21, %s6671_s21  }
  0x10   : > { %6492 = sst [smem:[#allocation4_spill]] %s5151_s23  ;;  %s38_s27 = sadd.s32 1, %s5155_s24 }
  0x11   : > { %6493 = sst [smem:[#allocation5_spill]] %s5155_s24  ;;  %p36_p0 = scmp.ge.s32.totalorder %s35_s26, 2 }
  0x12   : > { %6494 = sst [smem:[#allocation6_spill]] %s5159_s25  ;;  %p4174_p1 = scmp.ge.s32.totalorder %s5159_s25, 1 }
  0x13   : > { %p623_p2 = scmp.lt.s32.totalorder %s5159_s25, 7  ;;  %s6676_s26 = smov (%p36_p0, %s35_s26), 0 }
  0x14   : > { %6495 = sst [smem:[#allocation7_spill]] %s6676_s26  ;;  %s6678_s27 = smov (!%p36_p0, %s38_s27), %s5155_s24 }
  0x15   : > { %p624_p3 = pnand %p4174_p1, %p623_p2  ;;  %p40_p4 = scmp.ge.s32.totalorder %s6678_s27, 3 }
  0x17   : > { %s6680_s27 = smov (%p40_p4, %s6678_s27), 0  ;;  %627 = sbr.rel (%p624_p3) target bundleno = 1861 (0x745), region = 84 }
  0x18   : > { %6496 = sst [smem:[#allocation8_spill]] %s6680_s27 }
  0x1e   : > { %s4175_s28 = sshll.u32 %s5143_s21, 1  ;;  %p745_p5 = scmp.lt.s32.totalorder %s5147_s22, 2 }
  0x1f   : > { %p747_p6 = scmp.lt.s32.totalorder %s4175_s28, 3  ;;  %s6497_s1 = sld [smem:[#allocation87_spill]] }
  0x20   : > { %s6682_s22 = smov (!%p745_p5, %s5147_s22), 2  ;;  %s6499_s21 = sld [smem:[#allocation86_spill]] }
  0x21   : > { %s6684_s28 = smov (!%p747_p6, %s4175_s28), 3  ;;  %s6403_s29 = sshll.u32 %s6682_s22, 4 }
  0x22   : > { %s4527_s30 = sshll.u32 %s6682_s22, 3  ;;  %s4176_s0 = sshll.u32 %s6684_s28, 2 }
  0x23   : > { %s751_s20 = sadd.s32 %s6403_s29, %s4176_s0  ;;  %s4652_s27 = smul.u32 192, %s6682_s22 }
  0x24   : > { %s4178_s26 = sshll.u32 %s751_s20, 2  ;;  %s4182_s24 = sshll.u32 %s6682_s22, 1 }
  0x25   : > { %s5291_s19 = scalar_lea.vmem %s6497_s1, %s4527_s30  ;;  %s6500_s2 = sld [smem:[#allocation88_spill]] }
  0x26   : > { %6498 = sst [smem:[#allocation9_spill]] %s5291_s19  ;;  %s5300_s16 = scalar_lea.vmem %s6499_s21, %s4178_s26 }
  0x27   : > { %s6501_s3 = sld [smem:[#allocation89_spill]]  ;;  %s4528_s29 = sshll.u32 %s6682_s22, 8 }
  0x28   : > { %s6502_s4 = sld [smem:[#allocation90_spill]]  ;;  %s6503_s5 = sld [smem:[#allocation91_spill]] }
  0x29   : > { %s4529_s14 = sshll.u32 %s6682_s22, 5  ;;  %s6505_s6 = sld [smem:[#allocation92_spill]] }
  0x2a   : > { %s4530_s1 = sshll.u32 %s6682_s22, 7  ;;  %s6506_s8 = sld [smem:[#allocation93_spill]] }
  0x2b   : > { %s5305_s28 = scalar_lea.vmem %s6500_s2, %s4652_s27  ;;  %s6507_s9 = sld [smem:[#allocation94_spill]] }
  0x2c   : > { %s6509_s10 = sld [smem:[#allocation95_spill]]  ;;  %s6510_s11 = sld [smem:[#allocation96_spill]] }
  0x2d   : > { %s5310_s0 = scalar_lea.vmem %s6501_s3, %s4182_s24  ;;  %s4532_s3 = sshll.u32 %s6682_s22, 10 }
  0x2e   : > { %s5316_s19 = scalar_lea.vmem %s6502_s4, %s4528_s29  ;;  %s5321_s25 = scalar_lea.vmem %s6503_s5, %s4527_s30 }
  0x2f   : > { %6504 = sst [smem:[#allocation10_spill]] %s5321_s25  ;;  %s5331_s2 = scalar_lea.vmem %s6505_s6, %s4529_s14 }
  0x30   : > { %s5337_s4 = scalar_lea.vmem %s6506_s8, %s4530_s1  ;;  %s4531_s5 = sshll.u32 %s6682_s22, 9 }
  0x31   : > { %s5342_s21 = scalar_lea.vmem %s6507_s9, %s4182_s24  ;;  %s4193_s25 = sshll.u32 %s6682_s22, 2 }
  0x32   : > { %6508 = sst [smem:[#allocation11_spill]] %s5342_s21  ;;  %s5349_s27 = scalar_lea.vmem %s6509_s10, %s4531_s5 }
  0x33   : > { %s5354_s18 = scalar_lea.vmem %s6510_s11, %s4193_s25  ;;  %s5360_s6 = scalar_lea.vmem %s6395_s13, %s4193_s25 }
  0x34   : > { %6511 = sst [smem:[#allocation12_spill]] %s5354_s18  ;;  %s5365_s30 = scalar_lea.vmem %s6394_s12, %s4532_s3 }
  0x35   : > { %s6512_s5 = sld [smem:[#allocation97_spill]]  ;;  %s6513_s17 = sld [smem:[#allocation98_spill]] }
  0x36   : > { %s6514_s11 = sshll.u32 %s6682_s22, 4  ;;  %s6515_s1 = sld [smem:[#allocation99_spill]] }
  0x37   : > { %s6516_s20 = sld [smem:[#allocation3_spill]] }
  0x3b   : > { %s5370_s26 = scalar_lea.vmem %s6512_s5, %s4528_s29  ;;  %s820_s10 = scalar_lea.vmem %s6513_s17, %s6682_s22 }
  0x3c   : > { %s5381_s25 = scalar_lea.vmem %s6515_s1, %s6514_s11 }
  0x3d   : > { %p4201_p7 = scmp.ne.s32.totalorder %s6516_s20, 0 }
  0x3e   : > { %vm831_vm0 = vcmask (!%p4201_p7), 523264   ;;  %v5161_v0 = vmov (!%p4201_p7), 0.0  }
  0x3f   : > { %830 = sbr.rel (%p4201_p7) target bundleno = 70 (0x46), region = 88  ;;  %832 = vst.msk [vmem:[#allocation2] sm:$0xff] (!%p4201_p7), %vm831_vm0, %v5161_v0  ;;  %833 = vst.msk [vmem:[#allocation2 + $0x8] sm:$0xff] (!%p4201_p7), %vm831_vm0, %v5161_v0 }
  0x46 PF: > { %v4698_v1 = vld [vmem:[%s5305_s28 + $0x4] ss:$8 sps:$4 sm:$0xff]   ;;  %v4700_v2 = vld [vmem:[%s5305_s28] ss:$8 sps:$4 sm:$0xff]   ;;  %v4701_v3 = vld [vmem:[%s5305_s28 + $0x14] ss:$8 sps:$4 sm:$0xff]   ;;  %v864_v29 = vlaneseq }
  0x47   : > { %1019 = vmatprep.subr.bf16.mxu0 %v4698_v1  ;;  %4596 = vmatprep.subr.bf16.mxu1 %v4698_v1  ;;  %v4703_v4 = vld [vmem:[%s5305_s28 + $0x10] ss:$8 sps:$4 sm:$0xff]   ;;  %v4704_v5 = vld [vmem:[%s5305_s28 + $0x24] ss:$8 sps:$4 sm:$0xff]   ;;  %v4706_v6 = vld [vmem:[%s5305_s28 + $0x20] ss:$8 sps:$4 sm:$0xff]  }
  0x48   : > { %1020 = vmatpush1.bf16.msra.mxu0 %v4700_v2  ;;  %4608 = vmatpush1.bf16.msra.mxu1 %v4700_v2  ;;  %v4707_v7 = vld [vmem:[%s5305_s28 + $0x34] ss:$8 sps:$4 sm:$0xff]   ;;  %v4709_v8 = vld [vmem:[%s5305_s28 + $0x30] ss:$8 sps:$4 sm:$0xff]   ;;  %v4710_v9 = vld [vmem:[%s5305_s28 + $0x44] ss:$8 sps:$4 sm:$0xff]  }
  0x49   : > { %1021 = vmatprep.subr.bf16.mxu0 %v4701_v3  ;;  %4597 = vmatprep.subr.bf16.mxu1 %v4701_v3  ;;  %v4712_v10 = vld [vmem:[%s5305_s28 + $0x40] ss:$8 sps:$4 sm:$0xff]   ;;  %v4713_v11 = vld [vmem:[%s5305_s28 + $0x54] ss:$8 sps:$4 sm:$0xff]   ;;  %v4736_v12 = vld [vmem:[%s5300_s16 + $0x4] ss:$8 sps:$4 sm:$0xff]  }
  0x4a   : > { %vm1012_vm1 = vcmask 523264   ;;  %v4739_v13 = vld [vmem:[%s5300_s16 + $0x14] ss:$8 sps:$4 sm:$0xff]   ;;  %v4715_v14 = vld [vmem:[%s5305_s28 + $0x50] ss:$8 sps:$4 sm:$0xff]   ;;  %v5414_v30 = vshrl.u32 %v864_v29, 7 }
  0x4b   : > { %v4716_v15 = vld [vmem:[%s5305_s28 + $0x64] ss:$8 sps:$4 sm:$0xff]   ;;  %4230 = vmatprep.mubr.msk.bf16.mxu0 %vm1012_vm1, %v4736_v12  ;;  %4231 = vmatprep.mubr.msk.bf16.mxu1 %vm1012_vm1, %v4739_v13  ;;  %v4718_v16 = vld [vmem:[%s5305_s28 + $0x60] ss:$8 sps:$4 sm:$0xff]   ;;  %v4719_v17 = vld [vmem:[%s5305_s28 + $0x74] ss:$8 sps:$4 sm:$0xff]  }
  0x4c   : > { %1022 = vmatpush1.bf16.msra.mxu0 %v4703_v4  ;;  %4609 = vmatpush1.bf16.msra.mxu1 %v4703_v4  ;;  %v4721_v18 = vld [vmem:[%s5305_s28 + $0x70] ss:$8 sps:$4 sm:$0xff]   ;;  %v4722_v19 = vld [vmem:[%s5305_s28 + $0x84] ss:$8 sps:$4 sm:$0xff]   ;;  %v4724_v20 = vld [vmem:[%s5305_s28 + $0x80] ss:$8 sps:$4 sm:$0xff]  }
  0x4d   : > { %1023 = vmatprep.subr.bf16.mxu0 %v4704_v5  ;;  %4598 = vmatprep.subr.bf16.mxu1 %v4704_v5  ;;  %v4725_v21 = vld [vmem:[%s5305_s28 + $0x94] ss:$8 sps:$4 sm:$0xff]   ;;  %v4727_v22 = vld [vmem:[%s5305_s28 + $0x90] ss:$8 sps:$4 sm:$0xff]   ;;  %v4728_v23 = vld [vmem:[%s5305_s28 + $0xa4] ss:$8 sps:$4 sm:$0xff]  }
  0x4e   : > { %v4730_v24 = vld [vmem:[%s5305_s28 + $0xa0] ss:$8 sps:$4 sm:$0xff]   ;;  %v4731_v25 = vld [vmem:[%s5305_s28 + $0xb4] ss:$8 sps:$4 sm:$0xff]   ;;  %v4733_v26 = vld [vmem:[%s5305_s28 + $0xb0] ss:$8 sps:$4 sm:$0xff]  }
  0x4f   : > { %v4734_v27 = vld [vmem:[%s5300_s16] ss:$8 sps:$4 sm:$0xff]   ;;  %v4737_v28 = vld [vmem:[%s5300_s16 + $0x10] ss:$8 sps:$4 sm:$0xff]   ;;  %v5417_v31 = vsub.s32 0, %v5414_v30  ;;  %v5421_v33 = vsub.s32 1, %v5414_v30 }
  0x50   : > { %1024 = vmatpush1.bf16.msra.mxu0 %v4706_v6  ;;  %4610 = vmatpush1.bf16.msra.mxu1 %v4706_v6  ;;  %v862_v32 = vld [vmem:[%s5310_s0] sm:$0x3]  ;;  %s5162_s8 = smov 64   ;;  %s6519_s9 = sld [smem:[#allocation3_spill]] }
  0x51   : > { %1025 = vmatprep.subr.bf16.mxu0 %v4707_v7  ;;  %4599 = vmatprep.subr.bf16.mxu1 %v4707_v7  ;;  %6517 = vst [vmem:[#allocation13_spill] sm:$0xff] %v5417_v31  ;;  %6518 = vst [vmem:[#allocation14_spill] sm:$0xff] %v5421_v33  ;;  %v867_v34 = vrot.slane %v862_v32, %v5417_v31  ;;  %v871_v35 = vrot.slane %v862_v32, %v5421_v33  ;;  %v1122_v12 = vld [vmem:[#allocation2] sm:$0xff] }
  0x54   : > { %1026 = vmatpush1.bf16.msra.mxu0 %v4709_v8  ;;  %4611 = vmatpush1.bf16.msra.mxu1 %v4709_v8 }
  0x55   : > { %1027 = vmatprep.subr.bf16.mxu0 %v4710_v9  ;;  %4600 = vmatprep.subr.bf16.mxu1 %v4710_v9 }
  0x56   : > { %p4232_p8 = scmp.ne.s32.totalorder %s6519_s9, 1 }
  0x58   : > { %1028 = vmatpush1.bf16.msra.mxu0 %v4712_v10  ;;  %4612 = vmatpush1.bf16.msra.mxu1 %v4712_v10 }
  0x59   : > { %1029 = vmatprep.subr.bf16.mxu0 %v4713_v11  ;;  %4601 = vmatprep.subr.bf16.mxu1 %v4713_v11 }
  0x5c   : > { %1030 = vmatpush1.bf16.msra.mxu0 %v4715_v14  ;;  %4613 = vmatpush1.bf16.msra.mxu1 %v4715_v14 }
  0x5d   : > { %1031 = vmatprep.subr.bf16.mxu0 %v4716_v15  ;;  %4602 = vmatprep.subr.bf16.mxu1 %v4716_v15 }
  0x60   : > { %1032 = vmatpush1.bf16.msra.mxu0 %v4718_v16  ;;  %4614 = vmatpush1.bf16.msra.mxu1 %v4718_v16 }
  0x61   : > { %1033 = vmatprep.subr.bf16.mxu0 %v4719_v17  ;;  %4603 = vmatprep.subr.bf16.mxu1 %v4719_v17 }
  0x64   : > { %1034 = vmatpush1.bf16.msra.mxu0 %v4721_v18  ;;  %4615 = vmatpush1.bf16.msra.mxu1 %v4721_v18  ;;  %v1123_v18 = vld [vmem:[#allocation2 + $0x8] sm:$0xff] }
  0x65   : > { %1035 = vmatprep.subr.bf16.mxu0 %v4722_v19  ;;  %4604 = vmatprep.subr.bf16.mxu1 %v4722_v19 }
  0x68   : > { %1036 = vmatpush1.bf16.msra.mxu0 %v4724_v20  ;;  %4616 = vmatpush1.bf16.msra.mxu1 %v4724_v20 }
  0x69   : > { %1037 = vmatprep.subr.bf16.mxu0 %v4725_v21  ;;  %4605 = vmatprep.subr.bf16.mxu1 %v4725_v21 }
  0x6c   : > { %1038 = vmatpush1.bf16.msra.mxu0 %v4727_v22  ;;  %4617 = vmatpush1.bf16.msra.mxu1 %v4727_v22 }
  0x6d   : > { %1039 = vmatprep.subr.bf16.mxu0 %v4728_v23  ;;  %4606 = vmatprep.subr.bf16.mxu1 %v4728_v23 }
  0x70   : > { %1040 = vmatpush1.bf16.msra.mxu0 %v4730_v24  ;;  %4618 = vmatpush1.bf16.msra.mxu1 %v4730_v24 }
  0x71   : > { %1041 = vmatprep.subr.bf16.mxu0 %v4731_v25  ;;  %4607 = vmatprep.subr.bf16.mxu1 %v4731_v25 }
  0x74   : > { %1042 = vmatpush1.bf16.msra.mxu0 %v4733_v26  ;;  %4619 = vmatpush1.bf16.msra.mxu1 %v4733_v26 }
  0x77   : > { %1052 = vmatmul.mubr.bf16.vlgmr.msra.gmra.mrb[0].mxu0 %v4734_v27  ;;  %1062 = vmatmul.mubr.bf16.vlgmr.msra.gmra.mrb[0].mxu1 %v4737_v28 }
 0x14a   : > { %v1053_v36 = vpop.f32.mrb[0].mxu0  ;;  %v1063_v37 = vpop.f32.mrb[0].mxu1 }
 0x14b   : > { %v1054_v38 = vadd.f32 %v1053_v36, %v867_v34  ;;  %v1064_v39 = vadd.f32 %v1063_v37, %v867_v34  ;;  %v1055_v40 = vpop.f32.mrb[1].mxu0  ;;  %v1065_v41 = vpop.f32.mrb[1].mxu1 }
 0x14c   : > { %v1056_v42 = vadd.f32 %v1055_v40, %v871_v35  ;;  %v1066_v43 = vadd.f32 %v1065_v41, %v871_v35  ;;  %v1057_v44 = vpop.f32.mrb[2].mxu0  ;;  %v1067_v45 = vpop.f32.mrb[2].mxu1 }
 0x14d   : > { %v1080_v46 = vmul.f32 0.01, %v1054_v38  ;;  %v1084_v47 = vmul.f32 0.01, %v1064_v39  ;;  %v1058_v48 = vadd.f32 %v1057_v44, %v867_v34  ;;  %v1068_v49 = vadd.f32 %v1067_v45, %v867_v34  ;;  %v1059_v50 = vpop.f32.mrb[3].mxu0  ;;  %v1069_v51 = vpop.f32.mrb[3].mxu1 }
 0x14e   : > { %v1081_v52 = vmul.f32 0.01, %v1056_v42  ;;  %v1085_v53 = vmul.f32 0.01, %v1066_v43  ;;  %v1060_v54 = vadd.f32 %v1059_v50, %v871_v35  ;;  %v1070_v55 = vadd.f32 %v1069_v51, %v871_v35 }
 0x14f   : > { %vm1074_vm2 = vcmp.ge.f32.partialorder %v1058_v48, 0.0  ;;  %v1082_v56 = vmul.f32 0.01, %v1058_v48  ;;  %vm1078_vm3 = vcmp.ge.f32.partialorder %v1068_v49, 0.0  ;;  %v1086_v57 = vmul.f32 0.01, %v1068_v49 }
 0x150   : > { %vm1075_vm4 = vcmp.ge.f32.partialorder %v1060_v54, 0.0  ;;  %v1083_v58 = vmul.f32 0.01, %v1060_v54  ;;  %vm1079_vm5 = vcmp.ge.f32.partialorder %v1070_v55, 0.0  ;;  %v1087_v59 = vmul.f32 0.01, %v1070_v55 }
 0x151   : > { %vm1072_vm6 = vcmp.ge.f32.partialorder %v1054_v38, 0.0  ;;  %vm1076_vm7 = vcmp.ge.f32.partialorder %v1064_v39, 0.0  ;;  %vm1073_vm8 = vcmp.ge.f32.partialorder %v1056_v42, 0.0  ;;  %vm1077_vm9 = vcmp.ge.f32.partialorder %v1066_v43, 0.0 }
 0x152   : > { %v1088_v60 = vsel %vm1072_vm6, %v1054_v38, %v1080_v46  ;;  %v1092_v61 = vsel %vm1076_vm7, %v1064_v39, %v1084_v47  ;;  %v1089_v62 = vsel %vm1073_vm8, %v1056_v42, %v1081_v52  ;;  %v1093_v63 = vsel %vm1077_vm9, %v1066_v43, %v1085_v53 }
 0x153   : > { %v1096_v0 = vadd.f32 %v1092_v61, %v1088_v60  ;;  %v1097_v1 = vadd.f32 %v1093_v63, %v1089_v62  ;;  %v1090_v2 = vsel %vm1074_vm2, %v1058_v48, %v1082_v56  ;;  %v1094_v3 = vsel %vm1078_vm3, %v1068_v49, %v1086_v57 }
 0x154   : > { %v1098_v4 = vadd.f32 %v1094_v3, %v1090_v2  ;;  %v1091_v5 = vsel %vm1075_vm4, %v1060_v54, %v1083_v58  ;;  %v1095_v6 = vsel %vm1079_vm5, %v1070_v55, %v1087_v59 }
 0x155   : > { %1102 = vrot.lane.b32.xlu0 %v1096_v0, %s5162_s8  ;;  %1114 = vrot.lane.b32.xlu1 %v1097_v1, %s5162_s8  ;;  %v1099_v7 = vadd.f32 %v1095_v6, %v1091_v5 }
 0x159   : > { %1104 = vrot.lane.b32.xlu0 %v1098_v4, %s5162_s8  ;;  %1116 = vrot.lane.b32.xlu1 %v1099_v7, %s5162_s8 }
 0x1c7   : > { %v1103_v8 = vpop.permute.xlu0 %1102  ;;  %v1115_v10 = vpop.permute.xlu1 %1114 }
 0x1c8   : > { %v1108_v9 = vadd.f32 %v1103_v8, %v1096_v0 }
 0x1ca   : > { %v1110_v11 = vadd.f32 %v1108_v9, %v1097_v1 }
 0x1cb   : > { %v1105_v13 = vpop.permute.xlu0 %1104  ;;  %v1117_v19 = vpop.permute.xlu1 %1116 }
 0x1cc   : > { %v1120_v14 = vadd.f32 %v1115_v10, %v1110_v11  ;;  %v1109_v15 = vadd.f32 %v1105_v13, %v1098_v4 }
 0x1ce   : > { %v1124_v16 = vadd.f32 %v1122_v12, %v1120_v14  ;;  %v1111_v17 = vadd.f32 %v1109_v15, %v1099_v7  ;;  %1131 = sbr.rel (%p4232_p8) target bundleno = 1861 (0x745), region = 92 }
 0x1d0   : > { %1126 = vst.msk [vmem:[#allocation2] sm:$0xff] %vm1012_vm1, %v1124_v16  ;;  %v1121_v20 = vadd.f32 %v1117_v19, %v1111_v17 }
 0x1d2   : > { %v1125_v21 = vadd.f32 %v1123_v18, %v1121_v20 }
 0x1d4   : > { %1127 = vst.msk [vmem:[#allocation2 + $0x8] sm:$0xff] %vm1012_vm1, %v1125_v21 }
 0x1d5   : > { %v1137_v22 = vld [vmem:[%s5316_s19] sm:$0xff]  ;;  %v5163_v28 = vmov 0   ;;  %v1139_v43 = vld [vmem:[%s5316_s19 + $0x10] sm:$0xff]  ;;  %v1138_v47 = vld [vmem:[%s5316_s19 + $0x8] sm:$0xff]  ;;  %s6520_s11 = sld [smem:[#allocation9_spill]]  ;;  %vm5165_vm10 = vmmov 0   ;;  %s6521_s16 = scalar_lea.vmem %s6389_s7, %s6682_s22 }
 0x1d6   : > { %v1141_v23 = vld [vmem:[%s5316_s19 + $0x20] sm:$0xff]  ;;  %1406 = vmatprep.mubr.bf16.mxu0 %v5163_v28  ;;  %1449 = vmatprep.mubr.bf16.mxu1 %v5163_v28  ;;  %v1143_v44 = vld [vmem:[%s5316_s19 + $0x30] sm:$0xff]  ;;  %v1142_v48 = vld [vmem:[%s5316_s19 + $0x28] sm:$0xff]  ;;  %s6522_s29 = sld [smem:[#allocation11_spill]]  ;;  %s6574_s28 = sld [smem:[#allocation10_spill]] }
 0x1d7   : > { %v1145_v24 = vld [vmem:[%s5316_s19 + $0x40] sm:$0xff]  ;;  %v4234_v25 = vcombine.high %v1137_v22, %v1141_v23  ;;  %v4233_v26 = vcombine.low %v1137_v22, %v1141_v23  ;;  %v1146_v49 = vld [vmem:[%s5316_s19 + $0x48] sm:$0xff]  ;;  %v4236_v51 = vcombine.high %v1138_v47, %v1142_v48  ;;  %v4235_v52 = vcombine.low %v1138_v47, %v1142_v48  ;;  %v1147_v55 = vld [vmem:[%s5316_s19 + $0x50] sm:$0xff] }
 0x1d8   : > { %v1149_v27 = vld [vmem:[%s5316_s19 + $0x60] sm:$0xff]  ;;  %v1150_v53 = vld [vmem:[%s5316_s19 + $0x68] sm:$0xff]  ;;  %v4238_v54 = vcombine.high %v1139_v43, %v1143_v44  ;;  %v1151_v57 = vld [vmem:[%s5316_s19 + $0x70] sm:$0xff]  ;;  %v4237_v0 = vcombine.low %v1139_v43, %v1143_v44 }
 0x1d9   : > { %v4242_v29 = vcombine.high %v1145_v24, %v1149_v27  ;;  %v1153_v32 = vld [vmem:[%s5316_s19 + $0x80] sm:$0xff]  ;;  %1374 = vmatprep.subr.bf16.mxu0 %v4234_v25  ;;  %v4241_v35 = vcombine.low %v1145_v24, %v1149_v27  ;;  %v4244_v56 = vcombine.high %v1146_v49, %v1150_v53  ;;  %1417 = vmatprep.subr.bf16.mxu1 %v4236_v51  ;;  %v1154_v58 = vld [vmem:[%s5316_s19 + $0x88] sm:$0xff]  ;;  %v1155_v1 = vld [vmem:[%s5316_s19 + $0x90] sm:$0xff]  ;;  %v5164_v24 = vmov 0.0  }
 0x1da   : > { %v1157_v34 = vld [vmem:[%s5316_s19 + $0xa0] sm:$0xff]  ;;  %1375 = vmatpush1.bf16.msra.mxu0 %v4233_v26  ;;  %v1158_v59 = vld [vmem:[%s5316_s19 + $0xa8] sm:$0xff]  ;;  %1418 = vmatpush1.bf16.msra.mxu1 %v4235_v52  ;;  %v4243_v61 = vcombine.low %v1146_v49, %v1150_v53  ;;  %v1159_v2 = vld [vmem:[%s5316_s19 + $0xb0] sm:$0xff]  ;;  %v4246_v3 = vcombine.high %v1147_v55, %v1151_v57  ;;  %v4245_v8 = vcombine.low %v1147_v55, %v1151_v57 }
 0x1db   : > { %1376 = vmatprep.subr.bf16.mxu0 %v4242_v29  ;;  %v4250_v36 = vcombine.high %v1153_v32, %v1157_v34  ;;  %v1161_v37 = vld [vmem:[%s5316_s19 + $0xc0] sm:$0xff]  ;;  %v4249_v40 = vcombine.low %v1153_v32, %v1157_v34  ;;  %v1133_v41 = vld [vmem:[#allocation2 + $0x8] sm:$0xff]  ;;  %1419 = vmatprep.subr.bf16.mxu1 %v4244_v56  ;;  %v4252_v4 = vcombine.high %v1154_v58, %v1158_v59  ;;  %v1140_v6 = vld [vmem:[%s5316_s19 + $0x18] sm:$0xff] }
 0x1dc   : > { %v1165_v38 = vld [vmem:[%s5316_s19 + $0xe0] sm:$0xff]  ;;  %v1135_v46 = vmul.f32 0.0625, %v1133_v41  ;;  %v1162_v62 = vld [vmem:[%s5316_s19 + $0xc8] sm:$0xff]  ;;  %v4251_v5 = vcombine.low %v1154_v58, %v1158_v59  ;;  %v1144_v7 = vld [vmem:[%s5316_s19 + $0x38] sm:$0xff]  ;;  %v4254_v12 = vcombine.high %v1155_v1, %v1159_v2  ;;  %v4253_v16 = vcombine.low %v1155_v1, %v1159_v2 }
 0x1dd   : > { %v1132_v39 = vld [vmem:[#allocation2] sm:$0xff]  ;;  %v4258_v42 = vcombine.high %v1161_v37, %v1165_v38  ;;  %v4257_v50 = vcombine.low %v1161_v37, %v1165_v38  ;;  %v1166_v63 = vld [vmem:[%s5316_s19 + $0xe8] sm:$0xff]  ;;  %v1163_v9 = vld [vmem:[%s5316_s19 + $0xd0] sm:$0xff]  ;;  %v4240_v17 = vcombine.high %v1140_v6, %v1144_v7  ;;  %v4239_v19 = vcombine.low %v1140_v6, %v1144_v7 }
 0x1de   : > { %1377 = vmatpush1.bf16.msra.mxu0 %v4241_v35  ;;  %v1134_v45 = vmul.f32 0.0625, %v1132_v39  ;;  %1420 = vmatpush1.bf16.msra.mxu1 %v4243_v61  ;;  %v1167_v10 = vld [vmem:[%s5316_s19 + $0xf0] sm:$0xff]  ;;  %v4260_v11 = vcombine.high %v1162_v62, %v1166_v63  ;;  %v4259_v13 = vcombine.low %v1162_v62, %v1166_v63  ;;  %v1148_v14 = vld [vmem:[%s5316_s19 + $0x58] sm:$0xff]  ;;  %v4740_v22 = vld [vmem:[%s5331_s2] sm:$0xff]  }
 0x1df   : > { %1378 = vmatprep.subr.bf16.mxu0 %v4250_v36  ;;  %1421 = vmatprep.subr.bf16.mxu1 %v4252_v4  ;;  %v1152_v15 = vld [vmem:[%s5316_s19 + $0x78] sm:$0xff]  ;;  %v4262_v18 = vcombine.high %v1163_v9, %v1167_v10  ;;  %v4261_v20 = vcombine.low %v1163_v9, %v1167_v10  ;;  %v4741_v25 = vld [vmem:[%s5331_s2 + $0x8] sm:$0xff]   ;;  %v4742_v26 = vld [vmem:[%s5331_s2 + $0x10] sm:$0xff]  }
 0x1e0   : > { %v5452_v60 = vpack.c.bf16 %v1135_v46, %v1134_v45  ;;  %v4248_v21 = vcombine.high %v1148_v14, %v1152_v15  ;;  %v4247_v23 = vcombine.low %v1148_v14, %v1152_v15  ;;  %v4743_v27 = vld [vmem:[%s5331_s2 + $0x18] sm:$0xff]   ;;  %v4744_v29 = vld [vmem:[%s6520_s11] sm:$0xff]  }
 0x1e1   : > { %v1156_v32 = vld [vmem:[%s5316_s19 + $0x98] sm:$0xff]  ;;  %v4747_v41 = vld [vmem:[%s5337_s4 + $0x4] ss:$8 sps:$4 sm:$0xff]   ;;  %v4751_v46 = vld [vmem:[%s5337_s4 + $0x20] ss:$8 sps:$4 sm:$0xff]  }
 0x1e2   : > { %1379 = vmatpush1.bf16.msra.mxu0 %v4249_v40  ;;  %1422 = vmatpush1.bf16.msra.mxu1 %v4251_v5  ;;  %v1160_v34 = vld [vmem:[%s5316_s19 + $0xb8] sm:$0xff]  ;;  %v4753_v45 = vld [vmem:[%s5337_s4 + $0x24] ss:$8 sps:$4 sm:$0xff]   ;;  %v4763_v53 = vld [vmem:[%s5337_s4 + $0x60] ss:$8 sps:$4 sm:$0xff]  }
 0x1e3   : > { %1380 = vmatprep.subr.bf16.mxu0 %v4258_v42  ;;  %1423 = vmatprep.subr.bf16.mxu1 %v4260_v11  ;;  %v4256_v35 = vcombine.high %v1156_v32, %v1160_v34  ;;  %v4255_v36 = vcombine.low %v1156_v32, %v1160_v34  ;;  %v1164_v37 = vld [vmem:[%s5316_s19 + $0xd8] sm:$0xff]  ;;  %v4745_v42 = vld [vmem:[%s5337_s4] ss:$8 sps:$4 sm:$0xff]   ;;  %v4759_v49 = vld [vmem:[%s5337_s4 + $0x44] ss:$8 sps:$4 sm:$0xff]  }
 0x1e4   : > { %v1168_v38 = vld [vmem:[%s5316_s19 + $0xf8] sm:$0xff]  ;;  %v4765_v52 = vld [vmem:[%s5337_s4 + $0x64] ss:$8 sps:$4 sm:$0xff]   ;;  %v4769_v56 = vld [vmem:[%s5349_s27] ss:$16 sps:$4 sm:$0xff]   ;;  %s6565_s19 = sld [smem:[#allocation12_spill]] }
 0x1e5   : > { %v4264_v39 = vcombine.high %v1164_v37, %v1168_v38  ;;  %v4263_v40 = vcombine.low %v1164_v37, %v1168_v38  ;;  %v4750_v43 = vld [vmem:[%s5337_s4 + $0x14] ss:$8 sps:$4 sm:$0xff]   ;;  %v4748_v44 = vld [vmem:[%s5337_s4 + $0x10] ss:$8 sps:$4 sm:$0xff]  }
 0x1e6   : > { %1381 = vmatpush1.bf16.msra.mxu0 %v4257_v50  ;;  %1424 = vmatpush1.bf16.msra.mxu1 %v4259_v13  ;;  %v4754_v47 = vld [vmem:[%s5337_s4 + $0x30] ss:$8 sps:$4 sm:$0xff]   ;;  %v4756_v48 = vld [vmem:[%s5337_s4 + $0x34] ss:$8 sps:$4 sm:$0xff]   ;;  %v4757_v50 = vld [vmem:[%s5337_s4 + $0x40] ss:$8 sps:$4 sm:$0xff]  }
 0x1e7   : > { %1460 = vmatprep.subr.bf16.mxu0 %v4238_v54  ;;  %1503 = vmatprep.subr.bf16.mxu1 %v4240_v17  ;;  %v4760_v51 = vld [vmem:[%s5337_s4 + $0x50] ss:$8 sps:$4 sm:$0xff]   ;;  %v4768_v54 = vld [vmem:[%s5337_s4 + $0x74] ss:$8 sps:$4 sm:$0xff]  }
 0x1e8   : > { %v4766_v55 = vld [vmem:[%s5337_s4 + $0x70] ss:$8 sps:$4 sm:$0xff]   ;;  %v4771_v57 = vld [vmem:[%s5349_s27 + $0x4] ss:$16 sps:$4 sm:$0xff]   ;;  %v4774_v58 = vld [vmem:[%s5349_s27 + $0xc] ss:$16 sps:$4 sm:$0xff]  }
 0x1e9   : > { %4265 = vmatmul.mubr.msk.bf16.vlgmr.msra.gmra.mrb[0].mxu0 %vm1012_vm1, %v5452_v60  ;;  %4266 = vmatmul.mubr.msk.bf16.vlgmr.msra.gmra.mrb[0].mxu1 %vm1012_vm1, %v5452_v60  ;;  %v4777_v59 = vld [vmem:[%s5349_s27 + $0x24] ss:$16 sps:$4 sm:$0xff]   ;;  %v4781_v62 = vld [vmem:[%s5349_s27 + $0x40] ss:$16 sps:$4 sm:$0xff]  }
 0x1ea   : > { %1461 = vmatpush1.bf16.msra.mxu0 %v4237_v0  ;;  %1492 = vmatprep.mubr.bf16.mxu0 %v5163_v28  ;;  %v4783_v61 = vld [vmem:[%s5349_s27 + $0x44] ss:$16 sps:$4 sm:$0xff]   ;;  %v4787_v0 = vld [vmem:[%s5349_s27 + $0x60] ss:$16 sps:$4 sm:$0xff]  }
 0x1eb   : > { %1462 = vmatprep.subr.bf16.mxu0 %v4246_v3  ;;  %1504 = vmatpush1.bf16.msra.mxu1 %v4239_v19  ;;  %v4789_v63 = vld [vmem:[%s5349_s27 + $0x64] ss:$16 sps:$4 sm:$0xff]   ;;  %v4793_v2 = vld [vmem:[%s5349_s27 + $0x80] ss:$16 sps:$4 sm:$0xff]  }
 0x1ec   : > { %1535 = vmatprep.mubr.bf16.mxu1 %v5163_v28  ;;  %1505 = vmatprep.subr.bf16.mxu1 %v4248_v21  ;;  %v4795_v1 = vld [vmem:[%s5349_s27 + $0x84] ss:$16 sps:$4 sm:$0xff]   ;;  %v4799_v3 = vld [vmem:[%s5349_s27 + $0xa0] ss:$16 sps:$4 sm:$0xff]  }
 0x1ed   : > { %v4801_v4 = vld [vmem:[%s5349_s27 + $0xa4] ss:$16 sps:$4 sm:$0xff]   ;;  %v4805_v6 = vld [vmem:[%s5349_s27 + $0xc0] ss:$16 sps:$4 sm:$0xff]  }
 0x1ee   : > { %1463 = vmatpush1.bf16.msra.mxu0 %v4245_v8  ;;  %v4807_v5 = vld [vmem:[%s5349_s27 + $0xc4] ss:$16 sps:$4 sm:$0xff]   ;;  %v4811_v8 = vld [vmem:[%s5349_s27 + $0xe0] ss:$16 sps:$4 sm:$0xff]  }
 0x1ef   : > { %1464 = vmatprep.subr.bf16.mxu0 %v4254_v12  ;;  %1506 = vmatpush1.bf16.msra.mxu1 %v4247_v23  ;;  %v4813_v7 = vld [vmem:[%s5349_s27 + $0xe4] ss:$16 sps:$4 sm:$0xff]   ;;  %v4817_v10 = vld [vmem:[%s5349_s27 + $0x100] ss:$16 sps:$4 sm:$0xff]  }
 0x1f0   : > { %1507 = vmatprep.subr.bf16.mxu1 %v4256_v35  ;;  %v4819_v9 = vld [vmem:[%s5349_s27 + $0x104] ss:$16 sps:$4 sm:$0xff]   ;;  %v4823_v12 = vld [vmem:[%s5349_s27 + $0x120] ss:$16 sps:$4 sm:$0xff]  }
 0x1f1   : > { %v4825_v11 = vld [vmem:[%s5349_s27 + $0x124] ss:$16 sps:$4 sm:$0xff]   ;;  %v4829_v14 = vld [vmem:[%s5349_s27 + $0x140] ss:$16 sps:$4 sm:$0xff]  }
 0x1f2   : > { %1465 = vmatpush1.bf16.msra.mxu0 %v4253_v16  ;;  %v4831_v13 = vld [vmem:[%s5349_s27 + $0x144] ss:$16 sps:$4 sm:$0xff]   ;;  %v4835_v16 = vld [vmem:[%s5349_s27 + $0x160] ss:$16 sps:$4 sm:$0xff]  }
 0x1f3   : > { %1466 = vmatprep.subr.bf16.mxu0 %v4262_v18  ;;  %1508 = vmatpush1.bf16.msra.mxu1 %v4255_v36  ;;  %v4837_v15 = vld [vmem:[%s5349_s27 + $0x164] ss:$16 sps:$4 sm:$0xff]   ;;  %v4841_v18 = vld [vmem:[%s5349_s27 + $0x180] ss:$16 sps:$4 sm:$0xff]  }
 0x1f4   : > { %1509 = vmatprep.subr.bf16.mxu1 %v4264_v39  ;;  %v4843_v17 = vld [vmem:[%s5349_s27 + $0x184] ss:$16 sps:$4 sm:$0xff]   ;;  %v4269_v35 = vld [vmem:[%s6521_s16] ss:$0 sm:$0xff] }
 0x1f6   : > { %1467 = vmatpush1.bf16.msra.mxu0 %v4261_v20 }
 0x1f7   : > { %4584 = vmatprep.subr.bf16.mxu0 %v5164_v24  ;;  %1510 = vmatpush1.bf16.msra.mxu1 %v4263_v40 }
 0x1f8   : > { %1751 = vmatprep.subr.bf16.mxu1 %v4747_v41 }
 0x1f9   : > { %4267 = vmatmul.mubr.msk.bf16.vlgmr.msra.gmra.mrb[4].mxu0 %vm1012_vm1, %v5452_v60 }
 0x1fa   : > { %4585 = vmatpush3.bf16.msra.mxu0 %v4740_v22  ;;  %4592 = vmatprep.mubr.msk.bf16.mxu0 %vm5165_vm10, %v5164_v24 }
 0x1fb   : > { %4586 = vmatprep.subr.bf16.mxu0 %v5164_v24  ;;  %4268 = vmatmul.mubr.msk.bf16.vlgmr.msra.gmra.mrb[4].mxu1 %vm1012_vm1, %v5452_v60  ;;  %v4775_v60 = vld [vmem:[%s5349_s27 + $0x20] ss:$16 sps:$4 sm:$0xff]  }
 0x1fc   : > { %1752 = vmatpush1.bf16.msra.mxu1 %v4745_v42  ;;  %1783 = vmatprep.mubr.bf16.mxu1 %v5163_v28  ;;  %v4762_v28 = vld [vmem:[%s5337_s4 + $0x54] ss:$8 sps:$4 sm:$0xff]  }
 0x1fd   : > { %1753 = vmatprep.subr.bf16.mxu1 %v4750_v43 }
 0x1fe   : > { %4587 = vmatpush3.bf16.msra.mxu0 %v4741_v25 }
 0x1ff   : > { %4588 = vmatprep.subr.bf16.mxu0 %v5164_v24 }
 0x200   : > { %1754 = vmatpush1.bf16.msra.mxu1 %v4748_v44 }
 0x201   : > { %1755 = vmatprep.subr.bf16.mxu1 %v4753_v45 }
 0x202   : > { %4589 = vmatpush3.bf16.msra.mxu0 %v4742_v26 }
 0x203   : > { %4590 = vmatprep.subr.bf16.mxu0 %v5164_v24 }
 0x204   : > { %1756 = vmatpush1.bf16.msra.mxu1 %v4751_v46  ;;  %v4772_v46 = vld [vmem:[%s5349_s27 + $0x8] ss:$16 sps:$4 sm:$0xff]  }
 0x205   : > { %1757 = vmatprep.subr.bf16.mxu1 %v4756_v48  ;;  %v4780_v48 = vld [vmem:[%s5349_s27 + $0x2c] ss:$16 sps:$4 sm:$0xff]  }
 0x206   : > { %4591 = vmatpush3.bf16.msra.mxu0 %v4743_v27 }
 0x207   : > { %2214 = vmatprep.subr.bf16.mxu0 %v4771_v57  ;;  %v4810_v57 = vld [vmem:[%s5349_s27 + $0xcc] ss:$16 sps:$4 sm:$0xff]  }
 0x208   : > { %1758 = vmatpush1.bf16.msra.mxu1 %v4754_v47 }
 0x209   : > { %4593 = vmatmul.mubr.msk.bf16.vlgmr.msra.gmra.mrb[8].mxu0 %vm1012_vm1, %v4744_v29  ;;  %1759 = vmatprep.subr.bf16.mxu1 %v4759_v49  ;;  %v4778_v49 = vld [vmem:[%s5349_s27 + $0x28] ss:$16 sps:$4 sm:$0xff]  }
 0x20a   : > { %2215 = vmatpush1.bf16.msra.mxu0 %v4769_v56  ;;  %v4802_v56 = vld [vmem:[%s5349_s27 + $0xa8] ss:$16 sps:$4 sm:$0xff]  }
 0x20b   : > { %2216 = vmatprep.subr.bf16.mxu0 %v4777_v59  ;;  %v4816_v59 = vld [vmem:[%s5349_s27 + $0xec] ss:$16 sps:$4 sm:$0xff]  }
 0x20c   : > { %1760 = vmatpush1.bf16.msra.mxu1 %v4757_v50  ;;  %v4786_v50 = vld [vmem:[%s5349_s27 + $0x4c] ss:$16 sps:$4 sm:$0xff]  }
 0x20d   : > { %1761 = vmatprep.subr.bf16.mxu1 %v4762_v28  ;;  %v4784_v28 = vld [vmem:[%s5349_s27 + $0x48] ss:$16 sps:$4 sm:$0xff]  }
 0x20e   : > { %2217 = vmatpush1.bf16.msra.mxu0 %v4775_v60  ;;  %v4814_v60 = vld [vmem:[%s5349_s27 + $0xe8] ss:$16 sps:$4 sm:$0xff]  }
 0x20f   : > { %2218 = vmatprep.subr.bf16.mxu0 %v4783_v61  ;;  %v4822_v61 = vld [vmem:[%s5349_s27 + $0x10c] ss:$16 sps:$4 sm:$0xff]  }
 0x210   : > { %1762 = vmatpush1.bf16.msra.mxu1 %v4760_v51  ;;  %v4792_v51 = vld [vmem:[%s5349_s27 + $0x6c] ss:$16 sps:$4 sm:$0xff]  }
 0x211   : > { %1763 = vmatprep.subr.bf16.mxu1 %v4765_v52  ;;  %v4790_v52 = vld [vmem:[%s5349_s27 + $0x68] ss:$16 sps:$4 sm:$0xff]  }
 0x212   : > { %2219 = vmatpush1.bf16.msra.mxu0 %v4781_v62  ;;  %v4820_v62 = vld [vmem:[%s5349_s27 + $0x108] ss:$16 sps:$4 sm:$0xff]  }
 0x213   : > { %2220 = vmatprep.subr.bf16.mxu0 %v4789_v63  ;;  %v4828_v63 = vld [vmem:[%s5349_s27 + $0x12c] ss:$16 sps:$4 sm:$0xff]  }
 0x214   : > { %1764 = vmatpush1.bf16.msra.mxu1 %v4763_v53  ;;  %v4798_v53 = vld [vmem:[%s5349_s27 + $0x8c] ss:$16 sps:$4 sm:$0xff]  }
 0x215   : > { %1765 = vmatprep.subr.bf16.mxu1 %v4768_v54  ;;  %v4796_v54 = vld [vmem:[%s5349_s27 + $0x88] ss:$16 sps:$4 sm:$0xff]  }
 0x216   : > { %2221 = vmatpush1.bf16.msra.mxu0 %v4787_v0  ;;  %v4826_v0 = vld [vmem:[%s5349_s27 + $0x128] ss:$16 sps:$4 sm:$0xff]  }
 0x217   : > { %2222 = vmatprep.subr.bf16.mxu0 %v4795_v1  ;;  %v4834_v1 = vld [vmem:[%s5349_s27 + $0x14c] ss:$16 sps:$4 sm:$0xff]  }
 0x218   : > { %1766 = vmatpush1.bf16.msra.mxu1 %v4766_v55  ;;  %v4804_v55 = vld [vmem:[%s5349_s27 + $0xac] ss:$16 sps:$4 sm:$0xff]  }
 0x219   : > { %2257 = vmatprep.subr.bf16.mxu1 %v4774_v58  ;;  %v4808_v58 = vld [vmem:[%s5349_s27 + $0xc8] ss:$16 sps:$4 sm:$0xff]  }
 0x21a   : > { %2223 = vmatpush1.bf16.msra.mxu0 %v4793_v2  ;;  %v4832_v2 = vld [vmem:[%s5349_s27 + $0x148] ss:$16 sps:$4 sm:$0xff]  }
 0x21b   : > { %2224 = vmatprep.subr.bf16.mxu0 %v4801_v4  ;;  %v4838_v4 = vld [vmem:[%s5349_s27 + $0x168] ss:$16 sps:$4 sm:$0xff]  }
 0x21e   : > { %2225 = vmatpush1.bf16.msra.mxu0 %v4799_v3  ;;  %v4840_v3 = vld [vmem:[%s5349_s27 + $0x16c] ss:$16 sps:$4 sm:$0xff]  }
 0x21f   : > { %2226 = vmatprep.subr.bf16.mxu0 %v4807_v5  ;;  %v4846_v5 = vld [vmem:[%s5349_s27 + $0x18c] ss:$16 sps:$4 sm:$0xff]  }
 0x222   : > { %2227 = vmatpush1.bf16.msra.mxu0 %v4805_v6  ;;  %v4844_v6 = vld [vmem:[%s5349_s27 + $0x188] ss:$16 sps:$4 sm:$0xff]  }
 0x223   : > { %2228 = vmatprep.subr.bf16.mxu0 %v4813_v7 }
 0x226   : > { %2229 = vmatpush1.bf16.msra.mxu0 %v4811_v8 }
 0x227   : > { %2230 = vmatprep.subr.bf16.mxu0 %v4819_v9 }
 0x22a   : > { %2231 = vmatpush1.bf16.msra.mxu0 %v4817_v10 }
 0x22b   : > { %2232 = vmatprep.subr.bf16.mxu0 %v4825_v11  ;;  %v4849_v11 = vld [vmem:[%s5349_s27 + $0x1a4] ss:$16 sps:$4 sm:$0xff]  }
 0x22e   : > { %2233 = vmatpush1.bf16.msra.mxu0 %v4823_v12  ;;  %v4852_v12 = vld [vmem:[%s5349_s27 + $0x1ac] ss:$16 sps:$4 sm:$0xff]  }
 0x22f   : > { %2234 = vmatprep.subr.bf16.mxu0 %v4831_v13  ;;  %v4847_v13 = vld [vmem:[%s5349_s27 + $0x1a0] ss:$16 sps:$4 sm:$0xff]  }
 0x232   : > { %2235 = vmatpush1.bf16.msra.mxu0 %v4829_v14  ;;  %v4850_v14 = vld [vmem:[%s5349_s27 + $0x1a8] ss:$16 sps:$4 sm:$0xff]  }
 0x233   : > { %2236 = vmatprep.subr.bf16.mxu0 %v4837_v15  ;;  %v4855_v15 = vld [vmem:[%s5349_s27 + $0x1c4] ss:$16 sps:$4 sm:$0xff]  }
 0x236   : > { %2237 = vmatpush1.bf16.msra.mxu0 %v4835_v16  ;;  %v4858_v16 = vld [vmem:[%s5349_s27 + $0x1cc] ss:$16 sps:$4 sm:$0xff]  }
 0x237   : > { %2238 = vmatprep.subr.bf16.mxu0 %v4843_v17  ;;  %v4853_v17 = vld [vmem:[%s5349_s27 + $0x1c0] ss:$16 sps:$4 sm:$0xff]  }
 0x23a   : > { %2239 = vmatpush1.bf16.msra.mxu0 %v4841_v18  ;;  %v4856_v18 = vld [vmem:[%s5349_s27 + $0x1c8] ss:$16 sps:$4 sm:$0xff]  }
 0x23b   : > { %2240 = vmatprep.subr.bf16.mxu0 %v4849_v11  ;;  %v5652_v11 = vld [vmem:[%s5365_s30 + $0x64] ss:$16 sps:$4 sm:$0xff]  }
 0x23e   : > { %2241 = vmatpush1.bf16.msra.mxu0 %v4847_v13  ;;  %v5660_v13 = vld [vmem:[%s5365_s30 + $0x60] ss:$16 sps:$4 sm:$0xff]  }
 0x23f   : > { %2242 = vmatprep.subr.bf16.mxu0 %v4855_v15  ;;  %v5668_v15 = vld [vmem:[%s5365_s30 + $0x84] ss:$16 sps:$4 sm:$0xff]  }
 0x242   : > { %2243 = vmatpush1.bf16.msra.mxu0 %v4853_v17  ;;  %v5676_v17 = vld [vmem:[%s5365_s30 + $0x80] ss:$16 sps:$4 sm:$0xff]  }
 0x243   : > { %6523 = vst [vmem:[#allocation15_spill] sm:$0xff] %v5676_v17 }
 0x2bc   : > { %v5528_v19 = vpop.f32.mrb[0].mxu0  ;;  %v5536_v23 = vpop.f32.mrb[0].mxu1 }
 0x2bd   : > { %v5530_v20 = vpop.f32.mrb[1].mxu0  ;;  %v5538_v24 = vpop.f32.mrb[1].mxu1 }
 0x2be   : > { %v5532_v21 = vpop.f32.mrb[2].mxu0  ;;  %v5540_v25 = vpop.f32.mrb[2].mxu1 }
 0x2bf   : > { %v5534_v22 = vpop.f32.mrb[3].mxu0  ;;  %v5542_v26 = vpop.f32.mrb[3].mxu1 }
 0x2cc   : > { %v5544_v27 = vpop.f32.mrb[4].mxu0 }
 0x2cd   : > { %v5546_v29 = vpop.f32.mrb[5].mxu0 }
 0x2ce   : > { %v5548_v32 = vpop.f32.mrb[6].mxu0  ;;  %v5582_v7 = vpop.f32.mrb[4].mxu1 }
 0x2cf   : > { %v5550_v34 = vpop.f32.mrb[7].mxu0  ;;  %v5584_v8 = vpop.f32.mrb[5].mxu1 }
 0x2d0   : > { %v5586_v9 = vpop.f32.mrb[6].mxu1 }
 0x2d1   : > { %v5588_v10 = vpop.f32.mrb[7].mxu1 }
 0x2dc   : > { %v1629_v36 = vpop.f32.mrb[8].mxu0 }
 0x2dd   : > { %v1630_v37 = vadd.f32 %v4269_v35, %v1629_v36  ;;  %v4594_v38 = vpop.f32.mrb[9].mxu0  ;;  %v4864_v36 = vld [vmem:[%s5349_s27 + $0x1ec] ss:$16 sps:$4 sm:$0xff]  }
 0x2de   : > { %v1632_v39 = vpop.f32.mrb[10].mxu0  ;;  %v4862_v38 = vld [vmem:[%s5349_s27 + $0x1e8] ss:$16 sps:$4 sm:$0xff]  }
 0x2df   : > { %v1638_v40 = vmul.f32 0.01, %v1630_v37  ;;  %v1633_v41 = vadd.f32 %v4269_v35, %v1632_v39  ;;  %v4595_v42 = vpop.f32.mrb[11].mxu0  ;;  %vm1636_vm11 = vcmp.ge.f32.partialorder %v1630_v37, 0.0  ;;  %v4861_v35 = vld [vmem:[%s5349_s27 + $0x1e4] ss:$16 sps:$4 sm:$0xff]  }
 0x2e0   : > { %2244 = vmatprep.subr.bf16.mxu0 %v4861_v35  ;;  %v5603_v39 = vld [vmem:[%s5365_s30 + $0x4] ss:$16 sps:$4 sm:$0xff]  }
 0x2e1   : > { %vm1637_vm12 = vcmp.ge.f32.partialorder %v1633_v41, 0.0  ;;  %v1639_v43 = vmul.f32 0.01, %v1633_v41  ;;  %v1640_v44 = vsel %vm1636_vm11, %v1630_v37, %v1638_v40  ;;  %v4859_v37 = vld [vmem:[%s5349_s27 + $0x1e0] ss:$16 sps:$4 sm:$0xff]  }
 0x2e2   : > { %2245 = vmatpush1.bf16.msra.mxu0 %v4859_v37  ;;  %v5606_v40 = vld [vmem:[%s5365_s30 + $0xc] ss:$16 sps:$4 sm:$0xff]   ;;  %v5684_v35 = vld [vmem:[%s5365_s30 + $0xa4] ss:$16 sps:$4 sm:$0xff]   ;;  %v5692_v37 = vld [vmem:[%s5365_s30 + $0xa0] ss:$16 sps:$4 sm:$0xff]  }
 0x2e3   : > { %v1641_v45 = vsel %vm1637_vm12, %v1633_v41, %v1639_v43  ;;  %3150 = vmatprep.subr.bf16.mxu0 %v5603_v39  ;;  %v1659_v41 = vld [vmem:[%s6522_s29] sm:$0x3]  ;;  %6525 = vst [vmem:[#allocation17_spill] sm:$0xff] %v5684_v35  ;;  %6527 = vst [vmem:[#allocation19_spill] sm:$0xff] %v5692_v37 }
 0x2e4   : > { %v1642_v47 = vpack.c.bf16 %v1641_v45, %v1640_v44  ;;  %v1664_v42 = vrot.slane %v1659_v41, %v5417_v31  ;;  %v1668_v43 = vrot.slane %v1659_v41, %v5421_v33  ;;  %v5700_v41 = vld [vmem:[%s5365_s30 + $0xc4] ss:$16 sps:$4 sm:$0xff]  }
 0x2e5   : > { %6529 = vst [vmem:[#allocation21_spill] sm:$0xff] %v5700_v41 }
 0x2e6   : > { %1784 = vmatmul.mubr.bf16.vlgmr.msra.gmra.mrb[8].mxu1 %v1642_v47 }
 0x2e7   : > { %2258 = vmatpush1.bf16.msra.mxu1 %v4772_v46 }
 0x2e8   : > { %2259 = vmatprep.subr.bf16.mxu1 %v4780_v48 }
 0x2eb   : > { %2260 = vmatpush1.bf16.msra.mxu1 %v4778_v49 }
 0x2ec   : > { %2261 = vmatprep.subr.bf16.mxu1 %v4786_v50 }
 0x2ef   : > { %2262 = vmatpush1.bf16.msra.mxu1 %v4784_v28 }
 0x2f0   : > { %2263 = vmatprep.subr.bf16.mxu1 %v4792_v51 }
 0x2f3   : > { %2264 = vmatpush1.bf16.msra.mxu1 %v4790_v52 }
 0x2f4   : > { %2265 = vmatprep.subr.bf16.mxu1 %v4798_v53 }
 0x2f7   : > { %2266 = vmatpush1.bf16.msra.mxu1 %v4796_v54 }
 0x2f8   : > { %2267 = vmatprep.subr.bf16.mxu1 %v4804_v55 }
 0x2fb   : > { %2268 = vmatpush1.bf16.msra.mxu1 %v4802_v56 }
 0x2fc   : > { %2269 = vmatprep.subr.bf16.mxu1 %v4810_v57 }
 0x2ff   : > { %2270 = vmatpush1.bf16.msra.mxu1 %v4808_v58 }
 0x300   : > { %2271 = vmatprep.subr.bf16.mxu1 %v4816_v59 }
 0x303   : > { %2272 = vmatpush1.bf16.msra.mxu1 %v4814_v60 }
 0x304   : > { %2273 = vmatprep.subr.bf16.mxu1 %v4822_v61  ;;  %v5614_v61 = vld [vmem:[%s5365_s30] ss:$16 sps:$4 sm:$0xff]  }
 0x307   : > { %2274 = vmatpush1.bf16.msra.mxu1 %v4820_v62  ;;  %v5617_v62 = vld [vmem:[%s5365_s30 + $0x8] ss:$16 sps:$4 sm:$0xff]  }
 0x308   : > { %2275 = vmatprep.subr.bf16.mxu1 %v4828_v63  ;;  %v5620_v63 = vld [vmem:[%s5365_s30 + $0x24] ss:$16 sps:$4 sm:$0xff]  }
 0x30b   : > { %2276 = vmatpush1.bf16.msra.mxu1 %v4826_v0  ;;  %v5623_v0 = vld [vmem:[%s5365_s30 + $0x2c] ss:$16 sps:$4 sm:$0xff]  }
 0x30c   : > { %2277 = vmatprep.subr.bf16.mxu1 %v4834_v1  ;;  %v5628_v1 = vld [vmem:[%s5365_s30 + $0x20] ss:$16 sps:$4 sm:$0xff]  }
 0x30f   : > { %2278 = vmatpush1.bf16.msra.mxu1 %v4832_v2  ;;  %v5631_v2 = vld [vmem:[%s5365_s30 + $0x28] ss:$16 sps:$4 sm:$0xff]  }
 0x310   : > { %2279 = vmatprep.subr.bf16.mxu1 %v4840_v3  ;;  %v5636_v3 = vld [vmem:[%s5365_s30 + $0x44] ss:$16 sps:$4 sm:$0xff]  }
 0x313   : > { %2280 = vmatpush1.bf16.msra.mxu1 %v4838_v4  ;;  %v5639_v4 = vld [vmem:[%s5365_s30 + $0x4c] ss:$16 sps:$4 sm:$0xff]  }
 0x314   : > { %2281 = vmatprep.subr.bf16.mxu1 %v4846_v5  ;;  %v5644_v5 = vld [vmem:[%s5365_s30 + $0x40] ss:$16 sps:$4 sm:$0xff]  }
 0x317   : > { %2282 = vmatpush1.bf16.msra.mxu1 %v4844_v6  ;;  %v5647_v6 = vld [vmem:[%s5365_s30 + $0x48] ss:$16 sps:$4 sm:$0xff]  }
 0x318   : > { %2283 = vmatprep.subr.bf16.mxu1 %v4852_v12  ;;  %v5655_v12 = vld [vmem:[%s5365_s30 + $0x6c] ss:$16 sps:$4 sm:$0xff]  }
 0x31b   : > { %2284 = vmatpush1.bf16.msra.mxu1 %v4850_v14  ;;  %v5663_v14 = vld [vmem:[%s5365_s30 + $0x68] ss:$16 sps:$4 sm:$0xff]  }
 0x31c   : > { %2285 = vmatprep.subr.bf16.mxu1 %v4858_v16  ;;  %v5671_v16 = vld [vmem:[%s5365_s30 + $0x8c] ss:$16 sps:$4 sm:$0xff]  }
 0x31f   : > { %2286 = vmatpush1.bf16.msra.mxu1 %v4856_v18  ;;  %v5679_v18 = vld [vmem:[%s5365_s30 + $0x88] ss:$16 sps:$4 sm:$0xff]  }
 0x320   : > { %2287 = vmatprep.subr.bf16.mxu1 %v4864_v36  ;;  %6524 = vst [vmem:[#allocation16_spill] sm:$0xff] %v5679_v18  ;;  %v5687_v36 = vld [vmem:[%s5365_s30 + $0xac] ss:$16 sps:$4 sm:$0xff]  }
 0x321   : > { %6526 = vst [vmem:[#allocation18_spill] sm:$0xff] %v5687_v36 }
 0x323   : > { %2288 = vmatpush1.bf16.msra.mxu1 %v4862_v38  ;;  %v5695_v38 = vld [vmem:[%s5365_s30 + $0xa8] ss:$16 sps:$4 sm:$0xff]  }
 0x324   : > { %3236 = vmatprep.subr.bf16.mxu1 %v5606_v40  ;;  %6528 = vst [vmem:[#allocation20_spill] sm:$0xff] %v5695_v38 }
 0x3b9   : > { %v1785_v44 = vpop.f32.mrb[8].mxu1 }
 0x3ba   : > { %v1786_v45 = vadd.f32 %v1785_v44, %v1664_v42  ;;  %v1787_v46 = vpop.f32.mrb[9].mxu1  ;;  %v5711_v44 = vld [vmem:[%s5365_s30 + $0xc8] ss:$16 sps:$4 sm:$0xff]  }
 0x3bb   : > { %v1788_v47 = vadd.f32 %v1787_v46, %v1668_v43  ;;  %v1789_v48 = vpop.f32.mrb[10].mxu1  ;;  %6532 = vst [vmem:[#allocation24_spill] sm:$0xff] %v5711_v44  ;;  %v5721_v46 = vld [vmem:[%s5365_s30 + $0xec] ss:$16 sps:$4 sm:$0xff]  }
 0x3bc   : > { %v1798_v49 = vmul.f32 0.01, %v1786_v45  ;;  %v1790_v50 = vadd.f32 %v1789_v48, %v1664_v42  ;;  %v1791_v28 = vpop.f32.mrb[11].mxu1  ;;  %vm1794_vm13 = vcmp.ge.f32.partialorder %v1786_v45, 0.0  ;;  %v5703_v42 = vld [vmem:[%s5365_s30 + $0xcc] ss:$16 sps:$4 sm:$0xff]  }
 0x3bd   : > { %v1799_v51 = vmul.f32 0.01, %v1788_v47  ;;  %v1792_v52 = vadd.f32 %v1791_v28, %v1668_v43  ;;  %vm1795_vm14 = vcmp.ge.f32.partialorder %v1788_v47, 0.0  ;;  %6530 = vst [vmem:[#allocation22_spill] sm:$0xff] %v5703_v42  ;;  %v5708_v43 = vld [vmem:[%s5365_s30 + $0xc0] ss:$16 sps:$4 sm:$0xff]  }
 0x3be   : > { %vm1796_vm15 = vcmp.ge.f32.partialorder %v1790_v50, 0.0  ;;  %v1800_v53 = vmul.f32 0.01, %v1790_v50  ;;  %v1802_v55 = vsel %vm1794_vm13, %v1786_v45, %v1798_v49  ;;  %6531 = vst [vmem:[#allocation23_spill] sm:$0xff] %v5708_v43  ;;  %v5718_v45 = vld [vmem:[%s5365_s30 + $0xe4] ss:$16 sps:$4 sm:$0xff]  }
 0x3bf   : > { %vm1797_vm0 = vcmp.ge.f32.partialorder %v1792_v52, 0.0  ;;  %v1801_v54 = vmul.f32 0.01, %v1792_v52  ;;  %v1803_v58 = vsel %vm1795_vm14, %v1788_v47, %v1799_v51  ;;  %6533 = vst [vmem:[#allocation25_spill] sm:$0xff] %v5718_v45  ;;  %6534 = vst [vmem:[#allocation26_spill] sm:$0xff] %v5721_v46 }
 0x3c0   : > { %v1804_v56 = vsel %vm1796_vm15, %v1790_v50, %v1800_v53  ;;  %v5724_v47 = vld [vmem:[%s5365_s30 + $0xe0] ss:$16 sps:$4 sm:$0xff]   ;;  %v5727_v48 = vld [vmem:[%s5365_s30 + $0xe8] ss:$16 sps:$4 sm:$0xff]   ;;  %v5734_v49 = vld [vmem:[%s5365_s30 + $0x104] ss:$16 sps:$4 sm:$0xff]  }
 0x3c1   : > { %v1806_v57 = vpack.c.bf16 %v1804_v56, %v1802_v55  ;;  %v1805_v59 = vsel %vm1797_vm0, %v1792_v52, %v1801_v54  ;;  %6535 = vst [vmem:[#allocation27_spill] sm:$0xff] %v5724_v47  ;;  %6536 = vst [vmem:[#allocation28_spill] sm:$0xff] %v5727_v48  ;;  %v5737_v50 = vld [vmem:[%s5365_s30 + $0x10c] ss:$16 sps:$4 sm:$0xff]   ;;  %v5740_v28 = vld [vmem:[%s5365_s30 + $0x100] ss:$16 sps:$4 sm:$0xff]  }
 0x3c2   : > { %v1807_v60 = vpack.c.bf16 %v1805_v59, %v1803_v58  ;;  %6537 = vst [vmem:[#allocation29_spill] sm:$0xff] %v5734_v49  ;;  %6538 = vst [vmem:[#allocation30_spill] sm:$0xff] %v5737_v50  ;;  %v5743_v51 = vld [vmem:[%s5365_s30 + $0x108] ss:$16 sps:$4 sm:$0xff]   ;;  %v5750_v52 = vld [vmem:[%s5365_s30 + $0x124] ss:$16 sps:$4 sm:$0xff]  }
 0x3c3   : > { %6539 = vst [vmem:[#allocation31_spill] sm:$0xff] %v5740_v28  ;;  %6540 = vst [vmem:[#allocation32_spill] sm:$0xff] %v5743_v51  ;;  %v5753_v53 = vld [vmem:[%s5365_s30 + $0x12c] ss:$16 sps:$4 sm:$0xff]   ;;  %v5756_v54 = vld [vmem:[%s5365_s30 + $0x120] ss:$16 sps:$4 sm:$0xff]  }
 0x3c4   : > { %2246 = vmatprep.mubr.bf16.mxu0 %v1807_v60  ;;  %2289 = vmatprep.mubr.bf16.mxu1 %v1807_v60  ;;  %6541 = vst [vmem:[#allocation33_spill] sm:$0xff] %v5750_v52  ;;  %6542 = vst [vmem:[#allocation34_spill] sm:$0xff] %v5753_v53  ;;  %v5759_v55 = vld [vmem:[%s5365_s30 + $0x128] ss:$16 sps:$4 sm:$0xff]   ;;  %v5766_v56 = vld [vmem:[%s5365_s30 + $0x144] ss:$16 sps:$4 sm:$0xff]  }
 0x3c5   : > { %2247 = vmatmul.mubr.bf16.vlgmr.msra.gmra.mrb[12].mxu0 %v1806_v57  ;;  %2290 = vmatmul.mubr.bf16.vlgmr.msra.gmra.mrb[12].mxu1 %v1806_v57  ;;  %6543 = vst [vmem:[#allocation35_spill] sm:$0xff] %v5756_v54  ;;  %6544 = vst [vmem:[#allocation36_spill] sm:$0xff] %v5759_v55  ;;  %v5769_v57 = vld [vmem:[%s5365_s30 + $0x14c] ss:$16 sps:$4 sm:$0xff]   ;;  %v5772_v58 = vld [vmem:[%s5365_s30 + $0x140] ss:$16 sps:$4 sm:$0xff]  }
 0x3c6   : > { %3151 = vmatpush1.bf16.msra.mxu0 %v5614_v61  ;;  %3237 = vmatpush1.bf16.msra.mxu1 %v5617_v62  ;;  %6545 = vst [vmem:[#allocation37_spill] sm:$0xff] %v5766_v56  ;;  %6546 = vst [vmem:[#allocation38_spill] sm:$0xff] %v5769_v57  ;;  %v5775_v59 = vld [vmem:[%s5365_s30 + $0x148] ss:$16 sps:$4 sm:$0xff]   ;;  %v5782_v60 = vld [vmem:[%s5365_s30 + $0x164] ss:$16 sps:$4 sm:$0xff]  }
 0x3c7   : > { %3152 = vmatprep.subr.bf16.mxu0 %v5620_v63  ;;  %3238 = vmatprep.subr.bf16.mxu1 %v5623_v0  ;;  %6547 = vst [vmem:[#allocation39_spill] sm:$0xff] %v5772_v58  ;;  %6548 = vst [vmem:[#allocation40_spill] sm:$0xff] %v5775_v59 }
 0x3c8   : > { %6549 = vst [vmem:[#allocation41_spill] sm:$0xff] %v5782_v60 }
 0x3ca   : > { %3153 = vmatpush1.bf16.msra.mxu0 %v5628_v1  ;;  %3239 = vmatpush1.bf16.msra.mxu1 %v5631_v2 }
 0x3cb   : > { %3154 = vmatprep.subr.bf16.mxu0 %v5636_v3  ;;  %3240 = vmatprep.subr.bf16.mxu1 %v5639_v4 }
 0x3ce   : > { %3155 = vmatpush1.bf16.msra.mxu0 %v5644_v5  ;;  %3241 = vmatpush1.bf16.msra.mxu1 %v5647_v6 }
 0x3cf   : > { %3156 = vmatprep.subr.bf16.mxu0 %v5652_v11  ;;  %3242 = vmatprep.subr.bf16.mxu1 %v5655_v12 }
 0x3d2   : > { %3157 = vmatpush1.bf16.msra.mxu0 %v5660_v13  ;;  %3243 = vmatpush1.bf16.msra.mxu1 %v5663_v14 }
 0x3d3   : > { %3158 = vmatprep.subr.bf16.mxu0 %v5668_v15  ;;  %3244 = vmatprep.subr.bf16.mxu1 %v5671_v16 }
 0x3d6   : > { %3159 = vmatpush1.bf16.msra.mxu0 %v5676_v17  ;;  %3245 = vmatpush1.bf16.msra.mxu1 %v5679_v18 }
 0x3d7   : > { %3160 = vmatprep.subr.bf16.mxu0 %v5684_v35  ;;  %3246 = vmatprep.subr.bf16.mxu1 %v5687_v36 }
 0x3da   : > { %3161 = vmatpush1.bf16.msra.mxu0 %v5692_v37  ;;  %3247 = vmatpush1.bf16.msra.mxu1 %v5695_v38 }
 0x3db   : > { %3162 = vmatprep.subr.bf16.mxu0 %v5700_v41  ;;  %3248 = vmatprep.subr.bf16.mxu1 %v5703_v42 }
 0x3de   : > { %3163 = vmatpush1.bf16.msra.mxu0 %v5708_v43  ;;  %3249 = vmatpush1.bf16.msra.mxu1 %v5711_v44 }
 0x3df   : > { %3164 = vmatprep.subr.bf16.mxu0 %v5718_v45  ;;  %3250 = vmatprep.subr.bf16.mxu1 %v5721_v46 }
 0x3e2   : > { %3165 = vmatpush1.bf16.msra.mxu0 %v5724_v47  ;;  %3251 = vmatpush1.bf16.msra.mxu1 %v5727_v48 }
 0x3e3   : > { %3166 = vmatprep.subr.bf16.mxu0 %v5734_v49  ;;  %3252 = vmatprep.subr.bf16.mxu1 %v5737_v50 }
 0x3e6   : > { %3167 = vmatpush1.bf16.msra.mxu0 %v5740_v28  ;;  %3253 = vmatpush1.bf16.msra.mxu1 %v5743_v51 }
 0x3e7   : > { %3168 = vmatprep.subr.bf16.mxu0 %v5750_v52  ;;  %3254 = vmatprep.subr.bf16.mxu1 %v5753_v53  ;;  %v5791_v53 = vld [vmem:[%s5365_s30 + $0x168] ss:$16 sps:$4 sm:$0xff]   ;;  %v5826_v52 = vld [vmem:[%s5365_s30 + $0x1c4] ss:$16 sps:$4 sm:$0xff]  }
 0x3e8   : > { %6552 = vst [vmem:[#allocation44_spill] sm:$0xff] %v5791_v53  ;;  %6561 = vst [vmem:[#allocation53_spill] sm:$0xff] %v5826_v52 }
 0x3ea   : > { %3169 = vmatpush1.bf16.msra.mxu0 %v5756_v54  ;;  %3255 = vmatpush1.bf16.msra.mxu1 %v5759_v55  ;;  %v5785_v55 = vld [vmem:[%s5365_s30 + $0x16c] ss:$16 sps:$4 sm:$0xff]   ;;  %v5788_v54 = vld [vmem:[%s5365_s30 + $0x160] ss:$16 sps:$4 sm:$0xff]  }
 0x3eb   : > { %3170 = vmatprep.subr.bf16.mxu0 %v5766_v56  ;;  %3256 = vmatprep.subr.bf16.mxu1 %v5769_v57  ;;  %6550 = vst [vmem:[#allocation42_spill] sm:$0xff] %v5785_v55  ;;  %6551 = vst [vmem:[#allocation43_spill] sm:$0xff] %v5788_v54  ;;  %v5804_v57 = vld [vmem:[%s5365_s30 + $0x180] ss:$16 sps:$4 sm:$0xff]   ;;  %v5807_v56 = vld [vmem:[%s5365_s30 + $0x188] ss:$16 sps:$4 sm:$0xff]  }
 0x3ec   : > { %6555 = vst [vmem:[#allocation47_spill] sm:$0xff] %v5804_v57  ;;  %6556 = vst [vmem:[#allocation48_spill] sm:$0xff] %v5807_v56 }
 0x3ee   : > { %3171 = vmatpush1.bf16.msra.mxu0 %v5772_v58  ;;  %3257 = vmatpush1.bf16.msra.mxu1 %v5775_v59  ;;  %v5798_v59 = vld [vmem:[%s5365_s30 + $0x184] ss:$16 sps:$4 sm:$0xff]   ;;  %v5801_v58 = vld [vmem:[%s5365_s30 + $0x18c] ss:$16 sps:$4 sm:$0xff]  }
 0x3ef   : > { %3172 = vmatprep.subr.bf16.mxu0 %v5782_v60  ;;  %3258 = vmatprep.subr.bf16.mxu1 %v5785_v55  ;;  %6553 = vst [vmem:[#allocation45_spill] sm:$0xff] %v5798_v59  ;;  %6554 = vst [vmem:[#allocation46_spill] sm:$0xff] %v5801_v58  ;;  %v5820_v55 = vld [vmem:[%s5365_s30 + $0x1a8] ss:$16 sps:$4 sm:$0xff]   ;;  %v5823_v60 = vld [vmem:[%s5365_s30 + $0x1ac] ss:$16 sps:$4 sm:$0xff]  }
 0x3f0   : > { %6559 = vst [vmem:[#allocation51_spill] sm:$0xff] %v5820_v55  ;;  %6560 = vst [vmem:[#allocation52_spill] sm:$0xff] %v5823_v60 }
 0x3f2   : > { %3173 = vmatpush1.bf16.msra.mxu0 %v5788_v54  ;;  %3259 = vmatpush1.bf16.msra.mxu1 %v5791_v53  ;;  %v5814_v53 = vld [vmem:[%s5365_s30 + $0x1a0] ss:$16 sps:$4 sm:$0xff]   ;;  %v5817_v54 = vld [vmem:[%s5365_s30 + $0x1a4] ss:$16 sps:$4 sm:$0xff]  }
 0x3f3   : > { %3174 = vmatprep.subr.bf16.mxu0 %v5798_v59  ;;  %3260 = vmatprep.subr.bf16.mxu1 %v5801_v58  ;;  %6557 = vst [vmem:[#allocation49_spill] sm:$0xff] %v5814_v53  ;;  %6558 = vst [vmem:[#allocation50_spill] sm:$0xff] %v5817_v54  ;;  %v5830_v58 = vld [vmem:[%s5365_s30 + $0x1cc] ss:$16 sps:$4 sm:$0xff]  }
 0x3f4   : > { %6562 = vst [vmem:[#allocation54_spill] sm:$0xff] %v5830_v58  ;;  %v5847_v59 = vld [vmem:[%s5365_s30 + $0x1ec] ss:$16 sps:$4 sm:$0xff]  }
 0x3f5   : > { %6567 = vst [vmem:[#allocation58_spill] sm:$0xff] %v5847_v59 }
 0x3f6   : > { %3175 = vmatpush1.bf16.msra.mxu0 %v5804_v57  ;;  %3261 = vmatpush1.bf16.msra.mxu1 %v5807_v56  ;;  %v5836_v56 = vld [vmem:[%s5365_s30 + $0x1c0] ss:$16 sps:$4 sm:$0xff]   ;;  %v5839_v57 = vld [vmem:[%s5365_s30 + $0x1c8] ss:$16 sps:$4 sm:$0xff]  }
 0x3f7   : > { %3176 = vmatprep.subr.bf16.mxu0 %v5817_v54  ;;  %3262 = vmatprep.subr.bf16.mxu1 %v5823_v60  ;;  %6563 = vst [vmem:[#allocation55_spill] sm:$0xff] %v5836_v56  ;;  %6564 = vst [vmem:[#allocation56_spill] sm:$0xff] %v5839_v57  ;;  %v5844_v54 = vld [vmem:[%s5365_s30 + $0x1e4] ss:$16 sps:$4 sm:$0xff]  }
 0x3f8   : > { %6566 = vst [vmem:[#allocation57_spill] sm:$0xff] %v5844_v54 }
 0x3fa   : > { %3177 = vmatpush1.bf16.msra.mxu0 %v5814_v53  ;;  %3263 = vmatpush1.bf16.msra.mxu1 %v5820_v55  ;;  %v5852_v53 = vld [vmem:[%s5365_s30 + $0x1e0] ss:$16 sps:$4 sm:$0xff]   ;;  %v5855_v55 = vld [vmem:[%s5365_s30 + $0x1e8] ss:$16 sps:$4 sm:$0xff]  }
 0x3fb   : > { %3178 = vmatprep.subr.bf16.mxu0 %v5826_v52  ;;  %3264 = vmatprep.subr.bf16.mxu1 %v5830_v58  ;;  %6568 = vst [vmem:[#allocation59_spill] sm:$0xff] %v5852_v53  ;;  %6569 = vst [vmem:[#allocation60_spill] sm:$0xff] %v5855_v55  ;;  %v5862_v58 = vld [vmem:[%s5365_s30 + $0x204] ss:$16 sps:$4 sm:$0xff]   ;;  %v5865_v52 = vld [vmem:[%s5365_s30 + $0x20c] ss:$16 sps:$4 sm:$0xff]  }
 0x3fc   : > { %6570 = vst [vmem:[#allocation61_spill] sm:$0xff] %v5862_v58  ;;  %6571 = vst [vmem:[#allocation62_spill] sm:$0xff] %v5865_v52 }
 0x3fe   : > { %3179 = vmatpush1.bf16.msra.mxu0 %v5836_v56  ;;  %3265 = vmatpush1.bf16.msra.mxu1 %v5839_v57  ;;  %v1872_v57 = vld [vmem:[%s6565_s19] sm:$0xf]  ;;  %v5871_v56 = vsub.s32 2, %v5414_v30 }
 0x3ff   : > { %3180 = vmatprep.subr.bf16.mxu0 %v5844_v54  ;;  %3266 = vmatprep.subr.bf16.mxu1 %v5847_v59  ;;  %v5874_v54 = vsub.s32 3, %v5414_v30  ;;  %v1877_v59 = vrot.slane %v1872_v57, %v5417_v31 }
 0x400   : > { %6572 = vst [vmem:[#allocation63_spill] sm:$0xff] %v5871_v56 }
 0x401   : > { %6573 = vst [vmem:[#allocation64_spill] sm:$0xff] %v5874_v54  ;;  %v1889_v60 = vrot.slane %v1872_v57, %v5874_v54 }
 0x402   : > { %3181 = vmatpush1.bf16.msra.mxu0 %v5852_v53  ;;  %3267 = vmatpush1.bf16.msra.mxu1 %v5855_v55  ;;  %v1885_v53 = vrot.slane %v1872_v57, %v5871_v56  ;;  %v1881_v55 = vrot.slane %v1872_v57, %v5421_v33 }
 0x403   : > { %3193 = vmatprep.subr.bf16.mxu0 %v5862_v58  ;;  %3279 = vmatprep.subr.bf16.mxu1 %v5865_v52 }
 0x498   : > { %v2248_v51 = vpop.f32.mrb[12].mxu0  ;;  %v2291_v28 = vpop.f32.mrb[12].mxu1 }
 0x499   : > { %v2249_v58 = vadd.f32 %v2248_v51, %v1877_v59  ;;  %v2292_v50 = vadd.f32 %v2291_v28, %v1885_v53  ;;  %v2250_v52 = vpop.f32.mrb[13].mxu0  ;;  %v2293_v49 = vpop.f32.mrb[13].mxu1 }
 0x49a   : > { %v2251_v48 = vadd.f32 %v2250_v52, %v1881_v55  ;;  %v2294_v47 = vadd.f32 %v2293_v49, %v1889_v60  ;;  %v2252_v46 = vpop.f32.mrb[14].mxu0  ;;  %v2295_v45 = vpop.f32.mrb[14].mxu1  ;;  %v1193_v52 = vsub.s32 5, %v5414_v30 }
 0x49b   : > { %v4356_v44 = vmul.f32 -1.442695, %v2249_v58  ;;  %v4358_v43 = vmul.f32 -1.442695, %v2292_v50  ;;  %v2253_v42 = vadd.f32 %v2252_v46, %v1877_v59  ;;  %v2296_v41 = vadd.f32 %v2295_v45, %v1885_v53  ;;  %v2254_v38 = vpop.f32.mrb[15].mxu0  ;;  %v2297_v37 = vpop.f32.mrb[15].mxu1 }
 0x49c   : > { %v4357_v36 = vmul.f32 -1.442695, %v2251_v48  ;;  %v4359_v35 = vmul.f32 -1.442695, %v2294_v47  ;;  %v2255_v18 = vadd.f32 %v2254_v38, %v1881_v55  ;;  %v2298_v57 = vadd.f32 %v2297_v37, %v1889_v60 }
 0x49d   : > { %5089 = vpow2.f32 %v4356_v44  ;;  %v4360_v17 = vmul.f32 -1.442695, %v2253_v42  ;;  %v4362_v28 = vmul.f32 -1.442695, %v2296_v41  ;;  %v1189_v41 = vsub.s32 4, %v5414_v30 }
 0x49e   : > { %5091 = vpow2.f32 %v4358_v43  ;;  %v4361_v51 = vmul.f32 -1.442695, %v2255_v18  ;;  %v4363_v49 = vmul.f32 -1.442695, %v2298_v57  ;;  %v1201_v58 = vsub.s32 7, %v5414_v30 }
 0x49f   : > { %5093 = vpow2.f32 %v4357_v36  ;;  %v1169_v36 = vld [vmem:[%s6574_s28] sm:$0xff] }
 0x4a0   : > { %5095 = vpow2.f32 %v4359_v35  ;;  %v1174_v60 = vrot.slane %v1169_v36, %v5417_v31  ;;  %v1190_v57 = vrot.slane %v1169_v36, %v1189_v41  ;;  %v6074_v31 = vld [vmem:[%s5365_s30 + $0x340] ss:$16 sps:$4 sm:$0xff]  }
 0x4a1   : > { %5097 = vpow2.f32 %v4360_v17  ;;  %v1197_v17 = vsub.s32 6, %v5414_v30  ;;  %6583 = vst [vmem:[#allocation73_spill] sm:$0xff] %v6074_v31 }
 0x4a2   : > { %5099 = vpow2.f32 %v4362_v28  ;;  %v1409_v30 = vadd.f32 %v5528_v19, %v1174_v60 }
 0x4a3   : > { %5101 = vpow2.f32 %v4361_v51  ;;  %v1182_v51 = vrot.slane %v1169_v36, %v5871_v56  ;;  %v6069_v56 = vld [vmem:[%s5365_s30 + $0x34c] ss:$16 sps:$4 sm:$0xff]  }
 0x4a4   : > { %5103 = vpow2.f32 %v4363_v49  ;;  %v1198_v49 = vrot.slane %v1169_v36, %v1197_v17  ;;  %6582 = vst [vmem:[#allocation72_spill] sm:$0xff] %v6069_v56 }
 0x4a7   : > { %v5090_v45 = vpop.eup %5089 }
 0x4a8   : > { %v5092_v46 = vpop.eup %5091  ;;  %v2324_v50 = vadd.f32 1.0, %v5090_v45  ;;  %v1178_v45 = vrot.slane %v1169_v36, %v5421_v33  ;;  %v6066_v33 = vld [vmem:[%s5365_s30 + $0x344] ss:$16 sps:$4 sm:$0xff]  }
 0x4a9   : > { %v5094_v48 = vpop.eup %5093  ;;  %v2326_v47 = vadd.f32 1.0, %v5092_v46  ;;  %v1194_v46 = vrot.slane %v1169_v36, %v1193_v52  ;;  %6581 = vst [vmem:[#allocation71_spill] sm:$0xff] %v6066_v33 }
 0x4aa   : > { %v5096_v38 = vpop.eup %5095  ;;  %5105 = vrcp.f32 %v2324_v50  ;;  %v2325_v37 = vadd.f32 1.0, %v5094_v48  ;;  %v1186_v50 = vrot.slane %v1169_v36, %v5874_v54  ;;  %v1202_v48 = vrot.slane %v1169_v36, %v1201_v58  ;;  %v6061_v54 = vld [vmem:[%s5365_s30 + $0x328] ss:$16 sps:$4 sm:$0xff]  }
 0x4ab   : > { %v5098_v42 = vpop.eup %5097  ;;  %5107 = vrcp.f32 %v2326_v47  ;;  %v2327_v18 = vadd.f32 1.0, %v5096_v38  ;;  %v1495_v47 = vadd.f32 %v5544_v27, %v1190_v57  ;;  %6580 = vst [vmem:[#allocation70_spill] sm:$0xff] %v6061_v54 }
 0x4ac   : > { %v5100_v35 = vpop.eup %5099  ;;  %5109 = vrcp.f32 %v2325_v37  ;;  %v2328_v43 = vadd.f32 1.0, %v5098_v42  ;;  %v1452_v37 = vadd.f32 %v5536_v23, %v1182_v51  ;;  %v1538_v42 = vadd.f32 %v5582_v7, %v1198_v49 }
 0x4ad   : > { %v5102_v44 = vpop.eup %5101  ;;  %5111 = vrcp.f32 %v2327_v18  ;;  %v2330_v53 = vadd.f32 1.0, %v5100_v35  ;;  %v1411_v18 = vadd.f32 %v5530_v20, %v1178_v45  ;;  %v1497_v35 = vadd.f32 %v5546_v29, %v1194_v46 }
 0x4ae   : > { %v5104_v55 = vpop.eup %5103  ;;  %5113 = vrcp.f32 %v2328_v43  ;;  %v2329_v59 = vadd.f32 1.0, %v5102_v44  ;;  %v1454_v52 = vadd.f32 %v5538_v24, %v1186_v50  ;;  %v1540_v36 = vadd.f32 %v5584_v8, %v1202_v48 }
 0x4af   : > { %5115 = vrcp.f32 %v2330_v53  ;;  %v2331_v28 = vadd.f32 1.0, %v5104_v55  ;;  %v1413_v55 = vadd.f32 %v5532_v21, %v1174_v60  ;;  %v1499_v23 = vadd.f32 %v5548_v32, %v1190_v57 }
 0x4b0   : > { %5117 = vrcp.f32 %v2329_v59  ;;  %v1456_v20 = vadd.f32 %v5540_v25, %v1182_v51  ;;  %v1542_v29 = vadd.f32 %v5586_v9, %v1198_v49  ;;  %v1415_v24 = vadd.f32 %v5534_v22, %v1178_v45 }
 0x4b1   : > { %5119 = vrcp.f32 %v2331_v28  ;;  %v1501_v8 = vadd.f32 %v5550_v34, %v1194_v46  ;;  %v1458_v32 = vadd.f32 %v5542_v26, %v1186_v50  ;;  %v1544_v60 = vadd.f32 %v5588_v10, %v1202_v48  ;;  %v5912_v10 = vld [vmem:[%s5365_s30 + $0x200] ss:$16 sps:$4 sm:$0xff]   ;;  %v5915_v50 = vld [vmem:[%s5365_s30 + $0x208] ss:$16 sps:$4 sm:$0xff]  }
 0x4b4   : > { %v5106_v38 = vpop.eup %5105 }
 0x4b5   : > { %v5108_v41 = vpop.eup %5107  ;;  %v2348_v17 = vmul.f32 %v5106_v38, %v1409_v30  ;;  %v3346_v43 = vmul.f32 %v5106_v38, %v1495_v47 }
 0x4b6   : > { %v5110_v44 = vpop.eup %5109  ;;  %v2350_v19 = vmul.f32 %v5108_v41, %v1452_v37  ;;  %v3348_v53 = vmul.f32 %v5108_v41, %v1538_v42 }
 0x4b7   : > { %v5112_v27 = vpop.eup %5111  ;;  %v2349_v7 = vmul.f32 %v5110_v44, %v1411_v18  ;;  %v3347_v58 = vmul.f32 %v5110_v44, %v1497_v35  ;;  %v5930_v44 = vld [vmem:[%s5365_s30 + $0x220] ss:$16 sps:$4 sm:$0xff]  }
 0x4b8   : > { %v5114_v59 = vpop.eup %5113  ;;  %v2351_v28 = vmul.f32 %v5112_v27, %v1454_v52  ;;  %v3349_v30 = vmul.f32 %v5112_v27, %v1540_v36  ;;  %v5933_v52 = vld [vmem:[%s5365_s30 + $0x228] ss:$16 sps:$4 sm:$0xff]   ;;  %v5936_v36 = vld [vmem:[%s5365_s30 + $0x244] ss:$16 sps:$4 sm:$0xff]  }
 0x4b9   : > { %v5116_v47 = vpop.eup %5115  ;;  %v2352_v38 = vmul.f32 %v5114_v59, %v1413_v55  ;;  %v3350_v37 = vmul.f32 %v5114_v59, %v1499_v23  ;;  %v5949_v27 = vld [vmem:[%s5365_s30 + $0x248] ss:$16 sps:$4 sm:$0xff]   ;;  %v5954_v55 = vld [vmem:[%s5365_s30 + $0x264] ss:$16 sps:$4 sm:$0xff]   ;;  %v5957_v23 = vld [vmem:[%s5365_s30 + $0x26c] ss:$16 sps:$4 sm:$0xff]  }
 0x4ba   : > { %v5118_v21 = vpop.eup %5117  ;;  %v2354_v57 = vmul.f32 %v5116_v47, %v1456_v20  ;;  %v3352_v25 = vmul.f32 %v5116_v47, %v1542_v29  ;;  %v5970_v59 = vld [vmem:[%s5365_s30 + $0x284] ss:$16 sps:$4 sm:$0xff]   ;;  %v5973_v20 = vld [vmem:[%s5365_s30 + $0x28c] ss:$16 sps:$4 sm:$0xff]   ;;  %v5978_v29 = vld [vmem:[%s5365_s30 + $0x280] ss:$16 sps:$4 sm:$0xff]  }
 0x4bb   : > { %v5120_v51 = vpop.eup %5119  ;;  %v2353_v9 = vmul.f32 %v5118_v21, %v1415_v24  ;;  %v2356_v49 = vpack.c.bf16 %v2352_v38, %v2348_v17  ;;  %v3351_v42 = vmul.f32 %v5118_v21, %v1501_v8  ;;  %v5905_v22 = vpack.c.bf16 %v3350_v37, %v3346_v43  ;;  %v5922_v17 = vld [vmem:[%s5365_s30 + $0x224] ss:$16 sps:$4 sm:$0xff]   ;;  %v5925_v43 = vld [vmem:[%s5365_s30 + $0x22c] ss:$16 sps:$4 sm:$0xff]   ;;  %v5994_v24 = vld [vmem:[%s5365_s30 + $0x2a0] ss:$16 sps:$4 sm:$0xff]  }
 0x4bc   : > { %v2355_v34 = vmul.f32 %v5120_v51, %v1458_v32  ;;  %v5907_v45 = vpack.c.bf16 %v2354_v57, %v2350_v19  ;;  %v3353_v46 = vmul.f32 %v5120_v51, %v1544_v60  ;;  %v5909_v41 = vpack.c.bf16 %v3352_v25, %v3348_v53  ;;  %v5939_v19 = vld [vmem:[%s5365_s30 + $0x24c] ss:$16 sps:$4 sm:$0xff]   ;;  %v5946_v53 = vld [vmem:[%s5365_s30 + $0x240] ss:$16 sps:$4 sm:$0xff]   ;;  %v5997_v8 = vld [vmem:[%s5365_s30 + $0x2a8] ss:$16 sps:$4 sm:$0xff]  }
 0x4bd   : > { %v2357_v26 = vpack.c.bf16 %v2353_v9, %v2349_v7  ;;  %v5917_v48 = vpack.c.bf16 %v3351_v42, %v3347_v58  ;;  %v5962_v7 = vld [vmem:[%s5365_s30 + $0x260] ss:$16 sps:$4 sm:$0xff]   ;;  %v5965_v58 = vld [vmem:[%s5365_s30 + $0x268] ss:$16 sps:$4 sm:$0xff]   ;;  %v5989_v47 = vld [vmem:[%s5365_s30 + $0x2ac] ss:$16 sps:$4 sm:$0xff]  }
 0x4be   : > { %6575 = vst [vmem:[#allocation65_spill] sm:$0xff] %v5909_v41  ;;  %v2359_v18 = vpack.c.bf16 %v2355_v34, %v2351_v28  ;;  %v5919_v35 = vpack.c.bf16 %v3353_v46, %v3349_v30  ;;  %v5981_v28 = vld [vmem:[%s5365_s30 + $0x288] ss:$16 sps:$4 sm:$0xff]   ;;  %v5986_v30 = vld [vmem:[%s5365_s30 + $0x2a4] ss:$16 sps:$4 sm:$0xff]  }
 0x4bf   : > { %3182 = vmatprep.mubr.bf16.mxu0 %v2357_v26  ;;  %3268 = vmatprep.mubr.bf16.mxu1 %v2357_v26  ;;  %v6002_v38 = vld [vmem:[%s5365_s30 + $0x2c4] ss:$16 sps:$4 sm:$0xff]   ;;  %v6005_v37 = vld [vmem:[%s5365_s30 + $0x2cc] ss:$16 sps:$4 sm:$0xff]   ;;  %v6010_v21 = vld [vmem:[%s5365_s30 + $0x2c0] ss:$16 sps:$4 sm:$0xff]  }
 0x4c0   : > { %3183 = vmatmul.mubr.bf16.vlgmr.msra.gmra.mrb[16].mxu0 %v2356_v49  ;;  %3269 = vmatmul.mubr.bf16.vlgmr.msra.gmra.mrb[16].mxu1 %v2356_v49  ;;  %v6013_v32 = vld [vmem:[%s5365_s30 + $0x2c8] ss:$16 sps:$4 sm:$0xff]   ;;  %v6018_v60 = vld [vmem:[%s5365_s30 + $0x2e4] ss:$16 sps:$4 sm:$0xff]   ;;  %v6021_v57 = vld [vmem:[%s5365_s30 + $0x2ec] ss:$16 sps:$4 sm:$0xff]  }
 0x4c1   : > { %3194 = vmatpush1.bf16.msra.mxu0 %v5912_v10  ;;  %3280 = vmatpush1.bf16.msra.mxu1 %v5915_v50  ;;  %v6026_v25 = vld [vmem:[%s5365_s30 + $0x2e0] ss:$16 sps:$4 sm:$0xff]   ;;  %v6029_v51 = vld [vmem:[%s5365_s30 + $0x2e8] ss:$16 sps:$4 sm:$0xff]   ;;  %v6034_v9 = vld [vmem:[%s5365_s30 + $0x304] ss:$16 sps:$4 sm:$0xff]  }
 0x4c2   : > { %3225 = vmatprep.mubr.bf16.mxu0 %v2359_v18  ;;  %3311 = vmatprep.mubr.bf16.mxu1 %v2359_v18  ;;  %v6037_v49 = vld [vmem:[%s5365_s30 + $0x30c] ss:$16 sps:$4 sm:$0xff]   ;;  %v6042_v42 = vld [vmem:[%s5365_s30 + $0x300] ss:$16 sps:$4 sm:$0xff]   ;;  %v6045_v34 = vld [vmem:[%s5365_s30 + $0x308] ss:$16 sps:$4 sm:$0xff]  }
 0x4c3   : > { %3195 = vmatprep.subr.bf16.mxu0 %v5922_v17  ;;  %3281 = vmatprep.subr.bf16.mxu1 %v5925_v43  ;;  %6576 = vst [vmem:[#allocation66_spill] sm:$0xff] %v6045_v34  ;;  %v6050_v46 = vld [vmem:[%s5365_s30 + $0x324] ss:$16 sps:$4 sm:$0xff]   ;;  %v6053_v26 = vld [vmem:[%s5365_s30 + $0x32c] ss:$16 sps:$4 sm:$0xff]  }
 0x4c4   : > { %6577 = vst [vmem:[#allocation67_spill] sm:$0xff] %v6050_v46  ;;  %6578 = vst [vmem:[#allocation68_spill] sm:$0xff] %v6053_v26  ;;  %v6058_v18 = vld [vmem:[%s5365_s30 + $0x320] ss:$16 sps:$4 sm:$0xff]   ;;  %v6077_v41 = vld [vmem:[%s5365_s30 + $0x348] ss:$16 sps:$4 sm:$0xff]  }
 0x4c5   : > { %3196 = vmatpush1.bf16.msra.mxu0 %v5930_v44  ;;  %3282 = vmatpush1.bf16.msra.mxu1 %v5933_v52  ;;  %6579 = vst [vmem:[#allocation69_spill] sm:$0xff] %v6058_v18  ;;  %6584 = vst [vmem:[#allocation74_spill] sm:$0xff] %v6077_v41 }
 0x4c6   : > { %3197 = vmatprep.subr.bf16.mxu0 %v5936_v36  ;;  %3283 = vmatprep.subr.bf16.mxu1 %v5939_v19 }
 0x4c9   : > { %3198 = vmatpush1.bf16.msra.mxu0 %v5946_v53  ;;  %3284 = vmatpush1.bf16.msra.mxu1 %v5949_v27 }
 0x4ca   : > { %3199 = vmatprep.subr.bf16.mxu0 %v5954_v55  ;;  %3285 = vmatprep.subr.bf16.mxu1 %v5957_v23 }
 0x4cd   : > { %3200 = vmatpush1.bf16.msra.mxu0 %v5962_v7  ;;  %3286 = vmatpush1.bf16.msra.mxu1 %v5965_v58 }
 0x4ce   : > { %3201 = vmatprep.subr.bf16.mxu0 %v5970_v59  ;;  %3287 = vmatprep.subr.bf16.mxu1 %v5973_v20 }
 0x4d1   : > { %3202 = vmatpush1.bf16.msra.mxu0 %v5978_v29  ;;  %3288 = vmatpush1.bf16.msra.mxu1 %v5981_v28 }
 0x4d2   : > { %3203 = vmatprep.subr.bf16.mxu0 %v5986_v30  ;;  %3289 = vmatprep.subr.bf16.mxu1 %v5989_v47 }
 0x4d5   : > { %3204 = vmatpush1.bf16.msra.mxu0 %v5994_v24  ;;  %3290 = vmatpush1.bf16.msra.mxu1 %v5997_v8 }
 0x4d6   : > { %3205 = vmatprep.subr.bf16.mxu0 %v6002_v38  ;;  %3291 = vmatprep.subr.bf16.mxu1 %v6005_v37 }
 0x4d9   : > { %3206 = vmatpush1.bf16.msra.mxu0 %v6010_v21  ;;  %3292 = vmatpush1.bf16.msra.mxu1 %v6013_v32 }
 0x4da   : > { %3207 = vmatprep.subr.bf16.mxu0 %v6018_v60  ;;  %3293 = vmatprep.subr.bf16.mxu1 %v6021_v57 }
 0x4dd   : > { %3208 = vmatpush1.bf16.msra.mxu0 %v6026_v25  ;;  %3294 = vmatpush1.bf16.msra.mxu1 %v6029_v51 }
 0x4de   : > { %3209 = vmatprep.subr.bf16.mxu0 %v6034_v9  ;;  %3295 = vmatprep.subr.bf16.mxu1 %v6037_v49 }
 0x4e1   : > { %3210 = vmatpush1.bf16.msra.mxu0 %v6042_v42  ;;  %3296 = vmatpush1.bf16.msra.mxu1 %v6045_v34  ;;  %v6146_v34 = vld [vmem:[%s5365_s30 + $0x3e4] ss:$16 sps:$4 sm:$0xff]  }
 0x4e2   : > { %3211 = vmatprep.subr.bf16.mxu0 %v6050_v46  ;;  %3297 = vmatprep.subr.bf16.mxu1 %v6053_v26  ;;  %v6082_v26 = vld [vmem:[%s5365_s30 + $0x364] ss:$16 sps:$4 sm:$0xff]   ;;  %v6085_v46 = vld [vmem:[%s5365_s30 + $0x36c] ss:$16 sps:$4 sm:$0xff]  }
 0x4e3   : > { %6585 = vst [vmem:[#allocation75_spill] sm:$0xff] %v6082_v26  ;;  %6586 = vst [vmem:[#allocation76_spill] sm:$0xff] %v6085_v46 }
 0x4e5   : > { %3212 = vmatpush1.bf16.msra.mxu0 %v6058_v18  ;;  %3298 = vmatpush1.bf16.msra.mxu1 %v6061_v54  ;;  %v6090_v54 = vld [vmem:[%s5365_s30 + $0x360] ss:$16 sps:$4 sm:$0xff]   ;;  %v6093_v18 = vld [vmem:[%s5365_s30 + $0x368] ss:$16 sps:$4 sm:$0xff]  }
 0x4e6   : > { %3213 = vmatprep.subr.bf16.mxu0 %v6066_v33  ;;  %3299 = vmatprep.subr.bf16.mxu1 %v6069_v56  ;;  %6587 = vst [vmem:[#allocation77_spill] sm:$0xff] %v6090_v54  ;;  %6588 = vst [vmem:[#allocation78_spill] sm:$0xff] %v6093_v18  ;;  %v6098_v56 = vld [vmem:[%s5365_s30 + $0x384] ss:$16 sps:$4 sm:$0xff]   ;;  %v6101_v33 = vld [vmem:[%s5365_s30 + $0x38c] ss:$16 sps:$4 sm:$0xff]  }
 0x4e7   : > { %6589 = vst [vmem:[#allocation79_spill] sm:$0xff] %v6098_v56  ;;  %6590 = vst [vmem:[#allocation80_spill] sm:$0xff] %v6101_v33 }
 0x4e9   : > { %3214 = vmatpush1.bf16.msra.mxu0 %v6074_v31  ;;  %3300 = vmatpush1.bf16.msra.mxu1 %v6077_v41  ;;  %v6106_v41 = vld [vmem:[%s5365_s30 + $0x380] ss:$16 sps:$4 sm:$0xff]   ;;  %v6109_v31 = vld [vmem:[%s5365_s30 + $0x388] ss:$16 sps:$4 sm:$0xff]  }
 0x4ea   : > { %3215 = vmatprep.subr.bf16.mxu0 %v6082_v26  ;;  %3301 = vmatprep.subr.bf16.mxu1 %v6085_v46  ;;  %6591 = vst [vmem:[#allocation81_spill] sm:$0xff] %v6106_v41  ;;  %6592 = vst [vmem:[#allocation82_spill] sm:$0xff] %v6109_v31  ;;  %v6114_v46 = vld [vmem:[%s5365_s30 + $0x3a4] ss:$16 sps:$4 sm:$0xff]   ;;  %v6117_v26 = vld [vmem:[%s5365_s30 + $0x3ac] ss:$16 sps:$4 sm:$0xff]  }
 0x4eb   : > { %6593 = vst [vmem:[#allocation83_spill] sm:$0xff] %v6114_v46  ;;  %6594 = vst [vmem:[#allocation84_spill] sm:$0xff] %v6117_v26 }
 0x4ed   : > { %3216 = vmatpush1.bf16.msra.mxu0 %v6090_v54  ;;  %3302 = vmatpush1.bf16.msra.mxu1 %v6093_v18  ;;  %v6122_v18 = vld [vmem:[%s5365_s30 + $0x3a0] ss:$16 sps:$4 sm:$0xff]   ;;  %v6125_v54 = vld [vmem:[%s5365_s30 + $0x3a8] ss:$16 sps:$4 sm:$0xff]  }
 0x4ee   : > { %3217 = vmatprep.subr.bf16.mxu0 %v6098_v56  ;;  %3303 = vmatprep.subr.bf16.mxu1 %v6101_v33  ;;  %6595 = vst [vmem:[#allocation85_spill] sm:$0xff] %v6122_v18  ;;  %v6130_v33 = vld [vmem:[%s5365_s30 + $0x3c4] ss:$16 sps:$4 sm:$0xff]   ;;  %v6133_v56 = vld [vmem:[%s5365_s30 + $0x3cc] ss:$16 sps:$4 sm:$0xff]  }
 0x4f1   : > { %3218 = vmatpush1.bf16.msra.mxu0 %v6106_v41  ;;  %3304 = vmatpush1.bf16.msra.mxu1 %v6109_v31  ;;  %v6138_v41 = vld [vmem:[%s5365_s30 + $0x3c0] ss:$16 sps:$4 sm:$0xff]   ;;  %v6141_v31 = vld [vmem:[%s5365_s30 + $0x3c8] ss:$16 sps:$4 sm:$0xff]  }
 0x4f2   : > { %3219 = vmatprep.subr.bf16.mxu0 %v6114_v46  ;;  %3305 = vmatprep.subr.bf16.mxu1 %v6117_v26  ;;  %v6149_v46 = vld [vmem:[%s5365_s30 + $0x3ec] ss:$16 sps:$4 sm:$0xff]   ;;  %v6154_v26 = vld [vmem:[%s5365_s30 + $0x3e0] ss:$16 sps:$4 sm:$0xff]  }
 0x4f5   : > { %3220 = vmatpush1.bf16.msra.mxu0 %v6122_v18  ;;  %3306 = vmatpush1.bf16.msra.mxu1 %v6125_v54  ;;  %v6157_v18 = vld [vmem:[%s5365_s30 + $0x3e8] ss:$16 sps:$4 sm:$0xff]  }
 0x4f6   : > { %3221 = vmatprep.subr.bf16.mxu0 %v6130_v33  ;;  %3307 = vmatprep.subr.bf16.mxu1 %v6133_v56 }
 0x4f9   : > { %3222 = vmatpush1.bf16.msra.mxu0 %v6138_v41  ;;  %3308 = vmatpush1.bf16.msra.mxu1 %v6141_v31 }
 0x4fa   : > { %3223 = vmatprep.subr.bf16.mxu0 %v6146_v34  ;;  %3309 = vmatprep.subr.bf16.mxu1 %v6149_v46 }
 0x4fd   : > { %3224 = vmatpush1.bf16.msra.mxu0 %v6154_v26  ;;  %3310 = vmatpush1.bf16.msra.mxu1 %v6157_v18 }
 0x4fe   : > { %3358 = vmatprep.subr.bf16.mxu0 %v5603_v39  ;;  %3444 = vmatprep.subr.bf16.mxu1 %v5606_v40  ;;  %v6596_v39 = vld [vmem:[#allocation15_spill] sm:$0xff]  ;;  %v6597_v40 = vld [vmem:[#allocation16_spill] sm:$0xff] }
 0x500   : > { %3226 = vmatmul.mubr.bf16.vlgmr.msra.gmra.mrb[16].mxu0 %v5907_v45  ;;  %3312 = vmatmul.mubr.bf16.vlgmr.msra.gmra.mrb[16].mxu1 %v5907_v45  ;;  %v6614_v45 = vld [vmem:[#allocation33_spill] sm:$0xff] }
 0x501   : > { %3359 = vmatpush1.bf16.msra.mxu0 %v5614_v61  ;;  %3390 = vmatprep.mubr.bf16.mxu0 %v5917_v48  ;;  %v6598_v61 = vld [vmem:[#allocation17_spill] sm:$0xff] }
 0x502   : > { %3445 = vmatpush1.bf16.msra.mxu1 %v5617_v62  ;;  %3476 = vmatprep.mubr.bf16.mxu1 %v5917_v48  ;;  %v6599_v62 = vld [vmem:[#allocation18_spill] sm:$0xff] }
 0x503   : > { %3360 = vmatprep.subr.bf16.mxu0 %v5620_v63  ;;  %3446 = vmatprep.subr.bf16.mxu1 %v5623_v0  ;;  %v6600_v63 = vld [vmem:[#allocation19_spill] sm:$0xff]  ;;  %v6601_v0 = vld [vmem:[#allocation20_spill] sm:$0xff]  ;;  %v6615_v48 = vld [vmem:[#allocation34_spill] sm:$0xff] }
 0x505   : > { %3361 = vmatpush1.bf16.msra.mxu0 %v5628_v1  ;;  %v6602_v1 = vld [vmem:[#allocation21_spill] sm:$0xff] }
 0x506   : > { %3447 = vmatpush1.bf16.msra.mxu1 %v5631_v2  ;;  %3362 = vmatprep.subr.bf16.mxu0 %v5636_v3  ;;  %v6603_v2 = vld [vmem:[#allocation22_spill] sm:$0xff]  ;;  %v6604_v3 = vld [vmem:[#allocation23_spill] sm:$0xff] }
 0x507   : > { %3448 = vmatprep.subr.bf16.mxu1 %v5639_v4  ;;  %v6605_v4 = vld [vmem:[#allocation24_spill] sm:$0xff] }
 0x509   : > { %3363 = vmatpush1.bf16.msra.mxu0 %v5644_v5  ;;  %v6606_v5 = vld [vmem:[#allocation25_spill] sm:$0xff] }
 0x50a   : > { %3449 = vmatpush1.bf16.msra.mxu1 %v5647_v6  ;;  %3364 = vmatprep.subr.bf16.mxu0 %v5652_v11  ;;  %v6607_v6 = vld [vmem:[#allocation26_spill] sm:$0xff]  ;;  %v6608_v11 = vld [vmem:[#allocation27_spill] sm:$0xff] }
 0x50b   : > { %3450 = vmatprep.subr.bf16.mxu1 %v5655_v12  ;;  %v6609_v12 = vld [vmem:[#allocation28_spill] sm:$0xff] }
 0x50d   : > { %3365 = vmatpush1.bf16.msra.mxu0 %v5660_v13  ;;  %v6610_v13 = vld [vmem:[#allocation29_spill] sm:$0xff] }
 0x50e   : > { %3451 = vmatpush1.bf16.msra.mxu1 %v5663_v14  ;;  %3366 = vmatprep.subr.bf16.mxu0 %v5668_v15  ;;  %v6611_v14 = vld [vmem:[#allocation30_spill] sm:$0xff]  ;;  %v6612_v15 = vld [vmem:[#allocation31_spill] sm:$0xff] }
 0x50f   : > { %3452 = vmatprep.subr.bf16.mxu1 %v5671_v16  ;;  %v6613_v16 = vld [vmem:[#allocation32_spill] sm:$0xff] }
 0x511   : > { %3367 = vmatpush1.bf16.msra.mxu0 %v6596_v39  ;;  %v6616_v39 = vld [vmem:[#allocation35_spill] sm:$0xff] }
 0x512   : > { %3453 = vmatpush1.bf16.msra.mxu1 %v6597_v40  ;;  %3368 = vmatprep.subr.bf16.mxu0 %v6598_v61  ;;  %v6617_v40 = vld [vmem:[#allocation36_spill] sm:$0xff]  ;;  %v6618_v61 = vld [vmem:[#allocation37_spill] sm:$0xff] }
 0x513   : > { %3454 = vmatprep.subr.bf16.mxu1 %v6599_v62  ;;  %v6619_v62 = vld [vmem:[#allocation38_spill] sm:$0xff] }
 0x515   : > { %3369 = vmatpush1.bf16.msra.mxu0 %v6600_v63  ;;  %v6620_v63 = vld [vmem:[#allocation39_spill] sm:$0xff] }
 0x516   : > { %3455 = vmatpush1.bf16.msra.mxu1 %v6601_v0  ;;  %3370 = vmatprep.subr.bf16.mxu0 %v6602_v1  ;;  %v6621_v0 = vld [vmem:[#allocation40_spill] sm:$0xff]  ;;  %v6622_v1 = vld [vmem:[#allocation41_spill] sm:$0xff] }
 0x517   : > { %3456 = vmatprep.subr.bf16.mxu1 %v6603_v2  ;;  %v6623_v2 = vld [vmem:[#allocation42_spill] sm:$0xff] }
 0x519   : > { %3371 = vmatpush1.bf16.msra.mxu0 %v6604_v3  ;;  %v6624_v3 = vld [vmem:[#allocation43_spill] sm:$0xff] }
 0x51a   : > { %3457 = vmatpush1.bf16.msra.mxu1 %v6605_v4  ;;  %3372 = vmatprep.subr.bf16.mxu0 %v6606_v5  ;;  %v6625_v4 = vld [vmem:[#allocation44_spill] sm:$0xff]  ;;  %v6626_v5 = vld [vmem:[#allocation45_spill] sm:$0xff] }
 0x51b   : > { %3458 = vmatprep.subr.bf16.mxu1 %v6607_v6  ;;  %v6627_v6 = vld [vmem:[#allocation46_spill] sm:$0xff] }
 0x51d   : > { %3373 = vmatpush1.bf16.msra.mxu0 %v6608_v11  ;;  %v6628_v11 = vld [vmem:[#allocation47_spill] sm:$0xff] }
 0x51e   : > { %3459 = vmatpush1.bf16.msra.mxu1 %v6609_v12  ;;  %3374 = vmatprep.subr.bf16.mxu0 %v6610_v13  ;;  %v6629_v12 = vld [vmem:[#allocation48_spill] sm:$0xff]  ;;  %v6630_v13 = vld [vmem:[#allocation50_spill] sm:$0xff] }
 0x51f   : > { %3460 = vmatprep.subr.bf16.mxu1 %v6611_v14  ;;  %v6631_v14 = vld [vmem:[#allocation52_spill] sm:$0xff] }
 0x521   : > { %3375 = vmatpush1.bf16.msra.mxu0 %v6612_v15  ;;  %v6632_v15 = vld [vmem:[#allocation49_spill] sm:$0xff] }
 0x522   : > { %3461 = vmatpush1.bf16.msra.mxu1 %v6613_v16  ;;  %3376 = vmatprep.subr.bf16.mxu0 %v6614_v45  ;;  %v6633_v16 = vld [vmem:[#allocation51_spill] sm:$0xff]  ;;  %v6634_v45 = vld [vmem:[#allocation53_spill] sm:$0xff] }
 0x523   : > { %3462 = vmatprep.subr.bf16.mxu1 %v6615_v48  ;;  %v6635_v48 = vld [vmem:[#allocation54_spill] sm:$0xff] }
 0x525   : > { %3377 = vmatpush1.bf16.msra.mxu0 %v6616_v39  ;;  %v6636_v39 = vld [vmem:[#allocation55_spill] sm:$0xff] }
 0x526   : > { %3463 = vmatpush1.bf16.msra.mxu1 %v6617_v40  ;;  %3378 = vmatprep.subr.bf16.mxu0 %v6618_v61  ;;  %v6637_v40 = vld [vmem:[#allocation56_spill] sm:$0xff]  ;;  %v6638_v61 = vld [vmem:[#allocation57_spill] sm:$0xff] }
 0x527   : > { %3464 = vmatprep.subr.bf16.mxu1 %v6619_v62  ;;  %v6639_v62 = vld [vmem:[#allocation58_spill] sm:$0xff] }
 0x529   : > { %3379 = vmatpush1.bf16.msra.mxu0 %v6620_v63  ;;  %v6640_v63 = vld [vmem:[#allocation59_spill] sm:$0xff] }
 0x52a   : > { %3465 = vmatpush1.bf16.msra.mxu1 %v6621_v0  ;;  %3380 = vmatprep.subr.bf16.mxu0 %v6622_v1  ;;  %v6641_v0 = vld [vmem:[#allocation60_spill] sm:$0xff]  ;;  %v6642_v1 = vld [vmem:[#allocation61_spill] sm:$0xff] }
 0x52b   : > { %3466 = vmatprep.subr.bf16.mxu1 %v6623_v2  ;;  %v6643_v2 = vld [vmem:[#allocation62_spill] sm:$0xff] }
 0x52d   : > { %3381 = vmatpush1.bf16.msra.mxu0 %v6624_v3  ;;  %v5076_v3 = vld [vmem:[%s5370_s26 + $0xa0] sm:$0xff]  }
 0x52e   : > { %3467 = vmatpush1.bf16.msra.mxu1 %v6625_v4  ;;  %3382 = vmatprep.subr.bf16.mxu0 %v6626_v5 }
 0x52f   : > { %3468 = vmatprep.subr.bf16.mxu1 %v6627_v6 }
 0x531   : > { %3383 = vmatpush1.bf16.msra.mxu0 %v6628_v11 }
 0x532   : > { %3469 = vmatpush1.bf16.msra.mxu1 %v6629_v12  ;;  %3384 = vmatprep.subr.bf16.mxu0 %v6630_v13  ;;  %v5077_v12 = vld [vmem:[%s5370_s26 + $0x68] sm:$0xff]  }
 0x533   : > { %3470 = vmatprep.subr.bf16.mxu1 %v6631_v14  ;;  %v5078_v13 = vld [vmem:[%s5370_s26 + $0xe8] sm:$0xff]  }
 0x534   : > { %v5079_v14 = vld [vmem:[%s5370_s26 + $0x28] sm:$0xff]  }
 0x535   : > { %3385 = vmatpush1.bf16.msra.mxu0 %v6632_v15  ;;  %v5080_v15 = vld [vmem:[%s5370_s26 + $0xa8] sm:$0xff]  }
 0x536   : > { %3471 = vmatpush1.bf16.msra.mxu1 %v6633_v16  ;;  %3386 = vmatprep.subr.bf16.mxu0 %v6634_v45  ;;  %v5081_v16 = vld [vmem:[%s5370_s26 + $0x70] sm:$0xff]  }
 0x537   : > { %3472 = vmatprep.subr.bf16.mxu1 %v6635_v48  ;;  %v5082_v45 = vld [vmem:[%s5370_s26 + $0xf0] sm:$0xff]  }
 0x538   : > { %v5083_v48 = vld [vmem:[%s5370_s26 + $0x30] sm:$0xff]  }
 0x539   : > { %3387 = vmatpush1.bf16.msra.mxu0 %v6636_v39  ;;  %v5084_v39 = vld [vmem:[%s5370_s26 + $0xb0] sm:$0xff]  }
 0x53a   : > { %3473 = vmatpush1.bf16.msra.mxu1 %v6637_v40  ;;  %3388 = vmatprep.subr.bf16.mxu0 %v6638_v61  ;;  %v5085_v40 = vld [vmem:[%s5370_s26 + $0x78] sm:$0xff]  }
 0x53b   : > { %3474 = vmatprep.subr.bf16.mxu1 %v6639_v62  ;;  %v5086_v61 = vld [vmem:[%s5370_s26 + $0xf8] sm:$0xff]  }
 0x53c   : > { %v5087_v62 = vld [vmem:[%s5370_s26 + $0x38] sm:$0xff]  }
 0x53d   : > { %3389 = vmatpush1.bf16.msra.mxu0 %v6640_v63  ;;  %v5088_v63 = vld [vmem:[%s5370_s26 + $0xb8] sm:$0xff]  }
 0x53e   : > { %3475 = vmatpush1.bf16.msra.mxu1 %v6641_v0  ;;  %3401 = vmatprep.subr.bf16.mxu0 %v6642_v1  ;;  %v2488_v0 = vld [vmem:[%s5360_s6] sm:$0xf]  ;;  %v6665_v1 = vld [vmem:[#allocation13_spill] sm:$0xff] }
 0x53f   : > { %3487 = vmatprep.subr.bf16.mxu1 %v6643_v2  ;;  %v2493_v2 = vrot.slane %v2488_v0, %v6665_v1 }
 0x540   : > { %3391 = vmatmul.mubr.bf16.vlgmr.msra.gmra.mrb[20].mxu0 %v5905_v22 }
 0x541   : > { %3477 = vmatmul.mubr.bf16.vlgmr.msra.gmra.mrb[20].mxu1 %v5905_v22  ;;  %3402 = vmatpush1.bf16.msra.mxu0 %v5912_v10  ;;  %v6644_v22 = vld [vmem:[#allocation66_spill] sm:$0xff]  ;;  %v6645_v10 = vld [vmem:[#allocation67_spill] sm:$0xff] }
 0x542   : > { %3433 = vmatprep.mubr.bf16.mxu0 %v5919_v35  ;;  %3488 = vmatpush1.bf16.msra.mxu1 %v5915_v50  ;;  %v6646_v50 = vld [vmem:[#allocation68_spill] sm:$0xff] }
 0x543   : > { %3519 = vmatprep.mubr.bf16.mxu1 %v5919_v35  ;;  %3403 = vmatprep.subr.bf16.mxu0 %v5922_v17  ;;  %v6647_v35 = vld [vmem:[#allocation69_spill] sm:$0xff]  ;;  %v6648_v17 = vld [vmem:[#allocation70_spill] sm:$0xff] }
 0x544   : > { %3489 = vmatprep.subr.bf16.mxu1 %v5925_v43  ;;  %v6649_v43 = vld [vmem:[#allocation71_spill] sm:$0xff] }
 0x545   : > { %3404 = vmatpush1.bf16.msra.mxu0 %v5930_v44  ;;  %v6650_v44 = vld [vmem:[#allocation72_spill] sm:$0xff] }
 0x546   : > { %3490 = vmatpush1.bf16.msra.mxu1 %v5933_v52  ;;  %3405 = vmatprep.subr.bf16.mxu0 %v5936_v36  ;;  %v6651_v52 = vld [vmem:[#allocation73_spill] sm:$0xff]  ;;  %v6652_v36 = vld [vmem:[#allocation74_spill] sm:$0xff] }
 0x547   : > { %3491 = vmatprep.subr.bf16.mxu1 %v5939_v19  ;;  %v6653_v19 = vld [vmem:[#allocation75_spill] sm:$0xff] }
 0x549   : > { %3406 = vmatpush1.bf16.msra.mxu0 %v5946_v53  ;;  %v6654_v53 = vld [vmem:[#allocation76_spill] sm:$0xff] }
 0x54a   : > { %3492 = vmatpush1.bf16.msra.mxu1 %v5949_v27  ;;  %3407 = vmatprep.subr.bf16.mxu0 %v5954_v55  ;;  %v6655_v27 = vld [vmem:[#allocation77_spill] sm:$0xff]  ;;  %v6656_v55 = vld [vmem:[#allocation78_spill] sm:$0xff] }
 0x54b   : > { %3493 = vmatprep.subr.bf16.mxu1 %v5957_v23  ;;  %v6657_v23 = vld [vmem:[#allocation79_spill] sm:$0xff] }
 0x54d   : > { %3408 = vmatpush1.bf16.msra.mxu0 %v5962_v7  ;;  %v6658_v7 = vld [vmem:[#allocation80_spill] sm:$0xff] }
 0x54e   : > { %3494 = vmatpush1.bf16.msra.mxu1 %v5965_v58  ;;  %3409 = vmatprep.subr.bf16.mxu0 %v5970_v59  ;;  %v6659_v58 = vld [vmem:[#allocation81_spill] sm:$0xff]  ;;  %v6660_v59 = vld [vmem:[#allocation82_spill] sm:$0xff] }
 0x54f   : > { %3495 = vmatprep.subr.bf16.mxu1 %v5973_v20  ;;  %v6661_v20 = vld [vmem:[#allocation83_spill] sm:$0xff] }
 0x551   : > { %3410 = vmatpush1.bf16.msra.mxu0 %v5978_v29  ;;  %v6662_v29 = vld [vmem:[#allocation84_spill] sm:$0xff] }
 0x552   : > { %3496 = vmatpush1.bf16.msra.mxu1 %v5981_v28  ;;  %3411 = vmatprep.subr.bf16.mxu0 %v5986_v30  ;;  %v6663_v28 = vld [vmem:[#allocation85_spill] sm:$0xff]  ;;  %v5057_v30 = vld [vmem:[%s5370_s26 + $0x40] sm:$0xff]  }
 0x553   : > { %3497 = vmatprep.subr.bf16.mxu1 %v5989_v47  ;;  %v5058_v47 = vld [vmem:[%s5370_s26 + $0xc0] sm:$0xff]  }
 0x555   : > { %3412 = vmatpush1.bf16.msra.mxu0 %v5994_v24  ;;  %v5063_v24 = vld [vmem:[%s5370_s26 + $0x8] sm:$0xff]  }
 0x556   : > { %3498 = vmatpush1.bf16.msra.mxu1 %v5997_v8  ;;  %3413 = vmatprep.subr.bf16.mxu0 %v6002_v38  ;;  %v5064_v8 = vld [vmem:[%s5370_s26 + $0x88] sm:$0xff]   ;;  %v5065_v38 = vld [vmem:[%s5370_s26 + $0x50] sm:$0xff]  }
 0x557   : > { %3499 = vmatprep.subr.bf16.mxu1 %v6005_v37  ;;  %v5066_v37 = vld [vmem:[%s5370_s26 + $0xd0] sm:$0xff]  }
 0x559   : > { %3414 = vmatpush1.bf16.msra.mxu0 %v6010_v21  ;;  %v5067_v21 = vld [vmem:[%s5370_s26 + $0x10] sm:$0xff]  }
 0x55a   : > { %3500 = vmatpush1.bf16.msra.mxu1 %v6013_v32  ;;  %3415 = vmatprep.subr.bf16.mxu0 %v6018_v60  ;;  %v5068_v32 = vld [vmem:[%s5370_s26 + $0x90] sm:$0xff]   ;;  %v5069_v60 = vld [vmem:[%s5370_s26 + $0x58] sm:$0xff]  }
 0x55b   : > { %3501 = vmatprep.subr.bf16.mxu1 %v6021_v57  ;;  %v5070_v57 = vld [vmem:[%s5370_s26 + $0xd8] sm:$0xff]  }
 0x55d   : > { %3416 = vmatpush1.bf16.msra.mxu0 %v6026_v25  ;;  %v5071_v25 = vld [vmem:[%s5370_s26 + $0x18] sm:$0xff]  }
 0x55e   : > { %3502 = vmatpush1.bf16.msra.mxu1 %v6029_v51  ;;  %3417 = vmatprep.subr.bf16.mxu0 %v6034_v9  ;;  %v5072_v51 = vld [vmem:[%s5370_s26 + $0x98] sm:$0xff]  }
 0x55f   : > { %3503 = vmatprep.subr.bf16.mxu1 %v6037_v49 }
 0x561   : > { %3418 = vmatpush1.bf16.msra.mxu0 %v6042_v42  ;;  %v5073_v42 = vld [vmem:[%s5370_s26 + $0x60] sm:$0xff]  }
 0x562   : > { %3504 = vmatpush1.bf16.msra.mxu1 %v6644_v22  ;;  %3419 = vmatprep.subr.bf16.mxu0 %v6645_v10  ;;  %v6666_v22 = vld [vmem:[#allocation63_spill] sm:$0xff] }
 0x563   : > { %3505 = vmatprep.subr.bf16.mxu1 %v6646_v50  ;;  %v2501_v10 = vrot.slane %v2488_v0, %v6666_v22  ;;  %v6667_v50 = vld [vmem:[#allocation14_spill] sm:$0xff] }
 0x565   : > { %3420 = vmatpush1.bf16.msra.mxu0 %v6647_v35  ;;  %v6337_v35 = vrot.slane %v2488_v0, %v6667_v50 }
 0x566   : > { %3506 = vmatpush1.bf16.msra.mxu1 %v6648_v17  ;;  %3421 = vmatprep.subr.bf16.mxu0 %v6649_v43  ;;  %v6668_v17 = vld [vmem:[#allocation64_spill] sm:$0xff] }
 0x567   : > { %3507 = vmatprep.subr.bf16.mxu1 %v6650_v44  ;;  %v6340_v43 = vrot.slane %v2488_v0, %v6668_v17 }
 0x569   : > { %3422 = vmatpush1.bf16.msra.mxu0 %v6651_v52 }
 0x56a   : > { %3508 = vmatpush1.bf16.msra.mxu1 %v6652_v36  ;;  %3423 = vmatprep.subr.bf16.mxu0 %v6653_v19 }
 0x56b   : > { %3509 = vmatprep.subr.bf16.mxu1 %v6654_v53 }
 0x56d   : > { %3424 = vmatpush1.bf16.msra.mxu0 %v6655_v27 }
 0x56e   : > { %3510 = vmatpush1.bf16.msra.mxu1 %v6656_v55  ;;  %3425 = vmatprep.subr.bf16.mxu0 %v6657_v23 }
 0x56f   : > { %3511 = vmatprep.subr.bf16.mxu1 %v6658_v7 }
 0x571   : > { %3426 = vmatpush1.bf16.msra.mxu0 %v6659_v58 }
 0x572   : > { %3512 = vmatpush1.bf16.msra.mxu1 %v6660_v59  ;;  %3427 = vmatprep.subr.bf16.mxu0 %v6661_v20 }
 0x573   : > { %3513 = vmatprep.subr.bf16.mxu1 %v6662_v29 }
 0x575   : > { %3428 = vmatpush1.bf16.msra.mxu0 %v6663_v28 }
 0x576   : > { %3514 = vmatpush1.bf16.msra.mxu1 %v6125_v54  ;;  %3429 = vmatprep.subr.bf16.mxu0 %v6130_v33  ;;  %v5059_v54 = vld [vmem:[%s5370_s26] sm:$0xff]  }
 0x577   : > { %3515 = vmatprep.subr.bf16.mxu1 %v6133_v56  ;;  %v5060_v33 = vld [vmem:[%s5370_s26 + $0x80] sm:$0xff]   ;;  %v5061_v56 = vld [vmem:[%s5370_s26 + $0x48] sm:$0xff]  }
 0x579   : > { %3430 = vmatpush1.bf16.msra.mxu0 %v6138_v41  ;;  %v6664_v41 = vld [vmem:[#allocation65_spill] sm:$0xff] }
 0x57a   : > { %3516 = vmatpush1.bf16.msra.mxu1 %v6141_v31  ;;  %3431 = vmatprep.subr.bf16.mxu0 %v6146_v34  ;;  %v5062_v31 = vld [vmem:[%s5370_s26 + $0xc8] sm:$0xff]   ;;  %v5074_v34 = vld [vmem:[%s5370_s26 + $0xe0] sm:$0xff]  }
 0x57b   : > { %3517 = vmatprep.subr.bf16.mxu1 %v6149_v46 }
 0x57d   : > { %3432 = vmatpush1.bf16.msra.mxu0 %v6154_v26 }
 0x57e   : > { %3518 = vmatpush1.bf16.msra.mxu1 %v6157_v18  ;;  %4540 = vmatprep.subr.bf16.mxu0 %v5057_v30  ;;  %v5075_v18 = vld [vmem:[%s5370_s26 + $0x20] sm:$0xff]  }
 0x57f   : > { %4562 = vmatprep.subr.bf16.mxu1 %v5058_v47 }
 0x580   : > { %3434 = vmatmul.mubr.bf16.vlgmr.msra.gmra.mrb[20].mxu0 %v6664_v41 }
 0x581   : > { %3520 = vmatmul.mubr.bf16.vlgmr.msra.gmra.mrb[20].mxu1 %v6664_v41  ;;  %4541 = vmatpush3.bf16.msra.mxu0 %v5059_v54 }
 0x582   : > { %4563 = vmatpush3.bf16.msra.mxu1 %v5060_v33  ;;  %4542 = vmatprep.subr.bf16.mxu0 %v5061_v56 }
 0x583   : > { %4564 = vmatprep.subr.bf16.mxu1 %v5062_v31 }
 0x585   : > { %4543 = vmatpush3.bf16.msra.mxu0 %v5063_v24 }
 0x586   : > { %4565 = vmatpush3.bf16.msra.mxu1 %v5064_v8  ;;  %4544 = vmatprep.subr.bf16.mxu0 %v5065_v38 }
 0x587   : > { %4566 = vmatprep.subr.bf16.mxu1 %v5066_v37 }
 0x589   : > { %4545 = vmatpush3.bf16.msra.mxu0 %v5067_v21 }
 0x58a   : > { %4567 = vmatpush3.bf16.msra.mxu1 %v5068_v32  ;;  %4546 = vmatprep.subr.bf16.mxu0 %v5069_v60 }
 0x58b   : > { %4568 = vmatprep.subr.bf16.mxu1 %v5070_v57 }
 0x58d   : > { %4547 = vmatpush3.bf16.msra.mxu0 %v5071_v25 }
 0x58e   : > { %4569 = vmatpush3.bf16.msra.mxu1 %v5072_v51  ;;  %4548 = vmatprep.subr.bf16.mxu0 %v5073_v42 }
 0x58f   : > { %4570 = vmatprep.subr.bf16.mxu1 %v5074_v34 }
 0x591   : > { %4549 = vmatpush3.bf16.msra.mxu0 %v5075_v18 }
 0x592   : > { %4571 = vmatpush3.bf16.msra.mxu1 %v5076_v3  ;;  %4550 = vmatprep.subr.bf16.mxu0 %v5077_v12 }
 0x593   : > { %4572 = vmatprep.subr.bf16.mxu1 %v5078_v13 }
 0x595   : > { %4551 = vmatpush3.bf16.msra.mxu0 %v5079_v14 }
 0x596   : > { %4573 = vmatpush3.bf16.msra.mxu1 %v5080_v15  ;;  %4552 = vmatprep.subr.bf16.mxu0 %v5081_v16 }
 0x597   : > { %4574 = vmatprep.subr.bf16.mxu1 %v5082_v45 }
 0x599   : > { %4553 = vmatpush3.bf16.msra.mxu0 %v5083_v48 }
 0x59a   : > { %4575 = vmatpush3.bf16.msra.mxu1 %v5084_v39  ;;  %4554 = vmatprep.subr.bf16.mxu0 %v5085_v40 }
 0x59b   : > { %4576 = vmatprep.subr.bf16.mxu1 %v5086_v61 }
 0x59d   : > { %4555 = vmatpush3.bf16.msra.mxu0 %v5087_v62 }
 0x59e   : > { %4577 = vmatpush3.bf16.msra.mxu1 %v5088_v63 }
 0x5d3   : > { %v3227_v9 = vpop.f32.mrb[16].mxu0  ;;  %v3313_v49 = vpop.f32.mrb[16].mxu1 }
 0x5d4   : > { %v3229_v46 = vpop.f32.mrb[17].mxu0  ;;  %v3315_v26 = vpop.f32.mrb[17].mxu1  ;;  %v4620_v44 = vadd.f32 %v3227_v9, %v2493_v2  ;;  %v4624_v52 = vadd.f32 %v3313_v49, %v2501_v10 }
 0x5d5   : > { %v3231_v4 = vpop.f32.mrb[18].mxu0  ;;  %v3317_v5 = vpop.f32.mrb[18].mxu1  ;;  %v4621_v36 = vadd.f32 %v3229_v46, %v6337_v35  ;;  %v4625_v19 = vadd.f32 %v3315_v26, %v6340_v43 }
 0x5d6   : > { %v3233_v6 = vpop.f32.mrb[19].mxu0  ;;  %v3319_v11 = vpop.f32.mrb[19].mxu1  ;;  %vm3322_vm1 = vcmp.ge.f32.partialorder %v4620_v44, 0.0  ;;  %v3330_v53 = vmul.f32 0.01, %v4620_v44  ;;  %v4622_v7 = vadd.f32 %v3231_v4, %v2493_v2  ;;  %vm3324_vm2 = vcmp.ge.f32.partialorder %v4624_v52, 0.0 }
 0x5d7   : > { %v3332_v27 = vmul.f32 0.01, %v4624_v52  ;;  %v3331_v55 = vmul.f32 0.01, %v4621_v36  ;;  %v3333_v23 = vmul.f32 0.01, %v4625_v19  ;;  %v4626_v58 = vadd.f32 %v3317_v5, %v2501_v10 }
 0x5d8   : > { %vm3323_vm3 = vcmp.ge.f32.partialorder %v4621_v36, 0.0  ;;  %vm3325_vm4 = vcmp.ge.f32.partialorder %v4625_v19, 0.0  ;;  %v4623_v59 = vadd.f32 %v3233_v6, %v6337_v35  ;;  %v3338_v20 = vsel %vm3322_vm1, %v4620_v44, %v3330_v53 }
 0x5d9   : > { %v6346_v29 = vadd.f32 %v3319_v11, %v6340_v43  ;;  %v3340_v28 = vsel %vm3324_vm2, %v4624_v52, %v3332_v27  ;;  %v3339_v30 = vsel %vm3323_vm3, %v4621_v36, %v3331_v55  ;;  %v3341_v47 = vsel %vm3325_vm4, %v4625_v19, %v3333_v23 }
 0x5da   : > { %v3334_v54 = vmul.f32 0.01, %v4622_v7  ;;  %vm3326_vm5 = vcmp.ge.f32.partialorder %v4622_v7, 0.0  ;;  %vm3328_vm6 = vcmp.ge.f32.partialorder %v4626_v58, 0.0  ;;  %v3336_v56 = vmul.f32 0.01, %v4626_v58 }
 0x5db   : > { %vm3327_vm7 = vcmp.ge.f32.partialorder %v4623_v59, 0.0  ;;  %v3335_v8 = vmul.f32 0.01, %v4623_v59  ;;  %vm3329_vm8 = vcmp.ge.f32.partialorder %v6346_v29, 0.0  ;;  %v3337_v48 = vmul.f32 0.01, %v6346_v29 }
 0x5dc   : > { %v3342_v14 = vsel %vm3326_vm5, %v4622_v7, %v3334_v54  ;;  %v3344_v61 = vsel %vm3328_vm6, %v4626_v58, %v3336_v56 }
 0x5dd   : > { %v3343_v0 = vsel %vm3327_vm7, %v4623_v59, %v3335_v8  ;;  %v3345_v52 = vsel %vm3329_vm8, %v6346_v29, %v3337_v48  ;;  %v4492_v29 = vld [vmem:[%s820_s10] ss:$0 sm:$0xff] }
 0x653   : > { %v3435_v33 = vpop.f32.mrb[20].mxu0 }
 0x654   : > { %v4628_v31 = vadd.f32 %v3435_v33, %v2493_v2  ;;  %v3521_v41 = vpop.f32.mrb[20].mxu1  ;;  %v3437_v24 = vpop.f32.mrb[21].mxu0 }
 0x655   : > { %v4632_v38 = vadd.f32 %v3521_v41, %v2501_v10  ;;  %v4629_v37 = vadd.f32 %v3437_v24, %v6337_v35  ;;  %v3523_v21 = vpop.f32.mrb[21].mxu1  ;;  %v3439_v32 = vpop.f32.mrb[22].mxu0 }
 0x656   : > { %vm3530_vm9 = vcmp.ge.f32.partialorder %v4628_v31, 0.0  ;;  %v3538_v60 = vmul.f32 0.01, %v4628_v31  ;;  %v4633_v57 = vadd.f32 %v3523_v21, %v6340_v43  ;;  %v4630_v25 = vadd.f32 %v3439_v32, %v2493_v2  ;;  %v3525_v51 = vpop.f32.mrb[22].mxu1  ;;  %v3441_v9 = vpop.f32.mrb[23].mxu0 }
 0x657   : > { %vm3532_vm10 = vcmp.ge.f32.partialorder %v4632_v38, 0.0  ;;  %v3540_v49 = vmul.f32 0.01, %v4632_v38  ;;  %vm3531_vm11 = vcmp.ge.f32.partialorder %v4629_v37, 0.0  ;;  %v3539_v42 = vmul.f32 0.01, %v4629_v37 }
 0x658   : > { %v3546_v34 = vsel %vm3530_vm9, %v4628_v31, %v3538_v60  ;;  %vm3533_vm12 = vcmp.ge.f32.partialorder %v4633_v57, 0.0  ;;  %v3541_v46 = vmul.f32 0.01, %v4633_v57  ;;  %vm3534_vm13 = vcmp.ge.f32.partialorder %v4630_v25, 0.0  ;;  %v3527_v26 = vpop.f32.mrb[23].mxu1 }
 0x659   : > { %v3554_v18 = vadd.f32 %v3546_v34, %v3338_v20  ;;  %v3548_v3 = vsel %vm3532_vm10, %v4632_v38, %v3540_v49  ;;  %v3547_v4 = vsel %vm3531_vm11, %v4629_v37, %v3539_v42  ;;  %v3542_v5 = vmul.f32 0.01, %v4630_v25 }
 0x65a   : > { %v3556_v6 = vadd.f32 %v3548_v3, %v3340_v28  ;;  %v3555_v11 = vadd.f32 %v3547_v4, %v3339_v30  ;;  %v3549_v12 = vsel %vm3533_vm12, %v4633_v57, %v3541_v46  ;;  %v4634_v13 = vadd.f32 %v3525_v51, %v2501_v10 }
 0x65b   : > { %v3557_v15 = vadd.f32 %v3549_v12, %v3341_v47  ;;  %v3550_v16 = vsel %vm3534_vm13, %v4630_v25, %v3542_v5  ;;  %v4631_v45 = vadd.f32 %v3441_v9, %v6337_v35  ;;  %v4635_v63 = vadd.f32 %v3527_v26, %v6340_v43 }
 0x65c   : > { %v3558_v39 = vadd.f32 %v3550_v16, %v3342_v14  ;;  %vm3536_vm14 = vcmp.ge.f32.partialorder %v4634_v13, 0.0  ;;  %v3544_v40 = vmul.f32 0.01, %v4634_v13  ;;  %v3562_v1 = vmul.f32 0.5, %v3554_v18 }
 0x65d   : > { %vm3535_vm15 = vcmp.ge.f32.partialorder %v4631_v45, 0.0  ;;  %v3543_v62 = vmul.f32 0.01, %v4631_v45  ;;  %vm3537_vm0 = vcmp.ge.f32.partialorder %v4635_v63, 0.0  ;;  %v3545_v35 = vmul.f32 0.01, %v4635_v63 }
 0x65e   : > { %v3566_v2 = vmul.f32 0.5, %v3558_v39  ;;  %v3552_v22 = vsel %vm3536_vm14, %v4634_v13, %v3544_v40  ;;  %v3564_v36 = vmul.f32 0.5, %v3556_v6  ;;  %v3563_v27 = vmul.f32 0.5, %v3555_v11 }
 0x65f   : > { %v3560_v10 = vadd.f32 %v3552_v22, %v3344_v61  ;;  %v3551_v50 = vsel %vm3535_vm15, %v4631_v45, %v3543_v62  ;;  %v3553_v53 = vsel %vm3537_vm0, %v4635_v63, %v3545_v35  ;;  %v3565_v58 = vmul.f32 0.5, %v3557_v15 }
 0x660   : > { %v3559_v17 = vadd.f32 %v3551_v50, %v3343_v0  ;;  %v3570_v44 = vpack.c.bf16 %v3566_v2, %v3562_v1  ;;  %v3561_v43 = vadd.f32 %v3553_v53, %v3345_v52 }
 0x661   : > { %v3568_v19 = vmul.f32 0.5, %v3560_v10 }
 0x662   : > { %v3567_v55 = vmul.f32 0.5, %v3559_v17  ;;  %v3569_v59 = vmul.f32 0.5, %v3561_v43 }
 0x663   : > { %v3572_v23 = vpack.c.bf16 %v3568_v19, %v3564_v36 }
 0x664   : > { %v3571_v7 = vpack.c.bf16 %v3567_v55, %v3563_v27  ;;  %v3573_v20 = vpack.c.bf16 %v3569_v59, %v3565_v58 }
 0x666   : > { %3869 = vmatprep.mubr.bf16.mxu0 %v3571_v7  ;;  %3910 = vmatprep.mubr.bf16.mxu1 %v3573_v20 }
 0x667   : > { %3870 = vmatmul.mubr.bf16.vlgmr.msra.gmra.mrb[24].mxu0 %v3570_v44  ;;  %3911 = vmatmul.mubr.bf16.vlgmr.msra.gmra.mrb[24].mxu1 %v3572_v23 }
 0x73a   : > { %v4556_v28 = vpop.f32.mrb[24].mxu0  ;;  %v4578_v47 = vpop.f32.mrb[24].mxu1 }
 0x73b   : > { %v4557_v30 = vpop.f32.mrb[25].mxu0  ;;  %v4579_v56 = vpop.f32.mrb[25].mxu1 }
 0x73c   : > { %v4558_v54 = vadd.f32 %v4557_v30, %v4556_v28  ;;  %v4559_v33 = vpop.f32.mrb[26].mxu0  ;;  %v4580_v24 = vadd.f32 %v4579_v56, %v4578_v47  ;;  %v4581_v8 = vpop.f32.mrb[26].mxu1 }
 0x73d   : > { %v4560_v31 = vpop.f32.mrb[27].mxu0  ;;  %v4582_v37 = vpop.f32.mrb[27].mxu1 }
 0x73e   : > { %v3872_v41 = vadd.f32 %v4558_v54, %v4492_v29  ;;  %v4561_v38 = vadd.f32 %v4560_v31, %v4559_v33  ;;  %v4583_v60 = vadd.f32 %v4582_v37, %v4581_v8 }
 0x740   : > { %v3913_v21 = vadd.f32 %v4580_v24, %v3872_v41  ;;  %v3875_v32 = vadd.f32 %v4561_v38, %v4492_v29 }
 0x742   : > { %3919 = vst [vmem:[%s5381_s25] sm:$0xff] %v3913_v21  ;;  %v3916_v57 = vadd.f32 %v4583_v60, %v3875_v32 }
 0x744   : > { %3920 = vst [vmem:[%s5381_s25 + $0x8] sm:$0xff] %v3916_v57 }
 0x745 PF: > { %s6670_s10 = sld [smem:[#allocation6_spill]]  ;;  %s6671_s21 = sld [smem:[#allocation4_spill]] }
 0x746   : > { %s6672_s22 = sld [smem:[#allocation5_spill]]  ;;  %s6673_s23 = sld [smem:[#allocation7_spill]] }
 0x747   : > { %s6674_s24 = sld [smem:[#allocation8_spill]] }
 0x74b   : > { %s26_s25 = sadd.s32 1, %s6670_s10  }
 0x74c   : > { %p23_p9 = scmp.ge.s32.totalorder %s26_s25, 8  }
 0x74e   :  { %25 = sbr.rel (!%p23_p9) target bundleno = 15 (0xf), region = 167 }

</bundles_post_ra>
